<compile_context>
chip_gen: v6e
topology: v6e:2x2x1
jax: 0.10.0
libtpu: 0.0.40
codegen_flags: <defaults>
</compile_context>

<pallas_src>
import functools
import math

import jax
import jax.numpy as jnp
from jax.experimental import pallas as pl
from jax.experimental.pallas import tpu as pltpu

LN_EPS = 1e-5
_NUM_BLOCK_PARAMS = 12


def _layer_norm(x, g, b):
    mu = jnp.mean(x, axis=-1, keepdims=True)
    xc = x - mu
    var = jnp.mean(xc * xc, axis=-1, keepdims=True)
    inv = jax.lax.rsqrt(var + LN_EPS)
    return xc * inv * g + b


def _gelu_tanh(x):
    # TODO(synk): PyTorch nn.GELU() default is the exact erf form; the tanh
    # approximation is used here (erf has no guaranteed Mosaic lowering).
    c = jnp.float32(0.7978845608028654)  # sqrt(2/pi)
    return 0.5 * x * (1.0 + jnp.tanh(c * (x + 0.044715 * x * x * x)))


def _split_heads(x2d, bb, n, nh, dh, head_dim_minor):
    """(bb*n, nh*dh) -> (bb*nh, n, dh) [head_dim_minor] or (bb*nh, dh, n).

    Uses only last-two-dim transposes (XLU) and order-preserving reshapes;
    general middle-axis permutes are not guaranteed to lower in Mosaic.
    """
    d = nh * dh
    x = x2d.reshape(bb, n, d)
    x = jnp.swapaxes(x, -1, -2)        # (bb, d, n)      minor transpose
    x = x.reshape(bb * nh, dh, n)      # pure split/merge of leading dims
    if head_dim_minor:
        x = jnp.swapaxes(x, -1, -2)    # (bb*nh, n, dh)  minor transpose
    return x


def _merge_heads(x, bb, n, nh, dh):
    """(bb*nh, n, dh) -> (bb*n, nh*dh); inverse of _split_heads."""
    x = jnp.swapaxes(x, -1, -2)        # (bb*nh, dh, n)
    x = x.reshape(bb, nh * dh, n)
    x = jnp.swapaxes(x, -1, -2)        # (bb, n, d)
    return x.reshape(bb * n, nh * dh)


def _block_forward(x3, prefs, num_heads):
    """One pre-LN transformer block on a (B_blk, N, D) slab resident in VMEM.

    Weights are read from their refs at the use site (short live ranges).
    """
    (ln1g, ln1b, wqkv, bqkv, wo, bo, ln2g, ln2b, w1, b1, w2, b2) = prefs
    bb, n, d = x3.shape
    m = bb * n
    nh = num_heads
    dh = d // nh

    # Flatten (B_blk, N) -> M rows: every dense projection is one big
    # (M, D) x (D, K) matmul — bf16 operands, f32 accumulation on the MXU.
    x = x3.reshape(m, d).astype(jnp.float32)

    # ---- Multi-head self-attention (pre-LN). 1/sqrt(dh) is pre-folded into
    # the Q weight/bias at prep time: no in-kernel scaling. ----
    h = _layer_norm(x, ln1g[...], ln1b[...])
    qkv = jnp.dot(h.astype(jnp.bfloat16), wqkv[...],
                  preferred_element_type=jnp.float32) + bqkv[...]      # (M, 3D)

    # All heads batched into the leading dim -> two MXU einsums, no per-head
    # Python loop / lane-dim sub-slices / masked scratch stores.
    q = _split_heads(qkv[:, 0:d], bb, n, nh, dh, head_dim_minor=True)
    kt = _split_heads(qkv[:, d:2 * d], bb, n, nh, dh, head_dim_minor=False)
    v = _split_heads(qkv[:, 2 * d:3 * d], bb, n, nh, dh, head_dim_minor=True)

    s = jnp.einsum('bqd,bdk->bqk', q.astype(jnp.bfloat16),
                   kt.astype(jnp.bfloat16),
                   preferred_element_type=jnp.float32)         # (bb*nh, N, N)
    s = s - jnp.max(s, axis=-1, keepdims=True)                 # lane reduce (XLU)
    p = jnp.exp(s)                                             # f32 softmax
    denom = jnp.sum(p, axis=-1, keepdims=True)                 # lane reduce (XLU)
    ctx = jnp.einsum('bqk,bkd->bqd', p.astype(jnp.bfloat16),
                     v.astype(jnp.bfloat16),
                     preferred_element_type=jnp.float32)       # (bb*nh, N, dh)
    ctx = ctx * pl.reciprocal(denom, approx=True)              # EUP divide
    ctx = _merge_heads(ctx, bb, n, nh, dh)                     # (M, D) f32

    attn = jnp.dot(ctx.astype(jnp.bfloat16), wo[...],
                   preferred_element_type=jnp.float32) + bo[...]
    x = x + attn

    # ---- MLP (pre-LN) ----
    h2 = _layer_norm(x, ln2g[...], ln2b[...])
    h2 = jnp.dot(h2.astype(jnp.bfloat16), w1[...],
                 preferred_element_type=jnp.float32) + b1[...]
    h2 = _gelu_tanh(h2)
    h2 = jnp.dot(h2.astype(jnp.bfloat16), w2[...],
                 preferred_element_type=jnp.float32) + b2[...]
    return (x + h2).reshape(bb, n, d)


def _hier_kernel(num_heads, d1, d2, x1_ref, x2_ref, *refs):
    p1 = refs[0:_NUM_BLOCK_PARAMS]
    p2 = refs[_NUM_BLOCK_PARAMS:2 * _NUM_BLOCK_PARAMS]
    out_ref = refs[2 * _NUM_BLOCK_PARAMS]

    z1 = _block_forward(x1_ref[...], p1, num_heads)
    z2 = _block_forward(x2_ref[...], p2, num_heads)

    # Fused lane-concatenated output (= torch.cat(dim=2)); single output slab,
    # no extra HBM round trip.
    if d1 % 128 == 0:
        # 128-aligned split point -> both slice stores are lane-aligned.
        out_ref[:, :, 0:d1] = z1.astype(out_ref.dtype)
        out_ref[:, :, d1:d1 + d2] = z2.astype(out_ref.dtype)
    else:
        # Keep the store lane-dense: one contiguous full-block store instead
        # of two masked partial stores starting mid-lane.
        out_ref[...] = jnp.concatenate(
            [z1.astype(out_ref.dtype), z2.astype(out_ref.dtype)], axis=-1)


def prepare_block_params(params, num_heads):
    """Fuse QKV, fold 1/sqrt(dh) into Q, cast weight matrices to bf16.

    Call ONCE per model: keeps the concat / cast out of the forward hot path.
    """
    d = params["wq"].shape[0]
    scale = 1.0 / math.sqrt(d // num_heads)
    wqkv = jnp.concatenate(
        [params["wq"] * scale, params["wk"], params["wv"]],
        axis=1).astype(jnp.bfloat16)
    bqkv = jnp.concatenate(
        [params["bq"] * scale, params["bk"], params["bv"]],
        axis=1).astype(jnp.float32)
    return (params["ln1g"].astype(jnp.float32), params["ln1b"].astype(jnp.float32),
            wqkv, bqkv,
            params["wo"].astype(jnp.bfloat16), params["bo"].astype(jnp.float32),
            params["ln2g"].astype(jnp.float32), params["ln2b"].astype(jnp.float32),
            params["w1"].astype(jnp.bfloat16), params["b1"].astype(jnp.float32),
            params["w2"].astype(jnp.bfloat16), params["b2"].astype(jnp.float32))


def _const_spec(arr, single_buffer):
    nd = arr.ndim
    index_map = lambda i, _nd=nd: (0,) * _nd
    if single_buffer:
        # Constant block index: double buffering would only double VMEM use.
        return pl.BlockSpec(arr.shape, index_map, pipeline_mode=pl.Buffered(1))
    return pl.BlockSpec(arr.shape, index_map)


def _estimate_vmem_bytes(block_b, n, d1, d2, num_heads, hid1, hid2,
                         weight_bytes, in_itemsize, out_itemsize):
    """Rough per-grid-step VMEM footprint, used to size block_b."""
    m = block_b * n

    def stream(d, hid):
        w = m * 3 * d * 4                          # fused QKV activations (f32)
        w += 3 * block_b * num_heads * n * n * 4   # score / prob slabs (f32)
        w += 6 * m * d * 4                         # LN / residual / ctx slabs
        w += m * hid * 4                           # MLP hidden (f32)
        return w

    total = 2 * m * (d1 + d2) * in_itemsize        # double-buffered input blocks
    total += 2 * m * (d1 + d2) * out_itemsize      # double-buffered output block
    total += weight_bytes                          # single-buffered constants
    return total + stream(d1, hid1) + stream(d2, hid2)


def hierarchical_attention_block(x1, x2, prepared1, prepared2, num_heads,
                                 block_b=None):
    """x1: (B, N, D1), x2: (B, N, D2) -> (B, N, D1+D2). One fused pallas_call.

    prepared1 / prepared2 come from prepare_block_params (called once).
    """
    b, n, d1 = x1.shape
    b2_, n2_, d2 = x2.shape
    assert b2_ == b and n2_ == n, "both streams must share (batch, seq)"
    assert d1 % num_heads == 0 and d2 % num_heads == 0

    p1, p2 = tuple(prepared1), tuple(prepared2)
    hid1 = p1[8].shape[1]
    hid2 = p2[8].shape[1]
    weight_bytes = sum(int(a.size) * a.dtype.itemsize for a in p1 + p2)
    in_itemsize = jnp.dtype(x1.dtype).itemsize
    out_itemsize = jnp.dtype(x1.dtype).itemsize

    # Generation-aware VMEM budget: ~80% of physical capacity (64 MiB on v7x,
    # 128 MiB on v5e/v6e), used both for block_b selection and the Mosaic cap.
    try:
        vmem_cap = int(pltpu.get_tpu_info().vmem_capacity_bytes)
    except Exception:
        vmem_cap = 64 * 1024 * 1024
    vmem_budget = min(int(0.8 * vmem_cap), 112 * 1024 * 1024)

    if block_b is None:
        # Target M = block_b*N ~ 512 rows: fills the 256-wide MXUs on v6e/v7x
        # and amortizes the ~0.35us/step grid overhead.
        block_b = max(1, min(b, max(1, 512 // max(n, 1))))
        if b >= 2:
            # Keep grid length >= 2 so ("parallel",) can feed both v7x cores.
            block_b = min(block_b, (b + 1) // 2)
        while block_b > 1 and _estimate_vmem_bytes(
                block_b, n, d1, d2, num_heads, hid1, hid2,
                weight_bytes, in_itemsize, out_itemsize) > vmem_budget:
            block_b -= 1

    # Ragged batch: pad B up to a multiple of block_b instead of shrinking the
    # block to 1 when B is prime / non-divisible.
    grid_len = -(-b // block_b)
    b_pad = grid_len * block_b
    x1p, x2p = x1, x2
    if b_pad != b:
        x1p = jnp.pad(x1, ((0, b_pad - b), (0, 0), (0, 0)))
        x2p = jnp.pad(x2, ((0, b_pad - b), (0, 0), (0, 0)))

    kernel = functools.partial(_hier_kernel, num_heads, d1, d2)

    def build(single_buffer_weights):
        in_specs = (
            [pl.BlockSpec((block_b, n, d1), lambda i: (i, 0, 0)),
             pl.BlockSpec((block_b, n, d2), lambda i: (i, 0, 0))]
            + [_const_spec(a, single_buffer_weights) for a in p1]
            + [_const_spec(a, single_buffer_weights) for a in p2])
        out_spec = pl.BlockSpec((block_b, n, d1 + d2), lambda i: (i, 0, 0))
        return pl.pallas_call(
            kernel,
            out_shape=jax.ShapeDtypeStruct((b_pad, n, d1 + d2), x1.dtype),
            grid=(grid_len,),
            in_specs=in_specs,
            out_specs=out_spec,
            compiler_params=pltpu.CompilerParams(
                dimension_semantics=("parallel",),     # megacore-shardable (v7x)
                vmem_limit_bytes=vmem_budget),
        )

    try:
        out = build(True)(x1p, x2p, *p1, *p2)
    except Exception:
        # TODO(synk): pl.Buffered(1) rejected by this jax/Mosaic build; fall
        # back to default (double-buffered) constant weights.
        out = build(False)(x1p, x2p, *p1, *p2)

    return out if b_pad == b else out[:b]


def init_block_params(key, d, mlp_hidden):
    ks = jax.random.split(key, 6)
    std = 0.02
    return {
        "ln1g": jnp.ones((1, d), jnp.float32),
        "ln1b": jnp.zeros((1, d), jnp.float32),
        "wq": std * jax.random.normal(ks[0], (d, d), jnp.float32),
        "bq": jnp.zeros((1, d), jnp.float32),
        "wk": std * jax.random.normal(ks[1], (d, d), jnp.float32),
        "bk": jnp.zeros((1, d), jnp.float32),
        "wv": std * jax.random.normal(ks[2], (d, d), jnp.float32),
        "bv": jnp.zeros((1, d), jnp.float32),
        "wo": std * jax.random.normal(ks[3], (d, d), jnp.float32),
        "bo": jnp.zeros((1, d), jnp.float32),
        "ln2g": jnp.ones((1, d), jnp.float32),
        "ln2b": jnp.zeros((1, d), jnp.float32),
        "w1": std * jax.random.normal(ks[4], (d, mlp_hidden), jnp.float32),
        "b1": jnp.zeros((1, mlp_hidden), jnp.float32),
        "w2": std * jax.random.normal(ks[5], (mlp_hidden, d), jnp.float32),
        "b2": jnp.zeros((1, d), jnp.float32),
    }


if __name__ == "__main__":
    # Two token streams with identical (B, N) (required for cat on dim=2) and
    # different feature dims, as in the module.
    B, N = 2, 8
    D1, D2 = 32, 16
    NUM_HEADS = 4        # MSAConfig.num_heads
    MLP_RATIO = 2        # MLPConfig hidden ratio

    key = jax.random.PRNGKey(0)
    kx1, kx2, kp1, kp2 = jax.random.split(key, 4)

    x1 = jax.random.normal(kx1, (B, N, D1), jnp.float32)
    x2 = jax.random.normal(kx2, (B, N, D2), jnp.float32)

    params1 = init_block_params(kp1, D1, MLP_RATIO * D1)
    params2 = init_block_params(kp2, D2, MLP_RATIO * D2)

    # Weight fusion / bf16 casts / Q-scale folding hoisted out of the hot path.
    prepared1 = prepare_block_params(params1, NUM_HEADS)
    prepared2 = prepare_block_params(params2, NUM_HEADS)

    out = hierarchical_attention_block(x1, x2, prepared1, prepared2, NUM_HEADS)
    out = jax.block_until_ready(out)

    assert out.shape == (B, N, D1 + D2), out.shape
    print("KERNEL_OK")
</pallas_src>

<mosaic_0001>
module attributes {stable_mosaic.version = 11 : i64} {
  func.func @_hier_kernel(%arg0: i32, %arg1: memref<1x8x32xf32, #tpu.memory_space<vmem>>, %arg2: memref<1x8x16xf32, #tpu.memory_space<vmem>>, %arg3: memref<1x32xf32, #tpu.memory_space<vmem>>, %arg4: memref<1x32xf32, #tpu.memory_space<vmem>>, %arg5: memref<32x96xbf16, #tpu.memory_space<vmem>>, %arg6: memref<1x96xf32, #tpu.memory_space<vmem>>, %arg7: memref<32x32xbf16, #tpu.memory_space<vmem>>, %arg8: memref<1x32xf32, #tpu.memory_space<vmem>>, %arg9: memref<1x32xf32, #tpu.memory_space<vmem>>, %arg10: memref<1x32xf32, #tpu.memory_space<vmem>>, %arg11: memref<32x64xbf16, #tpu.memory_space<vmem>>, %arg12: memref<1x64xf32, #tpu.memory_space<vmem>>, %arg13: memref<64x32xbf16, #tpu.memory_space<vmem>>, %arg14: memref<1x32xf32, #tpu.memory_space<vmem>>, %arg15: memref<1x16xf32, #tpu.memory_space<vmem>>, %arg16: memref<1x16xf32, #tpu.memory_space<vmem>>, %arg17: memref<16x48xbf16, #tpu.memory_space<vmem>>, %arg18: memref<1x48xf32, #tpu.memory_space<vmem>>, %arg19: memref<16x16xbf16, #tpu.memory_space<vmem>>, %arg20: memref<1x16xf32, #tpu.memory_space<vmem>>, %arg21: memref<1x16xf32, #tpu.memory_space<vmem>>, %arg22: memref<1x16xf32, #tpu.memory_space<vmem>>, %arg23: memref<16x32xbf16, #tpu.memory_space<vmem>>, %arg24: memref<1x32xf32, #tpu.memory_space<vmem>>, %arg25: memref<32x16xbf16, #tpu.memory_space<vmem>>, %arg26: memref<1x16xf32, #tpu.memory_space<vmem>>, %arg27: memref<1x8x48xf32, #tpu.memory_space<vmem>>) attributes {dimension_semantics = [#tpu.dimension_semantics<parallel>], iteration_bounds = array<i64: 2>, scalar_prefetch = 0 : i64, scratch_operands = 0 : i64, tpu.core_type = #tpu.core_type<tc>, window_params = [{transform_indices = @transform_0, window_bounds = array<i64: 1, 8, 32>}, {transform_indices = @transform_1, window_bounds = array<i64: 1, 8, 16>}, {pipeline_mode = #tpu.pipeline_mode<synchronous>, transform_indices = @transform_2, window_bounds = array<i64: 1, 32>}, {pipeline_mode = #tpu.pipeline_mode<synchronous>, transform_indices = @transform_3, window_bounds = array<i64: 1, 32>}, {pipeline_mode = #tpu.pipeline_mode<synchronous>, transform_indices = @transform_4, window_bounds = array<i64: 32, 96>}, {pipeline_mode = #tpu.pipeline_mode<synchronous>, transform_indices = @transform_5, window_bounds = array<i64: 1, 96>}, {pipeline_mode = #tpu.pipeline_mode<synchronous>, transform_indices = @transform_6, window_bounds = array<i64: 32, 32>}, {pipeline_mode = #tpu.pipeline_mode<synchronous>, transform_indices = @transform_7, window_bounds = array<i64: 1, 32>}, {pipeline_mode = #tpu.pipeline_mode<synchronous>, transform_indices = @transform_8, window_bounds = array<i64: 1, 32>}, {pipeline_mode = #tpu.pipeline_mode<synchronous>, transform_indices = @transform_9, window_bounds = array<i64: 1, 32>}, {pipeline_mode = #tpu.pipeline_mode<synchronous>, transform_indices = @transform_10, window_bounds = array<i64: 32, 64>}, {pipeline_mode = #tpu.pipeline_mode<synchronous>, transform_indices = @transform_11, window_bounds = array<i64: 1, 64>}, {pipeline_mode = #tpu.pipeline_mode<synchronous>, transform_indices = @transform_12, window_bounds = array<i64: 64, 32>}, {pipeline_mode = #tpu.pipeline_mode<synchronous>, transform_indices = @transform_13, window_bounds = array<i64: 1, 32>}, {pipeline_mode = #tpu.pipeline_mode<synchronous>, transform_indices = @transform_14, window_bounds = array<i64: 1, 16>}, {pipeline_mode = #tpu.pipeline_mode<synchronous>, transform_indices = @transform_15, window_bounds = array<i64: 1, 16>}, {pipeline_mode = #tpu.pipeline_mode<synchronous>, transform_indices = @transform_16, window_bounds = array<i64: 16, 48>}, {pipeline_mode = #tpu.pipeline_mode<synchronous>, transform_indices = @transform_17, window_bounds = array<i64: 1, 48>}, {pipeline_mode = #tpu.pipeline_mode<synchronous>, transform_indices = @transform_18, window_bounds = array<i64: 16, 16>}, {pipeline_mode = #tpu.pipeline_mode<synchronous>, transform_indices = @transform_19, window_bounds = array<i64: 1, 16>}, {pipeline_mode = #tpu.pipeline_mode<synchronous>, transform_indices = @transform_20, window_bounds = array<i64: 1, 16>}, {pipeline_mode = #tpu.pipeline_mode<synchronous>, transform_indices = @transform_21, window_bounds = array<i64: 1, 16>}, {pipeline_mode = #tpu.pipeline_mode<synchronous>, transform_indices = @transform_22, window_bounds = array<i64: 16, 32>}, {pipeline_mode = #tpu.pipeline_mode<synchronous>, transform_indices = @transform_23, window_bounds = array<i64: 1, 32>}, {pipeline_mode = #tpu.pipeline_mode<synchronous>, transform_indices = @transform_24, window_bounds = array<i64: 32, 16>}, {pipeline_mode = #tpu.pipeline_mode<synchronous>, transform_indices = @transform_25, window_bounds = array<i64: 1, 16>}, {transform_indices = @transform_26, window_bounds = array<i64: 1, 8, 48>}]} {
    %c0 = arith.constant 0 : index
    %c0_0 = arith.constant 0 : index
    %c0_1 = arith.constant 0 : index
    %0 = vector.load %arg1[%c0, %c0_0, %c0_1] : memref<1x8x32xf32, #tpu.memory_space<vmem>>, vector<1x8x32xf32>
    %1 = vector.shape_cast %0 : vector<1x8x32xf32> to vector<8x32xf32>
    %c0_2 = arith.constant 0 : index
    %c0_3 = arith.constant 0 : index
    %2 = vector.load %arg3[%c0_2, %c0_3] : memref<1x32xf32, #tpu.memory_space<vmem>>, vector<1x32xf32>
    %c0_4 = arith.constant 0 : index
    %c0_5 = arith.constant 0 : index
    %3 = vector.load %arg4[%c0_4, %c0_5] : memref<1x32xf32, #tpu.memory_space<vmem>>, vector<1x32xf32>
    %cst = arith.constant dense<0.000000e+00> : vector<8xf32>
    %4 = vector.multi_reduction <add>, %1, %cst [1] : vector<8x32xf32> to vector<8xf32>
    %5 = vector.shape_cast %4 : vector<8xf32> to vector<8x1xf32>
    %cst_6 = arith.constant 3.200000e+01 : f32
    %6 = vector.broadcast %cst_6 : f32 to vector<8x1xf32>
    %7 = arith.divf %5, %6 : vector<8x1xf32>
    %8 = vector.broadcast %7 : vector<8x1xf32> to vector<8x32xf32>
    %9 = arith.subf %1, %8 : vector<8x32xf32>
    %10 = arith.mulf %9, %9 : vector<8x32xf32>
    %cst_7 = arith.constant dense<0.000000e+00> : vector<8xf32>
    %11 = vector.multi_reduction <add>, %10, %cst_7 [1] : vector<8x32xf32> to vector<8xf32>
    %12 = vector.shape_cast %11 : vector<8xf32> to vector<8x1xf32>
    %cst_8 = arith.constant 3.200000e+01 : f32
    %13 = vector.broadcast %cst_8 : f32 to vector<8x1xf32>
    %14 = arith.divf %12, %13 : vector<8x1xf32>
    %cst_9 = arith.constant 9.99999974E-6 : f32
    %15 = vector.broadcast %cst_9 : f32 to vector<8x1xf32>
    %16 = arith.addf %14, %15 : vector<8x1xf32>
    %17 = math.rsqrt %16 : vector<8x1xf32>
    %18 = vector.broadcast %17 : vector<8x1xf32> to vector<8x32xf32>
    %19 = arith.mulf %9, %18 : vector<8x32xf32>
    %20 = vector.broadcast %2 : vector<1x32xf32> to vector<8x32xf32>
    %21 = arith.mulf %19, %20 : vector<8x32xf32>
    %22 = vector.broadcast %3 : vector<1x32xf32> to vector<8x32xf32>
    %23 = arith.addf %21, %22 : vector<8x32xf32>
    %24 = arith.truncf %23 : vector<8x32xf32> to vector<8x32xbf16>
    %c0_10 = arith.constant 0 : index
    %c0_11 = arith.constant 0 : index
    %25 = vector.load %arg5[%c0_10, %c0_11] : memref<32x96xbf16, #tpu.memory_space<vmem>>, vector<32x96xbf16>
    %cst_12 = arith.constant dense<0.000000e+00> : vector<8x96xf32>
    %26 = tpu.matmul %24, %25, %cst_12 {dimension_numbers = #tpu.dot_dimension_numbers<[1], [0], [0], [1], [0, 0, 1, 1], [], []>} : vector<8x32xbf16>, vector<32x96xbf16>, vector<8x96xf32> -> vector<8x96xf32>
    %c0_13 = arith.constant 0 : index
    %c0_14 = arith.constant 0 : index
    %27 = vector.load %arg6[%c0_13, %c0_14] : memref<1x96xf32, #tpu.memory_space<vmem>>, vector<1x96xf32>
    %28 = vector.broadcast %27 : vector<1x96xf32> to vector<8x96xf32>
    %29 = arith.addf %26, %28 : vector<8x96xf32>
    %30 = vector.extract_strided_slice %29 {offsets = [0, 0], sizes = [8, 32], strides = [1, 1]} : vector<8x96xf32> to vector<8x32xf32>
    %31 = vector.shape_cast %30 : vector<8x32xf32> to vector<1x8x32xf32>
    %32 = tpu.transpose %31, [0, 2, 1] : vector<1x8x32xf32> -> vector<1x32x8xf32>
    %33 = vector.shape_cast %32 : vector<1x32x8xf32> to vector<4x8x8xf32>
    %34 = tpu.transpose %33, [0, 2, 1] : vector<4x8x8xf32> -> vector<4x8x8xf32>
    %35 = vector.extract_strided_slice %29 {offsets = [0, 32], sizes = [8, 32], strides = [1, 1]} : vector<8x96xf32> to vector<8x32xf32>
    %36 = vector.shape_cast %35 : vector<8x32xf32> to vector<1x8x32xf32>
    %37 = tpu.transpose %36, [0, 2, 1] : vector<1x8x32xf32> -> vector<1x32x8xf32>
    %38 = vector.shape_cast %37 : vector<1x32x8xf32> to vector<4x8x8xf32>
    %39 = vector.extract_strided_slice %29 {offsets = [0, 64], sizes = [8, 32], strides = [1, 1]} : vector<8x96xf32> to vector<8x32xf32>
    %40 = vector.shape_cast %39 : vector<8x32xf32> to vector<1x8x32xf32>
    %41 = tpu.transpose %40, [0, 2, 1] : vector<1x8x32xf32> -> vector<1x32x8xf32>
    %42 = vector.shape_cast %41 : vector<1x32x8xf32> to vector<4x8x8xf32>
    %43 = tpu.transpose %42, [0, 2, 1] : vector<4x8x8xf32> -> vector<4x8x8xf32>
    %44 = arith.truncf %34 : vector<4x8x8xf32> to vector<4x8x8xbf16>
    %45 = arith.truncf %38 : vector<4x8x8xf32> to vector<4x8x8xbf16>
    "tpu.trace_start"() <{level = 10 : i32, message = "bqd,bdk->bqk"}> : () -> ()
    %cst_15 = arith.constant dense<0.000000e+00> : vector<4x8x8xf32>
    %46 = tpu.matmul %44, %45, %cst_15 {dimension_numbers = #tpu.dot_dimension_numbers<[2], [1], [1], [2], [0, 0, 0, 1, 1, 2], [0], [0]>} : vector<4x8x8xbf16>, vector<4x8x8xbf16>, vector<4x8x8xf32> -> vector<4x8x8xf32>
    "tpu.trace_stop"() : () -> ()
    %cst_16 = arith.constant dense<0xFF800000> : vector<4x8xf32>
    %47 = vector.multi_reduction <maximumf>, %46, %cst_16 [2] : vector<4x8x8xf32> to vector<4x8xf32>
    %48 = vector.shape_cast %47 : vector<4x8xf32> to vector<4x8x1xf32>
    %49 = vector.broadcast %48 : vector<4x8x1xf32> to vector<4x8x8xf32>
    %50 = arith.subf %46, %49 : vector<4x8x8xf32>
    %51 = math.exp %50 : vector<4x8x8xf32>
    %cst_17 = arith.constant dense<0.000000e+00> : vector<4x8xf32>
    %52 = vector.multi_reduction <add>, %51, %cst_17 [2] : vector<4x8x8xf32> to vector<4x8xf32>
    %53 = vector.shape_cast %52 : vector<4x8xf32> to vector<4x8x1xf32>
    %54 = arith.truncf %51 : vector<4x8x8xf32> to vector<4x8x8xbf16>
    %55 = arith.truncf %43 : vector<4x8x8xf32> to vector<4x8x8xbf16>
    "tpu.trace_start"() <{level = 10 : i32, message = "bqk,bkd->bqd"}> : () -> ()
    %cst_18 = arith.constant dense<0.000000e+00> : vector<4x8x8xf32>
    %56 = tpu.matmul %54, %55, %cst_18 {dimension_numbers = #tpu.dot_dimension_numbers<[2], [1], [1], [2], [0, 0, 0, 1, 1, 2], [0], [0]>} : vector<4x8x8xbf16>, vector<4x8x8xbf16>, vector<4x8x8xf32> -> vector<4x8x8xf32>
    "tpu.trace_stop"() : () -> ()
    %57 = tpu.reciprocal %53 {approx = true} : vector<4x8x1xf32> -> vector<4x8x1xf32>
    %58 = vector.broadcast %57 : vector<4x8x1xf32> to vector<4x8x8xf32>
    %59 = arith.mulf %56, %58 : vector<4x8x8xf32>
    %60 = tpu.transpose %59, [0, 2, 1] : vector<4x8x8xf32> -> vector<4x8x8xf32>
    %61 = vector.shape_cast %60 : vector<4x8x8xf32> to vector<1x32x8xf32>
    %62 = tpu.transpose %61, [0, 2, 1] : vector<1x32x8xf32> -> vector<1x8x32xf32>
    %63 = vector.shape_cast %62 : vector<1x8x32xf32> to vector<8x32xf32>
    %64 = arith.truncf %63 : vector<8x32xf32> to vector<8x32xbf16>
    %c0_19 = arith.constant 0 : index
    %c0_20 = arith.constant 0 : index
    %65 = vector.load %arg7[%c0_19, %c0_20] : memref<32x32xbf16, #tpu.memory_space<vmem>>, vector<32x32xbf16>
    %cst_21 = arith.constant dense<0.000000e+00> : vector<8x32xf32>
    %66 = tpu.matmul %64, %65, %cst_21 {dimension_numbers = #tpu.dot_dimension_numbers<[1], [0], [0], [1], [0, 0, 1, 1], [], []>} : vector<8x32xbf16>, vector<32x32xbf16>, vector<8x32xf32> -> vector<8x32xf32>
    %c0_22 = arith.constant 0 : index
    %c0_23 = arith.constant 0 : index
    %67 = vector.load %arg8[%c0_22, %c0_23] : memref<1x32xf32, #tpu.memory_space<vmem>>, vector<1x32xf32>
    %68 = vector.broadcast %67 : vector<1x32xf32> to vector<8x32xf32>
    %69 = arith.addf %66, %68 : vector<8x32xf32>
    %70 = arith.addf %1, %69 : vector<8x32xf32>
    %c0_24 = arith.constant 0 : index
    %c0_25 = arith.constant 0 : index
    %71 = vector.load %arg9[%c0_24, %c0_25] : memref<1x32xf32, #tpu.memory_space<vmem>>, vector<1x32xf32>
    %c0_26 = arith.constant 0 : index
    %c0_27 = arith.constant 0 : index
    %72 = vector.load %arg10[%c0_26, %c0_27] : memref<1x32xf32, #tpu.memory_space<vmem>>, vector<1x32xf32>
    %cst_28 = arith.constant dense<0.000000e+00> : vector<8xf32>
    %73 = vector.multi_reduction <add>, %70, %cst_28 [1] : vector<8x32xf32> to vector<8xf32>
    %74 = vector.shape_cast %73 : vector<8xf32> to vector<8x1xf32>
    %cst_29 = arith.constant 3.200000e+01 : f32
    %75 = vector.broadcast %cst_29 : f32 to vector<8x1xf32>
    %76 = arith.divf %74, %75 : vector<8x1xf32>
    %77 = vector.broadcast %76 : vector<8x1xf32> to vector<8x32xf32>
    %78 = arith.subf %70, %77 : vector<8x32xf32>
    %79 = arith.mulf %78, %78 : vector<8x32xf32>
    %cst_30 = arith.constant dense<0.000000e+00> : vector<8xf32>
    %80 = vector.multi_reduction <add>, %79, %cst_30 [1] : vector<8x32xf32> to vector<8xf32>
    %81 = vector.shape_cast %80 : vector<8xf32> to vector<8x1xf32>
    %cst_31 = arith.constant 3.200000e+01 : f32
    %82 = vector.broadcast %cst_31 : f32 to vector<8x1xf32>
    %83 = arith.divf %81, %82 : vector<8x1xf32>
    %cst_32 = arith.constant 9.99999974E-6 : f32
    %84 = vector.broadcast %cst_32 : f32 to vector<8x1xf32>
    %85 = arith.addf %83, %84 : vector<8x1xf32>
    %86 = math.rsqrt %85 : vector<8x1xf32>
    %87 = vector.broadcast %86 : vector<8x1xf32> to vector<8x32xf32>
    %88 = arith.mulf %78, %87 : vector<8x32xf32>
    %89 = vector.broadcast %71 : vector<1x32xf32> to vector<8x32xf32>
    %90 = arith.mulf %88, %89 : vector<8x32xf32>
    %91 = vector.broadcast %72 : vector<1x32xf32> to vector<8x32xf32>
    %92 = arith.addf %90, %91 : vector<8x32xf32>
    %93 = arith.truncf %92 : vector<8x32xf32> to vector<8x32xbf16>
    %c0_33 = arith.constant 0 : index
    %c0_34 = arith.constant 0 : index
    %94 = vector.load %arg11[%c0_33, %c0_34] : memref<32x64xbf16, #tpu.memory_space<vmem>>, vector<32x64xbf16>
    %cst_35 = arith.constant dense<0.000000e+00> : vector<8x64xf32>
    %95 = tpu.matmul %93, %94, %cst_35 {dimension_numbers = #tpu.dot_dimension_numbers<[1], [0], [0], [1], [0, 0, 1, 1], [], []>} : vector<8x32xbf16>, vector<32x64xbf16>, vector<8x64xf32> -> vector<8x64xf32>
    %c0_36 = arith.constant 0 : index
    %c0_37 = arith.constant 0 : index
    %96 = vector.load %arg12[%c0_36, %c0_37] : memref<1x64xf32, #tpu.memory_space<vmem>>, vector<1x64xf32>
    %97 = vector.broadcast %96 : vector<1x64xf32> to vector<8x64xf32>
    %98 = arith.addf %95, %97 : vector<8x64xf32>
    %cst_38 = arith.constant 5.000000e-01 : f32
    %99 = vector.broadcast %cst_38 : f32 to vector<8x64xf32>
    %100 = arith.mulf %99, %98 : vector<8x64xf32>
    %cst_39 = arith.constant 4.471500e-02 : f32
    %101 = vector.broadcast %cst_39 : f32 to vector<8x64xf32>
    %102 = arith.mulf %101, %98 : vector<8x64xf32>
    %103 = arith.mulf %102, %98 : vector<8x64xf32>
    %104 = arith.mulf %103, %98 : vector<8x64xf32>
    %105 = arith.addf %98, %104 : vector<8x64xf32>
    %cst_40 = arith.constant 0.797884583 : f32
    %106 = vector.broadcast %cst_40 : f32 to vector<8x64xf32>
    %107 = arith.mulf %106, %105 : vector<8x64xf32>
    %108 = math.tanh %107 : vector<8x64xf32>
    %cst_41 = arith.constant 1.000000e+00 : f32
    %109 = vector.broadcast %cst_41 : f32 to vector<8x64xf32>
    %110 = arith.addf %109, %108 : vector<8x64xf32>
    %111 = arith.mulf %100, %110 : vector<8x64xf32>
    %112 = arith.truncf %111 : vector<8x64xf32> to vector<8x64xbf16>
    %c0_42 = arith.constant 0 : index
    %c0_43 = arith.constant 0 : index
    %113 = vector.load %arg13[%c0_42, %c0_43] : memref<64x32xbf16, #tpu.memory_space<vmem>>, vector<64x32xbf16>
    %cst_44 = arith.constant dense<0.000000e+00> : vector<8x32xf32>
    %114 = tpu.matmul %112, %113, %cst_44 {dimension_numbers = #tpu.dot_dimension_numbers<[1], [0], [0], [1], [0, 0, 1, 1], [], []>} : vector<8x64xbf16>, vector<64x32xbf16>, vector<8x32xf32> -> vector<8x32xf32>
    %c0_45 = arith.constant 0 : index
    %c0_46 = arith.constant 0 : index
    %115 = vector.load %arg14[%c0_45, %c0_46] : memref<1x32xf32, #tpu.memory_space<vmem>>, vector<1x32xf32>
    %116 = vector.broadcast %115 : vector<1x32xf32> to vector<8x32xf32>
    %117 = arith.addf %114, %116 : vector<8x32xf32>
    %118 = arith.addf %70, %117 : vector<8x32xf32>
    %119 = vector.shape_cast %118 : vector<8x32xf32> to vector<1x8x32xf32>
    %c0_47 = arith.constant 0 : index
    %c0_48 = arith.constant 0 : index
    %c0_49 = arith.constant 0 : index
    %120 = vector.load %arg2[%c0_47, %c0_48, %c0_49] : memref<1x8x16xf32, #tpu.memory_space<vmem>>, vector<1x8x16xf32>
    %121 = vector.shape_cast %120 : vector<1x8x16xf32> to vector<8x16xf32>
    %c0_50 = arith.constant 0 : index
    %c0_51 = arith.constant 0 : index
    %122 = vector.load %arg15[%c0_50, %c0_51] : memref<1x16xf32, #tpu.memory_space<vmem>>, vector<1x16xf32>
    %c0_52 = arith.constant 0 : index
    %c0_53 = arith.constant 0 : index
    %123 = vector.load %arg16[%c0_52, %c0_53] : memref<1x16xf32, #tpu.memory_space<vmem>>, vector<1x16xf32>
    %cst_54 = arith.constant dense<0.000000e+00> : vector<8xf32>
    %124 = vector.multi_reduction <add>, %121, %cst_54 [1] : vector<8x16xf32> to vector<8xf32>
    %125 = vector.shape_cast %124 : vector<8xf32> to vector<8x1xf32>
    %cst_55 = arith.constant 1.600000e+01 : f32
    %126 = vector.broadcast %cst_55 : f32 to vector<8x1xf32>
    %127 = arith.divf %125, %126 : vector<8x1xf32>
    %128 = vector.broadcast %127 : vector<8x1xf32> to vector<8x16xf32>
    %129 = arith.subf %121, %128 : vector<8x16xf32>
    %130 = arith.mulf %129, %129 : vector<8x16xf32>
    %cst_56 = arith.constant dense<0.000000e+00> : vector<8xf32>
    %131 = vector.multi_reduction <add>, %130, %cst_56 [1] : vector<8x16xf32> to vector<8xf32>
    %132 = vector.shape_cast %131 : vector<8xf32> to vector<8x1xf32>
    %cst_57 = arith.constant 1.600000e+01 : f32
    %133 = vector.broadcast %cst_57 : f32 to vector<8x1xf32>
    %134 = arith.divf %132, %133 : vector<8x1xf32>
    %cst_58 = arith.constant 9.99999974E-6 : f32
    %135 = vector.broadcast %cst_58 : f32 to vector<8x1xf32>
    %136 = arith.addf %134, %135 : vector<8x1xf32>
    %137 = math.rsqrt %136 : vector<8x1xf32>
    %138 = vector.broadcast %137 : vector<8x1xf32> to vector<8x16xf32>
    %139 = arith.mulf %129, %138 : vector<8x16xf32>
    %140 = vector.broadcast %122 : vector<1x16xf32> to vector<8x16xf32>
    %141 = arith.mulf %139, %140 : vector<8x16xf32>
    %142 = vector.broadcast %123 : vector<1x16xf32> to vector<8x16xf32>
    %143 = arith.addf %141, %142 : vector<8x16xf32>
    %144 = arith.truncf %143 : vector<8x16xf32> to vector<8x16xbf16>
    %c0_59 = arith.constant 0 : index
    %c0_60 = arith.constant 0 : index
    %145 = vector.load %arg17[%c0_59, %c0_60] : memref<16x48xbf16, #tpu.memory_space<vmem>>, vector<16x48xbf16>
    %cst_61 = arith.constant dense<0.000000e+00> : vector<8x48xf32>
    %146 = tpu.matmul %144, %145, %cst_61 {dimension_numbers = #tpu.dot_dimension_numbers<[1], [0], [0], [1], [0, 0, 1, 1], [], []>} : vector<8x16xbf16>, vector<16x48xbf16>, vector<8x48xf32> -> vector<8x48xf32>
    %c0_62 = arith.constant 0 : index
    %c0_63 = arith.constant 0 : index
    %147 = vector.load %arg18[%c0_62, %c0_63] : memref<1x48xf32, #tpu.memory_space<vmem>>, vector<1x48xf32>
    %148 = vector.broadcast %147 : vector<1x48xf32> to vector<8x48xf32>
    %149 = arith.addf %146, %148 : vector<8x48xf32>
    %150 = vector.extract_strided_slice %149 {offsets = [0, 0], sizes = [8, 16], strides = [1, 1]} : vector<8x48xf32> to vector<8x16xf32>
    %151 = vector.shape_cast %150 : vector<8x16xf32> to vector<1x8x16xf32>
    %152 = tpu.transpose %151, [0, 2, 1] : vector<1x8x16xf32> -> vector<1x16x8xf32>
    %153 = vector.shape_cast %152 : vector<1x16x8xf32> to vector<4x4x8xf32>
    %154 = tpu.transpose %153, [0, 2, 1] : vector<4x4x8xf32> -> vector<4x8x4xf32>
    %155 = vector.extract_strided_slice %149 {offsets = [0, 16], sizes = [8, 16], strides = [1, 1]} : vector<8x48xf32> to vector<8x16xf32>
    %156 = vector.shape_cast %155 : vector<8x16xf32> to vector<1x8x16xf32>
    %157 = tpu.transpose %156, [0, 2, 1] : vector<1x8x16xf32> -> vector<1x16x8xf32>
    %158 = vector.shape_cast %157 : vector<1x16x8xf32> to vector<4x4x8xf32>
    %159 = vector.extract_strided_slice %149 {offsets = [0, 32], sizes = [8, 16], strides = [1, 1]} : vector<8x48xf32> to vector<8x16xf32>
    %160 = vector.shape_cast %159 : vector<8x16xf32> to vector<1x8x16xf32>
    %161 = tpu.transpose %160, [0, 2, 1] : vector<1x8x16xf32> -> vector<1x16x8xf32>
    %162 = vector.shape_cast %161 : vector<1x16x8xf32> to vector<4x4x8xf32>
    %163 = tpu.transpose %162, [0, 2, 1] : vector<4x4x8xf32> -> vector<4x8x4xf32>
    %164 = arith.truncf %154 : vector<4x8x4xf32> to vector<4x8x4xbf16>
    %165 = arith.truncf %158 : vector<4x4x8xf32> to vector<4x4x8xbf16>
    "tpu.trace_start"() <{level = 10 : i32, message = "bqd,bdk->bqk"}> : () -> ()
    %cst_64 = arith.constant dense<0.000000e+00> : vector<4x8x8xf32>
    %166 = tpu.matmul %164, %165, %cst_64 {dimension_numbers = #tpu.dot_dimension_numbers<[2], [1], [1], [2], [0, 0, 0, 1, 1, 2], [0], [0]>} : vector<4x8x4xbf16>, vector<4x4x8xbf16>, vector<4x8x8xf32> -> vector<4x8x8xf32>
    "tpu.trace_stop"() : () -> ()
    %cst_65 = arith.constant dense<0xFF800000> : vector<4x8xf32>
    %167 = vector.multi_reduction <maximumf>, %166, %cst_65 [2] : vector<4x8x8xf32> to vector<4x8xf32>
    %168 = vector.shape_cast %167 : vector<4x8xf32> to vector<4x8x1xf32>
    %169 = vector.broadcast %168 : vector<4x8x1xf32> to vector<4x8x8xf32>
    %170 = arith.subf %166, %169 : vector<4x8x8xf32>
    %171 = math.exp %170 : vector<4x8x8xf32>
    %cst_66 = arith.constant dense<0.000000e+00> : vector<4x8xf32>
    %172 = vector.multi_reduction <add>, %171, %cst_66 [2] : vector<4x8x8xf32> to vector<4x8xf32>
    %173 = vector.shape_cast %172 : vector<4x8xf32> to vector<4x8x1xf32>
    %174 = arith.truncf %171 : vector<4x8x8xf32> to vector<4x8x8xbf16>
    %175 = arith.truncf %163 : vector<4x8x4xf32> to vector<4x8x4xbf16>
    "tpu.trace_start"() <{level = 10 : i32, message = "bqk,bkd->bqd"}> : () -> ()
    %cst_67 = arith.constant dense<0.000000e+00> : vector<4x8x4xf32>
    %176 = tpu.matmul %174, %175, %cst_67 {dimension_numbers = #tpu.dot_dimension_numbers<[2], [1], [1], [2], [0, 0, 0, 1, 1, 2], [0], [0]>} : vector<4x8x8xbf16>, vector<4x8x4xbf16>, vector<4x8x4xf32> -> vector<4x8x4xf32>
    "tpu.trace_stop"() : () -> ()
    %177 = tpu.reciprocal %173 {approx = true} : vector<4x8x1xf32> -> vector<4x8x1xf32>
    %178 = vector.broadcast %177 : vector<4x8x1xf32> to vector<4x8x4xf32>
    %179 = arith.mulf %176, %178 : vector<4x8x4xf32>
    %180 = tpu.transpose %179, [0, 2, 1] : vector<4x8x4xf32> -> vector<4x4x8xf32>
    %181 = vector.shape_cast %180 : vector<4x4x8xf32> to vector<1x16x8xf32>
    %182 = tpu.transpose %181, [0, 2, 1] : vector<1x16x8xf32> -> vector<1x8x16xf32>
    %183 = vector.shape_cast %182 : vector<1x8x16xf32> to vector<8x16xf32>
    %184 = arith.truncf %183 : vector<8x16xf32> to vector<8x16xbf16>
    %c0_68 = arith.constant 0 : index
    %c0_69 = arith.constant 0 : index
    %185 = vector.load %arg19[%c0_68, %c0_69] : memref<16x16xbf16, #tpu.memory_space<vmem>>, vector<16x16xbf16>
    %cst_70 = arith.constant dense<0.000000e+00> : vector<8x16xf32>
    %186 = tpu.matmul %184, %185, %cst_70 {dimension_numbers = #tpu.dot_dimension_numbers<[1], [0], [0], [1], [0, 0, 1, 1], [], []>} : vector<8x16xbf16>, vector<16x16xbf16>, vector<8x16xf32> -> vector<8x16xf32>
    %c0_71 = arith.constant 0 : index
    %c0_72 = arith.constant 0 : index
    %187 = vector.load %arg20[%c0_71, %c0_72] : memref<1x16xf32, #tpu.memory_space<vmem>>, vector<1x16xf32>
    %188 = vector.broadcast %187 : vector<1x16xf32> to vector<8x16xf32>
    %189 = arith.addf %186, %188 : vector<8x16xf32>
    %190 = arith.addf %121, %189 : vector<8x16xf32>
    %c0_73 = arith.constant 0 : index
    %c0_74 = arith.constant 0 : index
    %191 = vector.load %arg21[%c0_73, %c0_74] : memref<1x16xf32, #tpu.memory_space<vmem>>, vector<1x16xf32>
    %c0_75 = arith.constant 0 : index
    %c0_76 = arith.constant 0 : index
    %192 = vector.load %arg22[%c0_75, %c0_76] : memref<1x16xf32, #tpu.memory_space<vmem>>, vector<1x16xf32>
    %cst_77 = arith.constant dense<0.000000e+00> : vector<8xf32>
    %193 = vector.multi_reduction <add>, %190, %cst_77 [1] : vector<8x16xf32> to vector<8xf32>
    %194 = vector.shape_cast %193 : vector<8xf32> to vector<8x1xf32>
    %cst_78 = arith.constant 1.600000e+01 : f32
    %195 = vector.broadcast %cst_78 : f32 to vector<8x1xf32>
    %196 = arith.divf %194, %195 : vector<8x1xf32>
    %197 = vector.broadcast %196 : vector<8x1xf32> to vector<8x16xf32>
    %198 = arith.subf %190, %197 : vector<8x16xf32>
    %199 = arith.mulf %198, %198 : vector<8x16xf32>
    %cst_79 = arith.constant dense<0.000000e+00> : vector<8xf32>
    %200 = vector.multi_reduction <add>, %199, %cst_79 [1] : vector<8x16xf32> to vector<8xf32>
    %201 = vector.shape_cast %200 : vector<8xf32> to vector<8x1xf32>
    %cst_80 = arith.constant 1.600000e+01 : f32
    %202 = vector.broadcast %cst_80 : f32 to vector<8x1xf32>
    %203 = arith.divf %201, %202 : vector<8x1xf32>
    %cst_81 = arith.constant 9.99999974E-6 : f32
    %204 = vector.broadcast %cst_81 : f32 to vector<8x1xf32>
    %205 = arith.addf %203, %204 : vector<8x1xf32>
    %206 = math.rsqrt %205 : vector<8x1xf32>
    %207 = vector.broadcast %206 : vector<8x1xf32> to vector<8x16xf32>
    %208 = arith.mulf %198, %207 : vector<8x16xf32>
    %209 = vector.broadcast %191 : vector<1x16xf32> to vector<8x16xf32>
    %210 = arith.mulf %208, %209 : vector<8x16xf32>
    %211 = vector.broadcast %192 : vector<1x16xf32> to vector<8x16xf32>
    %212 = arith.addf %210, %211 : vector<8x16xf32>
    %213 = arith.truncf %212 : vector<8x16xf32> to vector<8x16xbf16>
    %c0_82 = arith.constant 0 : index
    %c0_83 = arith.constant 0 : index
    %214 = vector.load %arg23[%c0_82, %c0_83] : memref<16x32xbf16, #tpu.memory_space<vmem>>, vector<16x32xbf16>
    %cst_84 = arith.constant dense<0.000000e+00> : vector<8x32xf32>
    %215 = tpu.matmul %213, %214, %cst_84 {dimension_numbers = #tpu.dot_dimension_numbers<[1], [0], [0], [1], [0, 0, 1, 1], [], []>} : vector<8x16xbf16>, vector<16x32xbf16>, vector<8x32xf32> -> vector<8x32xf32>
    %c0_85 = arith.constant 0 : index
    %c0_86 = arith.constant 0 : index
    %216 = vector.load %arg24[%c0_85, %c0_86] : memref<1x32xf32, #tpu.memory_space<vmem>>, vector<1x32xf32>
    %217 = vector.broadcast %216 : vector<1x32xf32> to vector<8x32xf32>
    %218 = arith.addf %215, %217 : vector<8x32xf32>
    %cst_87 = arith.constant 5.000000e-01 : f32
    %219 = vector.broadcast %cst_87 : f32 to vector<8x32xf32>
    %220 = arith.mulf %219, %218 : vector<8x32xf32>
    %cst_88 = arith.constant 4.471500e-02 : f32
    %221 = vector.broadcast %cst_88 : f32 to vector<8x32xf32>
    %222 = arith.mulf %221, %218 : vector<8x32xf32>
    %223 = arith.mulf %222, %218 : vector<8x32xf32>
    %224 = arith.mulf %223, %218 : vector<8x32xf32>
    %225 = arith.addf %218, %224 : vector<8x32xf32>
    %cst_89 = arith.constant 0.797884583 : f32
    %226 = vector.broadcast %cst_89 : f32 to vector<8x32xf32>
    %227 = arith.mulf %226, %225 : vector<8x32xf32>
    %228 = math.tanh %227 : vector<8x32xf32>
    %cst_90 = arith.constant 1.000000e+00 : f32
    %229 = vector.broadcast %cst_90 : f32 to vector<8x32xf32>
    %230 = arith.addf %229, %228 : vector<8x32xf32>
    %231 = arith.mulf %220, %230 : vector<8x32xf32>
    %232 = arith.truncf %231 : vector<8x32xf32> to vector<8x32xbf16>
    %c0_91 = arith.constant 0 : index
    %c0_92 = arith.constant 0 : index
    %233 = vector.load %arg25[%c0_91, %c0_92] : memref<32x16xbf16, #tpu.memory_space<vmem>>, vector<32x16xbf16>
    %cst_93 = arith.constant dense<0.000000e+00> : vector<8x16xf32>
    %234 = tpu.matmul %232, %233, %cst_93 {dimension_numbers = #tpu.dot_dimension_numbers<[1], [0], [0], [1], [0, 0, 1, 1], [], []>} : vector<8x32xbf16>, vector<32x16xbf16>, vector<8x16xf32> -> vector<8x16xf32>
    %c0_94 = arith.constant 0 : index
    %c0_95 = arith.constant 0 : index
    %235 = vector.load %arg26[%c0_94, %c0_95] : memref<1x16xf32, #tpu.memory_space<vmem>>, vector<1x16xf32>
    %236 = vector.broadcast %235 : vector<1x16xf32> to vector<8x16xf32>
    %237 = arith.addf %234, %236 : vector<8x16xf32>
    %238 = arith.addf %190, %237 : vector<8x16xf32>
    %239 = vector.shape_cast %238 : vector<8x16xf32> to vector<1x8x16xf32>
    %240 = tpu.concatenate %119, %239 in 2 : vector<1x8x32xf32>, vector<1x8x16xf32> -> vector<1x8x48xf32>
    %c0_96 = arith.constant 0 : index
    %c0_97 = arith.constant 0 : index
    %c0_98 = arith.constant 0 : index
    %241 = vector.load %arg27[%c0_96, %c0_97, %c0_98] : memref<1x8x48xf32, #tpu.memory_space<vmem>>, vector<1x8x48xf32>
    tpu.vector_store %arg27[%c0_96, %c0_97, %c0_98], %240 {strides = array<i32>} : memref<1x8x48xf32, #tpu.memory_space<vmem>>, vector<1x8x48xf32>,
    return
  }
  func.func @transform_0(%arg0: i32) -> (i32, i32, i32) {
    %c0_i32 = arith.constant 0 : i32
    %c0_i32_0 = arith.constant 0 : i32
    %c0_i32_1 = arith.constant 0 : i32
    return %arg0, %c0_i32, %c0_i32_0 : i32, i32, i32
  }
  func.func @transform_1(%arg0: i32) -> (i32, i32, i32) {
    %c0_i32 = arith.constant 0 : i32
    %c0_i32_0 = arith.constant 0 : i32
    %c0_i32_1 = arith.constant 0 : i32
    return %arg0, %c0_i32, %c0_i32_0 : i32, i32, i32
  }
  func.func @transform_2(%arg0: i32) -> (i32, i32) {
    %c0_i32 = arith.constant 0 : i32
    %c0_i32_0 = arith.constant 0 : i32
    %c0_i32_1 = arith.constant 0 : i32
    return %c0_i32, %c0_i32_0 : i32, i32
  }
  func.func @transform_3(%arg0: i32) -> (i32, i32) {
    %c0_i32 = arith.constant 0 : i32
    %c0_i32_0 = arith.constant 0 : i32
    %c0_i32_1 = arith.constant 0 : i32
    return %c0_i32, %c0_i32_0 : i32, i32
  }
  func.func @transform_4(%arg0: i32) -> (i32, i32) {
    %c0_i32 = arith.constant 0 : i32
    %c0_i32_0 = arith.constant 0 : i32
    %c0_i32_1 = arith.constant 0 : i32
    return %c0_i32, %c0_i32_0 : i32, i32
  }
  func.func @transform_5(%arg0: i32) -> (i32, i32) {
    %c0_i32 = arith.constant 0 : i32
    %c0_i32_0 = arith.constant 0 : i32
    %c0_i32_1 = arith.constant 0 : i32
    return %c0_i32, %c0_i32_0 : i32, i32
  }
  func.func @transform_6(%arg0: i32) -> (i32, i32) {
    %c0_i32 = arith.constant 0 : i32
    %c0_i32_0 = arith.constant 0 : i32
    %c0_i32_1 = arith.constant 0 : i32
    return %c0_i32, %c0_i32_0 : i32, i32
  }
  func.func @transform_7(%arg0: i32) -> (i32, i32) {
    %c0_i32 = arith.constant 0 : i32
    %c0_i32_0 = arith.constant 0 : i32
    %c0_i32_1 = arith.constant 0 : i32
    return %c0_i32, %c0_i32_0 : i32, i32
  }
  func.func @transform_8(%arg0: i32) -> (i32, i32) {
    %c0_i32 = arith.constant 0 : i32
    %c0_i32_0 = arith.constant 0 : i32
    %c0_i32_1 = arith.constant 0 : i32
    return %c0_i32, %c0_i32_0 : i32, i32
  }
  func.func @transform_9(%arg0: i32) -> (i32, i32) {
    %c0_i32 = arith.constant 0 : i32
    %c0_i32_0 = arith.constant 0 : i32
    %c0_i32_1 = arith.constant 0 : i32
    return %c0_i32, %c0_i32_0 : i32, i32
  }
  func.func @transform_10(%arg0: i32) -> (i32, i32) {
    %c0_i32 = arith.constant 0 : i32
    %c0_i32_0 = arith.constant 0 : i32
    %c0_i32_1 = arith.constant 0 : i32
    return %c0_i32, %c0_i32_0 : i32, i32
  }
  func.func @transform_11(%arg0: i32) -> (i32, i32) {
    %c0_i32 = arith.constant 0 : i32
    %c0_i32_0 = arith.constant 0 : i32
    %c0_i32_1 = arith.constant 0 : i32
    return %c0_i32, %c0_i32_0 : i32, i32
  }
  func.func @transform_12(%arg0: i32) -> (i32, i32) {
    %c0_i32 = arith.constant 0 : i32
    %c0_i32_0 = arith.constant 0 : i32
    %c0_i32_1 = arith.constant 0 : i32
    return %c0_i32, %c0_i32_0 : i32, i32
  }
  func.func @transform_13(%arg0: i32) -> (i32, i32) {
    %c0_i32 = arith.constant 0 : i32
    %c0_i32_0 = arith.constant 0 : i32
    %c0_i32_1 = arith.constant 0 : i32
    return %c0_i32, %c0_i32_0 : i32, i32
  }
  func.func @transform_14(%arg0: i32) -> (i32, i32) {
    %c0_i32 = arith.constant 0 : i32
    %c0_i32_0 = arith.constant 0 : i32
    %c0_i32_1 = arith.constant 0 : i32
    return %c0_i32, %c0_i32_0 : i32, i32
  }
  func.func @transform_15(%arg0: i32) -> (i32, i32) {
    %c0_i32 = arith.constant 0 : i32
    %c0_i32_0 = arith.constant 0 : i32
    %c0_i32_1 = arith.constant 0 : i32
    return %c0_i32, %c0_i32_0 : i32, i32
  }
  func.func @transform_16(%arg0: i32) -> (i32, i32) {
    %c0_i32 = arith.constant 0 : i32
    %c0_i32_0 = arith.constant 0 : i32
    %c0_i32_1 = arith.constant 0 : i32
    return %c0_i32, %c0_i32_0 : i32, i32
  }
  func.func @transform_17(%arg0: i32) -> (i32, i32) {
    %c0_i32 = arith.constant 0 : i32
    %c0_i32_0 = arith.constant 0 : i32
    %c0_i32_1 = arith.constant 0 : i32
    return %c0_i32, %c0_i32_0 : i32, i32
  }
  func.func @transform_18(%arg0: i32) -> (i32, i32) {
    %c0_i32 = arith.constant 0 : i32
    %c0_i32_0 = arith.constant 0 : i32
    %c0_i32_1 = arith.constant 0 : i32
    return %c0_i32, %c0_i32_0 : i32, i32
  }
  func.func @transform_19(%arg0: i32) -> (i32, i32) {
    %c0_i32 = arith.constant 0 : i32
    %c0_i32_0 = arith.constant 0 : i32
    %c0_i32_1 = arith.constant 0 : i32
    return %c0_i32, %c0_i32_0 : i32, i32
  }
  func.func @transform_20(%arg0: i32) -> (i32, i32) {
    %c0_i32 = arith.constant 0 : i32
    %c0_i32_0 = arith.constant 0 : i32
    %c0_i32_1 = arith.constant 0 : i32
    return %c0_i32, %c0_i32_0 : i32, i32
  }
  func.func @transform_21(%arg0: i32) -> (i32, i32) {
    %c0_i32 = arith.constant 0 : i32
    %c0_i32_0 = arith.constant 0 : i32
    %c0_i32_1 = arith.constant 0 : i32
    return %c0_i32, %c0_i32_0 : i32, i32
  }
  func.func @transform_22(%arg0: i32) -> (i32, i32) {
    %c0_i32 = arith.constant 0 : i32
    %c0_i32_0 = arith.constant 0 : i32
    %c0_i32_1 = arith.constant 0 : i32
    return %c0_i32, %c0_i32_0 : i32, i32
  }
  func.func @transform_23(%arg0: i32) -> (i32, i32) {
    %c0_i32 = arith.constant 0 : i32
    %c0_i32_0 = arith.constant 0 : i32
    %c0_i32_1 = arith.constant 0 : i32
    return %c0_i32, %c0_i32_0 : i32, i32
  }
  func.func @transform_24(%arg0: i32) -> (i32, i32) {
    %c0_i32 = arith.constant 0 : i32
    %c0_i32_0 = arith.constant 0 : i32
    %c0_i32_1 = arith.constant 0 : i32
    return %c0_i32, %c0_i32_0 : i32, i32
  }
  func.func @transform_25(%arg0: i32) -> (i32, i32) {
    %c0_i32 = arith.constant 0 : i32
    %c0_i32_0 = arith.constant 0 : i32
    %c0_i32_1 = arith.constant 0 : i32
    return %c0_i32, %c0_i32_0 : i32, i32
  }
  func.func @transform_26(%arg0: i32) -> (i32, i32, i32) {
    %c0_i32 = arith.constant 0 : i32
    %c0_i32_0 = arith.constant 0 : i32
    %c0_i32_1 = arith.constant 0 : i32
    return %arg0, %c0_i32, %c0_i32_0 : i32, i32, i32
  }
}

module attributes {stable_mosaic.version = 11 : i64} {
  func.func @_hier_kernel(%arg0: i32, %arg1: memref<1x8x32xf32, #tpu.memory_space<vmem>>, %arg2: memref<1x8x16xf32, #tpu.memory_space<vmem>>, %arg3: memref<1x32xf32, #tpu.memory_space<vmem>>, %arg4: memref<1x32xf32, #tpu.memory_space<vmem>>, %arg5: memref<32x96xbf16, #tpu.memory_space<vmem>>, %arg6: memref<1x96xf32, #tpu.memory_space<vmem>>, %arg7: memref<32x32xbf16, #tpu.memory_space<vmem>>, %arg8: memref<1x32xf32, #tpu.memory_space<vmem>>, %arg9: memref<1x32xf32, #tpu.memory_space<vmem>>, %arg10: memref<1x32xf32, #tpu.memory_space<vmem>>, %arg11: memref<32x64xbf16, #tpu.memory_space<vmem>>, %arg12: memref<1x64xf32, #tpu.memory_space<vmem>>, %arg13: memref<64x32xbf16, #tpu.memory_space<vmem>>, %arg14: memref<1x32xf32, #tpu.memory_space<vmem>>, %arg15: memref<1x16xf32, #tpu.memory_space<vmem>>, %arg16: memref<1x16xf32, #tpu.memory_space<vmem>>, %arg17: memref<16x48xbf16, #tpu.memory_space<vmem>>, %arg18: memref<1x48xf32, #tpu.memory_space<vmem>>, %arg19: memref<16x16xbf16, #tpu.memory_space<vmem>>, %arg20: memref<1x16xf32, #tpu.memory_space<vmem>>, %arg21: memref<1x16xf32, #tpu.memory_space<vmem>>, %arg22: memref<1x16xf32, #tpu.memory_space<vmem>>, %arg23: memref<16x32xbf16, #tpu.memory_space<vmem>>, %arg24: memref<1x32xf32, #tpu.memory_space<vmem>>, %arg25: memref<32x16xbf16, #tpu.memory_space<vmem>>, %arg26: memref<1x16xf32, #tpu.memory_space<vmem>>, %arg27: memref<1x8x48xf32, #tpu.memory_space<vmem>>) attributes {dimension_semantics = [#tpu.dimension_semantics<parallel>], iteration_bounds = array<i64: 2>, scalar_prefetch = 0 : i64, scratch_operands = 0 : i64, tpu.core_type = #tpu.core_type<tc>, window_params = [{transform_indices = @transform_0, window_bounds = array<i64: 1, 8, 32>}, {transform_indices = @transform_1, window_bounds = array<i64: 1, 8, 16>}, {pipeline_mode = #tpu.pipeline_mode<synchronous>, transform_indices = @transform_2, window_bounds = array<i64: 1, 32>}, {pipeline_mode = #tpu.pipeline_mode<synchronous>, transform_indices = @transform_3, window_bounds = array<i64: 1, 32>}, {pipeline_mode = #tpu.pipeline_mode<synchronous>, transform_indices = @transform_4, window_bounds = array<i64: 32, 96>}, {pipeline_mode = #tpu.pipeline_mode<synchronous>, transform_indices = @transform_5, window_bounds = array<i64: 1, 96>}, {pipeline_mode = #tpu.pipeline_mode<synchronous>, transform_indices = @transform_6, window_bounds = array<i64: 32, 32>}, {pipeline_mode = #tpu.pipeline_mode<synchronous>, transform_indices = @transform_7, window_bounds = array<i64: 1, 32>}, {pipeline_mode = #tpu.pipeline_mode<synchronous>, transform_indices = @transform_8, window_bounds = array<i64: 1, 32>}, {pipeline_mode = #tpu.pipeline_mode<synchronous>, transform_indices = @transform_9, window_bounds = array<i64: 1, 32>}, {pipeline_mode = #tpu.pipeline_mode<synchronous>, transform_indices = @transform_10, window_bounds = array<i64: 32, 64>}, {pipeline_mode = #tpu.pipeline_mode<synchronous>, transform_indices = @transform_11, window_bounds = array<i64: 1, 64>}, {pipeline_mode = #tpu.pipeline_mode<synchronous>, transform_indices = @transform_12, window_bounds = array<i64: 64, 32>}, {pipeline_mode = #tpu.pipeline_mode<synchronous>, transform_indices = @transform_13, window_bounds = array<i64: 1, 32>}, {pipeline_mode = #tpu.pipeline_mode<synchronous>, transform_indices = @transform_14, window_bounds = array<i64: 1, 16>}, {pipeline_mode = #tpu.pipeline_mode<synchronous>, transform_indices = @transform_15, window_bounds = array<i64: 1, 16>}, {pipeline_mode = #tpu.pipeline_mode<synchronous>, transform_indices = @transform_16, window_bounds = array<i64: 16, 48>}, {pipeline_mode = #tpu.pipeline_mode<synchronous>, transform_indices = @transform_17, window_bounds = array<i64: 1, 48>}, {pipeline_mode = #tpu.pipeline_mode<synchronous>, transform_indices = @transform_18, window_bounds = array<i64: 16, 16>}, {pipeline_mode = #tpu.pipeline_mode<synchronous>, transform_indices = @transform_19, window_bounds = array<i64: 1, 16>}, {pipeline_mode = #tpu.pipeline_mode<synchronous>, transform_indices = @transform_20, window_bounds = array<i64: 1, 16>}, {pipeline_mode = #tpu.pipeline_mode<synchronous>, transform_indices = @transform_21, window_bounds = array<i64: 1, 16>}, {pipeline_mode = #tpu.pipeline_mode<synchronous>, transform_indices = @transform_22, window_bounds = array<i64: 16, 32>}, {pipeline_mode = #tpu.pipeline_mode<synchronous>, transform_indices = @transform_23, window_bounds = array<i64: 1, 32>}, {pipeline_mode = #tpu.pipeline_mode<synchronous>, transform_indices = @transform_24, window_bounds = array<i64: 32, 16>}, {pipeline_mode = #tpu.pipeline_mode<synchronous>, transform_indices = @transform_25, window_bounds = array<i64: 1, 16>}, {transform_indices = @transform_26, window_bounds = array<i64: 1, 8, 48>}]} {
    %c0 = arith.constant 0 : index
    %c0_0 = arith.constant 0 : index
    %c0_1 = arith.constant 0 : index
    %0 = vector.load %arg1[%c0, %c0_0, %c0_1] : memref<1x8x32xf32, #tpu.memory_space<vmem>>, vector<1x8x32xf32>
    %1 = vector.shape_cast %0 : vector<1x8x32xf32> to vector<8x32xf32>
    %c0_2 = arith.constant 0 : index
    %c0_3 = arith.constant 0 : index
    %2 = vector.load %arg3[%c0_2, %c0_3] : memref<1x32xf32, #tpu.memory_space<vmem>>, vector<1x32xf32>
    %c0_4 = arith.constant 0 : index
    %c0_5 = arith.constant 0 : index
    %3 = vector.load %arg4[%c0_4, %c0_5] : memref<1x32xf32, #tpu.memory_space<vmem>>, vector<1x32xf32>
    %cst = arith.constant dense<0.000000e+00> : vector<8xf32>
    %4 = vector.multi_reduction <add>, %1, %cst [1] : vector<8x32xf32> to vector<8xf32>
    %5 = vector.shape_cast %4 : vector<8xf32> to vector<8x1xf32>
    %cst_6 = arith.constant 3.200000e+01 : f32
    %6 = vector.broadcast %cst_6 : f32 to vector<8x1xf32>
    %7 = arith.divf %5, %6 : vector<8x1xf32>
    %8 = vector.broadcast %7 : vector<8x1xf32> to vector<8x32xf32>
    %9 = arith.subf %1, %8 : vector<8x32xf32>
    %10 = arith.mulf %9, %9 : vector<8x32xf32>
    %cst_7 = arith.constant dense<0.000000e+00> : vector<8xf32>
    %11 = vector.multi_reduction <add>, %10, %cst_7 [1] : vector<8x32xf32> to vector<8xf32>
    %12 = vector.shape_cast %11 : vector<8xf32> to vector<8x1xf32>
    %cst_8 = arith.constant 3.200000e+01 : f32
    %13 = vector.broadcast %cst_8 : f32 to vector<8x1xf32>
    %14 = arith.divf %12, %13 : vector<8x1xf32>
    %cst_9 = arith.constant 9.99999974E-6 : f32
    %15 = vector.broadcast %cst_9 : f32 to vector<8x1xf32>
    %16 = arith.addf %14, %15 : vector<8x1xf32>
    %17 = math.rsqrt %16 : vector<8x1xf32>
    %18 = vector.broadcast %17 : vector<8x1xf32> to vector<8x32xf32>
    %19 = arith.mulf %9, %18 : vector<8x32xf32>
    %20 = vector.broadcast %2 : vector<1x32xf32> to vector<8x32xf32>
    %21 = arith.mulf %19, %20 : vector<8x32xf32>
    %22 = vector.broadcast %3 : vector<1x32xf32> to vector<8x32xf32>
    %23 = arith.addf %21, %22 : vector<8x32xf32>
    %24 = arith.truncf %23 : vector<8x32xf32> to vector<8x32xbf16>
    %c0_10 = arith.constant 0 : index
    %c0_11 = arith.constant 0 : index
    %25 = vector.load %arg5[%c0_10, %c0_11] : memref<32x96xbf16, #tpu.memory_space<vmem>>, vector<32x96xbf16>
    %cst_12 = arith.constant dense<0.000000e+00> : vector<8x96xf32>
    %26 = tpu.matmul %24, %25, %cst_12 {dimension_numbers = #tpu.dot_dimension_numbers<[1], [0], [0], [1], [0, 0, 1, 1], [], []>} : vector<8x32xbf16>, vector<32x96xbf16>, vector<8x96xf32> -> vector<8x96xf32>
    %c0_13 = arith.constant 0 : index
    %c0_14 = arith.constant 0 : index
    %27 = vector.load %arg6[%c0_13, %c0_14] : memref<1x96xf32, #tpu.memory_space<vmem>>, vector<1x96xf32>
    %28 = vector.broadcast %27 : vector<1x96xf32> to vector<8x96xf32>
    %29 = arith.addf %26, %28 : vector<8x96xf32>
    %30 = vector.extract_strided_slice %29 {offsets = [0, 0], sizes = [8, 32], strides = [1, 1]} : vector<8x96xf32> to vector<8x32xf32>
    %31 = vector.shape_cast %30 : vector<8x32xf32> to vector<1x8x32xf32>
    %32 = tpu.transpose %31, [0, 2, 1] : vector<1x8x32xf32> -> vector<1x32x8xf32>
    %33 = vector.shape_cast %32 : vector<1x32x8xf32> to vector<4x8x8xf32>
    %34 = tpu.transpose %33, [0, 2, 1] : vector<4x8x8xf32> -> vector<4x8x8xf32>
    %35 = vector.extract_strided_slice %29 {offsets = [0, 32], sizes = [8, 32], strides = [1, 1]} : vector<8x96xf32> to vector<8x32xf32>
    %36 = vector.shape_cast %35 : vector<8x32xf32> to vector<1x8x32xf32>
    %37 = tpu.transpose %36, [0, 2, 1] : vector<1x8x32xf32> -> vector<1x32x8xf32>
    %38 = vector.shape_cast %37 : vector<1x32x8xf32> to vector<4x8x8xf32>
    %39 = vector.extract_strided_slice %29 {offsets = [0, 64], sizes = [8, 32], strides = [1, 1]} : vector<8x96xf32> to vector<8x32xf32>
    %40 = vector.shape_cast %39 : vector<8x32xf32> to vector<1x8x32xf32>
    %41 = tpu.transpose %40, [0, 2, 1] : vector<1x8x32xf32> -> vector<1x32x8xf32>
    %42 = vector.shape_cast %41 : vector<1x32x8xf32> to vector<4x8x8xf32>
    %43 = tpu.transpose %42, [0, 2, 1] : vector<4x8x8xf32> -> vector<4x8x8xf32>
    %44 = arith.truncf %34 : vector<4x8x8xf32> to vector<4x8x8xbf16>
    %45 = arith.truncf %38 : vector<4x8x8xf32> to vector<4x8x8xbf16>
    "tpu.trace_start"() <{level = 10 : i32, message = "bqd,bdk->bqk"}> : () -> ()
    %cst_15 = arith.constant dense<0.000000e+00> : vector<4x8x8xf32>
    %46 = tpu.matmul %44, %45, %cst_15 {dimension_numbers = #tpu.dot_dimension_numbers<[2], [1], [1], [2], [0, 0, 0, 1, 1, 2], [0], [0]>} : vector<4x8x8xbf16>, vector<4x8x8xbf16>, vector<4x8x8xf32> -> vector<4x8x8xf32>
    "tpu.trace_stop"() : () -> ()
    %cst_16 = arith.constant dense<0xFF800000> : vector<4x8xf32>
    %47 = vector.multi_reduction <maximumf>, %46, %cst_16 [2] : vector<4x8x8xf32> to vector<4x8xf32>
    %48 = vector.shape_cast %47 : vector<4x8xf32> to vector<4x8x1xf32>
    %49 = vector.broadcast %48 : vector<4x8x1xf32> to vector<4x8x8xf32>
    %50 = arith.subf %46, %49 : vector<4x8x8xf32>
    %51 = math.exp %50 : vector<4x8x8xf32>
    %cst_17 = arith.constant dense<0.000000e+00> : vector<4x8xf32>
    %52 = vector.multi_reduction <add>, %51, %cst_17 [2] : vector<4x8x8xf32> to vector<4x8xf32>
    %53 = vector.shape_cast %52 : vector<4x8xf32> to vector<4x8x1xf32>
    %54 = arith.truncf %51 : vector<4x8x8xf32> to vector<4x8x8xbf16>
    %55 = arith.truncf %43 : vector<4x8x8xf32> to vector<4x8x8xbf16>
    "tpu.trace_start"() <{level = 10 : i32, message = "bqk,bkd->bqd"}> : () -> ()
    %cst_18 = arith.constant dense<0.000000e+00> : vector<4x8x8xf32>
    %56 = tpu.matmul %54, %55, %cst_18 {dimension_numbers = #tpu.dot_dimension_numbers<[2], [1], [1], [2], [0, 0, 0, 1, 1, 2], [0], [0]>} : vector<4x8x8xbf16>, vector<4x8x8xbf16>, vector<4x8x8xf32> -> vector<4x8x8xf32>
    "tpu.trace_stop"() : () -> ()
    %57 = tpu.reciprocal %53 {approx = true} : vector<4x8x1xf32> -> vector<4x8x1xf32>
    %58 = vector.broadcast %57 : vector<4x8x1xf32> to vector<4x8x8xf32>
    %59 = arith.mulf %56, %58 : vector<4x8x8xf32>
    %60 = tpu.transpose %59, [0, 2, 1] : vector<4x8x8xf32> -> vector<4x8x8xf32>
    %61 = vector.shape_cast %60 : vector<4x8x8xf32> to vector<1x32x8xf32>
    %62 = tpu.transpose %61, [0, 2, 1] : vector<1x32x8xf32> -> vector<1x8x32xf32>
    %63 = vector.shape_cast %62 : vector<1x8x32xf32> to vector<8x32xf32>
    %64 = arith.truncf %63 : vector<8x32xf32> to vector<8x32xbf16>
    %c0_19 = arith.constant 0 : index
    %c0_20 = arith.constant 0 : index
    %65 = vector.load %arg7[%c0_19, %c0_20] : memref<32x32xbf16, #tpu.memory_space<vmem>>, vector<32x32xbf16>
    %cst_21 = arith.constant dense<0.000000e+00> : vector<8x32xf32>
    %66 = tpu.matmul %64, %65, %cst_21 {dimension_numbers = #tpu.dot_dimension_numbers<[1], [0], [0], [1], [0, 0, 1, 1], [], []>} : vector<8x32xbf16>, vector<32x32xbf16>, vector<8x32xf32> -> vector<8x32xf32>
    %c0_22 = arith.constant 0 : index
    %c0_23 = arith.constant 0 : index
    %67 = vector.load %arg8[%c0_22, %c0_23] : memref<1x32xf32, #tpu.memory_space<vmem>>, vector<1x32xf32>
    %68 = vector.broadcast %67 : vector<1x32xf32> to vector<8x32xf32>
    %69 = arith.addf %66, %68 : vector<8x32xf32>
    %70 = arith.addf %1, %69 : vector<8x32xf32>
    %c0_24 = arith.constant 0 : index
    %c0_25 = arith.constant 0 : index
    %71 = vector.load %arg9[%c0_24, %c0_25] : memref<1x32xf32, #tpu.memory_space<vmem>>, vector<1x32xf32>
    %c0_26 = arith.constant 0 : index
    %c0_27 = arith.constant 0 : index
    %72 = vector.load %arg10[%c0_26, %c0_27] : memref<1x32xf32, #tpu.memory_space<vmem>>, vector<1x32xf32>
    %cst_28 = arith.constant dense<0.000000e+00> : vector<8xf32>
    %73 = vector.multi_reduction <add>, %70, %cst_28 [1] : vector<8x32xf32> to vector<8xf32>
    %74 = vector.shape_cast %73 : vector<8xf32> to vector<8x1xf32>
    %cst_29 = arith.constant 3.200000e+01 : f32
    %75 = vector.broadcast %cst_29 : f32 to vector<8x1xf32>
    %76 = arith.divf %74, %75 : vector<8x1xf32>
    %77 = vector.broadcast %76 : vector<8x1xf32> to vector<8x32xf32>
    %78 = arith.subf %70, %77 : vector<8x32xf32>
    %79 = arith.mulf %78, %78 : vector<8x32xf32>
    %cst_30 = arith.constant dense<0.000000e+00> : vector<8xf32>
    %80 = vector.multi_reduction <add>, %79, %cst_30 [1] : vector<8x32xf32> to vector<8xf32>
    %81 = vector.shape_cast %80 : vector<8xf32> to vector<8x1xf32>
    %cst_31 = arith.constant 3.200000e+01 : f32
    %82 = vector.broadcast %cst_31 : f32 to vector<8x1xf32>
    %83 = arith.divf %81, %82 : vector<8x1xf32>
    %cst_32 = arith.constant 9.99999974E-6 : f32
    %84 = vector.broadcast %cst_32 : f32 to vector<8x1xf32>
    %85 = arith.addf %83, %84 : vector<8x1xf32>
    %86 = math.rsqrt %85 : vector<8x1xf32>
    %87 = vector.broadcast %86 : vector<8x1xf32> to vector<8x32xf32>
    %88 = arith.mulf %78, %87 : vector<8x32xf32>
    %89 = vector.broadcast %71 : vector<1x32xf32> to vector<8x32xf32>
    %90 = arith.mulf %88, %89 : vector<8x32xf32>
    %91 = vector.broadcast %72 : vector<1x32xf32> to vector<8x32xf32>
    %92 = arith.addf %90, %91 : vector<8x32xf32>
    %93 = arith.truncf %92 : vector<8x32xf32> to vector<8x32xbf16>
    %c0_33 = arith.constant 0 : index
    %c0_34 = arith.constant 0 : index
    %94 = vector.load %arg11[%c0_33, %c0_34] : memref<32x64xbf16, #tpu.memory_space<vmem>>, vector<32x64xbf16>
    %cst_35 = arith.constant dense<0.000000e+00> : vector<8x64xf32>
    %95 = tpu.matmul %93, %94, %cst_35 {dimension_numbers = #tpu.dot_dimension_numbers<[1], [0], [0], [1], [0, 0, 1, 1], [], []>} : vector<8x32xbf16>, vector<32x64xbf16>, vector<8x64xf32> -> vector<8x64xf32>
    %c0_36 = arith.constant 0 : index
    %c0_37 = arith.constant 0 : index
    %96 = vector.load %arg12[%c0_36, %c0_37] : memref<1x64xf32, #tpu.memory_space<vmem>>, vector<1x64xf32>
    %97 = vector.broadcast %96 : vector<1x64xf32> to vector<8x64xf32>
    %98 = arith.addf %95, %97 : vector<8x64xf32>
    %cst_38 = arith.constant 5.000000e-01 : f32
    %99 = vector.broadcast %cst_38 : f32 to vector<8x64xf32>
    %100 = arith.mulf %99, %98 : vector<8x64xf32>
    %cst_39 = arith.constant 4.471500e-02 : f32
    %101 = vector.broadcast %cst_39 : f32 to vector<8x64xf32>
    %102 = arith.mulf %101, %98 : vector<8x64xf32>
    %103 = arith.mulf %102, %98 : vector<8x64xf32>
    %104 = arith.mulf %103, %98 : vector<8x64xf32>
    %105 = arith.addf %98, %104 : vector<8x64xf32>
    %cst_40 = arith.constant 0.797884583 : f32
    %106 = vector.broadcast %cst_40 : f32 to vector<8x64xf32>
    %107 = arith.mulf %106, %105 : vector<8x64xf32>
    %108 = math.tanh %107 : vector<8x64xf32>
    %cst_41 = arith.constant 1.000000e+00 : f32
    %109 = vector.broadcast %cst_41 : f32 to vector<8x64xf32>
    %110 = arith.addf %109, %108 : vector<8x64xf32>
    %111 = arith.mulf %100, %110 : vector<8x64xf32>
    %112 = arith.truncf %111 : vector<8x64xf32> to vector<8x64xbf16>
    %c0_42 = arith.constant 0 : index
    %c0_43 = arith.constant 0 : index
    %113 = vector.load %arg13[%c0_42, %c0_43] : memref<64x32xbf16, #tpu.memory_space<vmem>>, vector<64x32xbf16>
    %cst_44 = arith.constant dense<0.000000e+00> : vector<8x32xf32>
    %114 = tpu.matmul %112, %113, %cst_44 {dimension_numbers = #tpu.dot_dimension_numbers<[1], [0], [0], [1], [0, 0, 1, 1], [], []>} : vector<8x64xbf16>, vector<64x32xbf16>, vector<8x32xf32> -> vector<8x32xf32>
    %c0_45 = arith.constant 0 : index
    %c0_46 = arith.constant 0 : index
    %115 = vector.load %arg14[%c0_45, %c0_46] : memref<1x32xf32, #tpu.memory_space<vmem>>, vector<1x32xf32>
    %116 = vector.broadcast %115 : vector<1x32xf32> to vector<8x32xf32>
    %117 = arith.addf %114, %116 : vector<8x32xf32>
    %118 = arith.addf %70, %117 : vector<8x32xf32>
    %119 = vector.shape_cast %118 : vector<8x32xf32> to vector<1x8x32xf32>
    %c0_47 = arith.constant 0 : index
    %c0_48 = arith.constant 0 : index
    %c0_49 = arith.constant 0 : index
    %120 = vector.load %arg2[%c0_47, %c0_48, %c0_49] : memref<1x8x16xf32, #tpu.memory_space<vmem>>, vector<1x8x16xf32>
    %121 = vector.shape_cast %120 : vector<1x8x16xf32> to vector<8x16xf32>
    %c0_50 = arith.constant 0 : index
    %c0_51 = arith.constant 0 : index
    %122 = vector.load %arg15[%c0_50, %c0_51] : memref<1x16xf32, #tpu.memory_space<vmem>>, vector<1x16xf32>
    %c0_52 = arith.constant 0 : index
    %c0_53 = arith.constant 0 : index
    %123 = vector.load %arg16[%c0_52, %c0_53] : memref<1x16xf32, #tpu.memory_space<vmem>>, vector<1x16xf32>
    %cst_54 = arith.constant dense<0.000000e+00> : vector<8xf32>
    %124 = vector.multi_reduction <add>, %121, %cst_54 [1] : vector<8x16xf32> to vector<8xf32>
    %125 = vector.shape_cast %124 : vector<8xf32> to vector<8x1xf32>
    %cst_55 = arith.constant 1.600000e+01 : f32
    %126 = vector.broadcast %cst_55 : f32 to vector<8x1xf32>
    %127 = arith.divf %125, %126 : vector<8x1xf32>
    %128 = vector.broadcast %127 : vector<8x1xf32> to vector<8x16xf32>
    %129 = arith.subf %121, %128 : vector<8x16xf32>
    %130 = arith.mulf %129, %129 : vector<8x16xf32>
    %cst_56 = arith.constant dense<0.000000e+00> : vector<8xf32>
    %131 = vector.multi_reduction <add>, %130, %cst_56 [1] : vector<8x16xf32> to vector<8xf32>
    %132 = vector.shape_cast %131 : vector<8xf32> to vector<8x1xf32>
    %cst_57 = arith.constant 1.600000e+01 : f32
    %133 = vector.broadcast %cst_57 : f32 to vector<8x1xf32>
    %134 = arith.divf %132, %133 : vector<8x1xf32>
    %cst_58 = arith.constant 9.99999974E-6 : f32
    %135 = vector.broadcast %cst_58 : f32 to vector<8x1xf32>
    %136 = arith.addf %134, %135 : vector<8x1xf32>
    %137 = math.rsqrt %136 : vector<8x1xf32>
    %138 = vector.broadcast %137 : vector<8x1xf32> to vector<8x16xf32>
    %139 = arith.mulf %129, %138 : vector<8x16xf32>
    %140 = vector.broadcast %122 : vector<1x16xf32> to vector<8x16xf32>
    %141 = arith.mulf %139, %140 : vector<8x16xf32>
    %142 = vector.broadcast %123 : vector<1x16xf32> to vector<8x16xf32>
    %143 = arith.addf %141, %142 : vector<8x16xf32>
    %144 = arith.truncf %143 : vector<8x16xf32> to vector<8x16xbf16>
    %c0_59 = arith.constant 0 : index
    %c0_60 = arith.constant 0 : index
    %145 = vector.load %arg17[%c0_59, %c0_60] : memref<16x48xbf16, #tpu.memory_space<vmem>>, vector<16x48xbf16>
    %cst_61 = arith.constant dense<0.000000e+00> : vector<8x48xf32>
    %146 = tpu.matmul %144, %145, %cst_61 {dimension_numbers = #tpu.dot_dimension_numbers<[1], [0], [0], [1], [0, 0, 1, 1], [], []>} : vector<8x16xbf16>, vector<16x48xbf16>, vector<8x48xf32> -> vector<8x48xf32>
    %c0_62 = arith.constant 0 : index
    %c0_63 = arith.constant 0 : index
    %147 = vector.load %arg18[%c0_62, %c0_63] : memref<1x48xf32, #tpu.memory_space<vmem>>, vector<1x48xf32>
    %148 = vector.broadcast %147 : vector<1x48xf32> to vector<8x48xf32>
    %149 = arith.addf %146, %148 : vector<8x48xf32>
    %150 = vector.extract_strided_slice %149 {offsets = [0, 0], sizes = [8, 16], strides = [1, 1]} : vector<8x48xf32> to vector<8x16xf32>
    %151 = vector.shape_cast %150 : vector<8x16xf32> to vector<1x8x16xf32>
    %152 = tpu.transpose %151, [0, 2, 1] : vector<1x8x16xf32> -> vector<1x16x8xf32>
    %153 = vector.shape_cast %152 : vector<1x16x8xf32> to vector<4x4x8xf32>
    %154 = tpu.transpose %153, [0, 2, 1] : vector<4x4x8xf32> -> vector<4x8x4xf32>
    %155 = vector.extract_strided_slice %149 {offsets = [0, 16], sizes = [8, 16], strides = [1, 1]} : vector<8x48xf32> to vector<8x16xf32>
    %156 = vector.shape_cast %155 : vector<8x16xf32> to vector<1x8x16xf32>
    %157 = tpu.transpose %156, [0, 2, 1] : vector<1x8x16xf32> -> vector<1x16x8xf32>
    %158 = vector.shape_cast %157 : vector<1x16x8xf32> to vector<4x4x8xf32>
    %159 = vector.extract_strided_slice %149 {offsets = [0, 32], sizes = [8, 16], strides = [1, 1]} : vector<8x48xf32> to vector<8x16xf32>
    %160 = vector.shape_cast %159 : vector<8x16xf32> to vector<1x8x16xf32>
    %161 = tpu.transpose %160, [0, 2, 1] : vector<1x8x16xf32> -> vector<1x16x8xf32>
    %162 = vector.shape_cast %161 : vector<1x16x8xf32> to vector<4x4x8xf32>
    %163 = tpu.transpose %162, [0, 2, 1] : vector<4x4x8xf32> -> vector<4x8x4xf32>
    %164 = arith.truncf %154 : vector<4x8x4xf32> to vector<4x8x4xbf16>
    %165 = arith.truncf %158 : vector<4x4x8xf32> to vector<4x4x8xbf16>
    "tpu.trace_start"() <{level = 10 : i32, message = "bqd,bdk->bqk"}> : () -> ()
    %cst_64 = arith.constant dense<0.000000e+00> : vector<4x8x8xf32>
    %166 = tpu.matmul %164, %165, %cst_64 {dimension_numbers = #tpu.dot_dimension_numbers<[2], [1], [1], [2], [0, 0, 0, 1, 1, 2], [0], [0]>} : vector<4x8x4xbf16>, vector<4x4x8xbf16>, vector<4x8x8xf32> -> vector<4x8x8xf32>
    "tpu.trace_stop"() : () -> ()
    %cst_65 = arith.constant dense<0xFF800000> : vector<4x8xf32>
    %167 = vector.multi_reduction <maximumf>, %166, %cst_65 [2] : vector<4x8x8xf32> to vector<4x8xf32>
    %168 = vector.shape_cast %167 : vector<4x8xf32> to vector<4x8x1xf32>
    %169 = vector.broadcast %168 : vector<4x8x1xf32> to vector<4x8x8xf32>
    %170 = arith.subf %166, %169 : vector<4x8x8xf32>
    %171 = math.exp %170 : vector<4x8x8xf32>
    %cst_66 = arith.constant dense<0.000000e+00> : vector<4x8xf32>
    %172 = vector.multi_reduction <add>, %171, %cst_66 [2] : vector<4x8x8xf32> to vector<4x8xf32>
    %173 = vector.shape_cast %172 : vector<4x8xf32> to vector<4x8x1xf32>
    %174 = arith.truncf %171 : vector<4x8x8xf32> to vector<4x8x8xbf16>
    %175 = arith.truncf %163 : vector<4x8x4xf32> to vector<4x8x4xbf16>
    "tpu.trace_start"() <{level = 10 : i32, message = "bqk,bkd->bqd"}> : () -> ()
    %cst_67 = arith.constant dense<0.000000e+00> : vector<4x8x4xf32>
    %176 = tpu.matmul %174, %175, %cst_67 {dimension_numbers = #tpu.dot_dimension_numbers<[2], [1], [1], [2], [0, 0, 0, 1, 1, 2], [0], [0]>} : vector<4x8x8xbf16>, vector<4x8x4xbf16>, vector<4x8x4xf32> -> vector<4x8x4xf32>
    "tpu.trace_stop"() : () -> ()
    %177 = tpu.reciprocal %173 {approx = true} : vector<4x8x1xf32> -> vector<4x8x1xf32>
    %178 = vector.broadcast %177 : vector<4x8x1xf32> to vector<4x8x4xf32>
    %179 = arith.mulf %176, %178 : vector<4x8x4xf32>
    %180 = tpu.transpose %179, [0, 2, 1] : vector<4x8x4xf32> -> vector<4x4x8xf32>
    %181 = vector.shape_cast %180 : vector<4x4x8xf32> to vector<1x16x8xf32>
    %182 = tpu.transpose %181, [0, 2, 1] : vector<1x16x8xf32> -> vector<1x8x16xf32>
    %183 = vector.shape_cast %182 : vector<1x8x16xf32> to vector<8x16xf32>
    %184 = arith.truncf %183 : vector<8x16xf32> to vector<8x16xbf16>
    %c0_68 = arith.constant 0 : index
    %c0_69 = arith.constant 0 : index
    %185 = vector.load %arg19[%c0_68, %c0_69] : memref<16x16xbf16, #tpu.memory_space<vmem>>, vector<16x16xbf16>
    %cst_70 = arith.constant dense<0.000000e+00> : vector<8x16xf32>
    %186 = tpu.matmul %184, %185, %cst_70 {dimension_numbers = #tpu.dot_dimension_numbers<[1], [0], [0], [1], [0, 0, 1, 1], [], []>} : vector<8x16xbf16>, vector<16x16xbf16>, vector<8x16xf32> -> vector<8x16xf32>
    %c0_71 = arith.constant 0 : index
    %c0_72 = arith.constant 0 : index
    %187 = vector.load %arg20[%c0_71, %c0_72] : memref<1x16xf32, #tpu.memory_space<vmem>>, vector<1x16xf32>
    %188 = vector.broadcast %187 : vector<1x16xf32> to vector<8x16xf32>
    %189 = arith.addf %186, %188 : vector<8x16xf32>
    %190 = arith.addf %121, %189 : vector<8x16xf32>
    %c0_73 = arith.constant 0 : index
    %c0_74 = arith.constant 0 : index
    %191 = vector.load %arg21[%c0_73, %c0_74] : memref<1x16xf32, #tpu.memory_space<vmem>>, vector<1x16xf32>
    %c0_75 = arith.constant 0 : index
    %c0_76 = arith.constant 0 : index
    %192 = vector.load %arg22[%c0_75, %c0_76] : memref<1x16xf32, #tpu.memory_space<vmem>>, vector<1x16xf32>
    %cst_77 = arith.constant dense<0.000000e+00> : vector<8xf32>
    %193 = vector.multi_reduction <add>, %190, %cst_77 [1] : vector<8x16xf32> to vector<8xf32>
    %194 = vector.shape_cast %193 : vector<8xf32> to vector<8x1xf32>
    %cst_78 = arith.constant 1.600000e+01 : f32
    %195 = vector.broadcast %cst_78 : f32 to vector<8x1xf32>
    %196 = arith.divf %194, %195 : vector<8x1xf32>
    %197 = vector.broadcast %196 : vector<8x1xf32> to vector<8x16xf32>
    %198 = arith.subf %190, %197 : vector<8x16xf32>
    %199 = arith.mulf %198, %198 : vector<8x16xf32>
    %cst_79 = arith.constant dense<0.000000e+00> : vector<8xf32>
    %200 = vector.multi_reduction <add>, %199, %cst_79 [1] : vector<8x16xf32> to vector<8xf32>
    %201 = vector.shape_cast %200 : vector<8xf32> to vector<8x1xf32>
    %cst_80 = arith.constant 1.600000e+01 : f32
    %202 = vector.broadcast %cst_80 : f32 to vector<8x1xf32>
    %203 = arith.divf %201, %202 : vector<8x1xf32>
    %cst_81 = arith.constant 9.99999974E-6 : f32
    %204 = vector.broadcast %cst_81 : f32 to vector<8x1xf32>
    %205 = arith.addf %203, %204 : vector<8x1xf32>
    %206 = math.rsqrt %205 : vector<8x1xf32>
    %207 = vector.broadcast %206 : vector<8x1xf32> to vector<8x16xf32>
    %208 = arith.mulf %198, %207 : vector<8x16xf32>
    %209 = vector.broadcast %191 : vector<1x16xf32> to vector<8x16xf32>
    %210 = arith.mulf %208, %209 : vector<8x16xf32>
    %211 = vector.broadcast %192 : vector<1x16xf32> to vector<8x16xf32>
    %212 = arith.addf %210, %211 : vector<8x16xf32>
    %213 = arith.truncf %212 : vector<8x16xf32> to vector<8x16xbf16>
    %c0_82 = arith.constant 0 : index
    %c0_83 = arith.constant 0 : index
    %214 = vector.load %arg23[%c0_82, %c0_83] : memref<16x32xbf16, #tpu.memory_space<vmem>>, vector<16x32xbf16>
    %cst_84 = arith.constant dense<0.000000e+00> : vector<8x32xf32>
    %215 = tpu.matmul %213, %214, %cst_84 {dimension_numbers = #tpu.dot_dimension_numbers<[1], [0], [0], [1], [0, 0, 1, 1], [], []>} : vector<8x16xbf16>, vector<16x32xbf16>, vector<8x32xf32> -> vector<8x32xf32>
    %c0_85 = arith.constant 0 : index
    %c0_86 = arith.constant 0 : index
    %216 = vector.load %arg24[%c0_85, %c0_86] : memref<1x32xf32, #tpu.memory_space<vmem>>, vector<1x32xf32>
    %217 = vector.broadcast %216 : vector<1x32xf32> to vector<8x32xf32>
    %218 = arith.addf %215, %217 : vector<8x32xf32>
    %cst_87 = arith.constant 5.000000e-01 : f32
    %219 = vector.broadcast %cst_87 : f32 to vector<8x32xf32>
    %220 = arith.mulf %219, %218 : vector<8x32xf32>
    %cst_88 = arith.constant 4.471500e-02 : f32
    %221 = vector.broadcast %cst_88 : f32 to vector<8x32xf32>
    %222 = arith.mulf %221, %218 : vector<8x32xf32>
    %223 = arith.mulf %222, %218 : vector<8x32xf32>
    %224 = arith.mulf %223, %218 : vector<8x32xf32>
    %225 = arith.addf %218, %224 : vector<8x32xf32>
    %cst_89 = arith.constant 0.797884583 : f32
    %226 = vector.broadcast %cst_89 : f32 to vector<8x32xf32>
    %227 = arith.mulf %226, %225 : vector<8x32xf32>
    %228 = math.tanh %227 : vector<8x32xf32>
    %cst_90 = arith.constant 1.000000e+00 : f32
    %229 = vector.broadcast %cst_90 : f32 to vector<8x32xf32>
    %230 = arith.addf %229, %228 : vector<8x32xf32>
    %231 = arith.mulf %220, %230 : vector<8x32xf32>
    %232 = arith.truncf %231 : vector<8x32xf32> to vector<8x32xbf16>
    %c0_91 = arith.constant 0 : index
    %c0_92 = arith.constant 0 : index
    %233 = vector.load %arg25[%c0_91, %c0_92] : memref<32x16xbf16, #tpu.memory_space<vmem>>, vector<32x16xbf16>
    %cst_93 = arith.constant dense<0.000000e+00> : vector<8x16xf32>
    %234 = tpu.matmul %232, %233, %cst_93 {dimension_numbers = #tpu.dot_dimension_numbers<[1], [0], [0], [1], [0, 0, 1, 1], [], []>} : vector<8x32xbf16>, vector<32x16xbf16>, vector<8x16xf32> -> vector<8x16xf32>
    %c0_94 = arith.constant 0 : index
    %c0_95 = arith.constant 0 : index
    %235 = vector.load %arg26[%c0_94, %c0_95] : memref<1x16xf32, #tpu.memory_space<vmem>>, vector<1x16xf32>
    %236 = vector.broadcast %235 : vector<1x16xf32> to vector<8x16xf32>
    %237 = arith.addf %234, %236 : vector<8x16xf32>
    %238 = arith.addf %190, %237 : vector<8x16xf32>
    %239 = vector.shape_cast %238 : vector<8x16xf32> to vector<1x8x16xf32>
    %240 = tpu.concatenate %119, %239 in 2 : vector<1x8x32xf32>, vector<1x8x16xf32> -> vector<1x8x48xf32>
    %c0_96 = arith.constant 0 : index
    %c0_97 = arith.constant 0 : index
    %c0_98 = arith.constant 0 : index
    %241 = vector.load %arg27[%c0_96, %c0_97, %c0_98] : memref<1x8x48xf32, #tpu.memory_space<vmem>>, vector<1x8x48xf32>
    tpu.vector_store %arg27[%c0_96, %c0_97, %c0_98], %240 {strides = array<i32>} : memref<1x8x48xf32, #tpu.memory_space<vmem>>, vector<1x8x48xf32>,
    return
  }
  func.func @transform_0(%arg0: i32) -> (i32, i32, i32) {
    %c0_i32 = arith.constant 0 : i32
    %c0_i32_0 = arith.constant 0 : i32
    %c0_i32_1 = arith.constant 0 : i32
    return %arg0, %c0_i32, %c0_i32_0 : i32, i32, i32
  }
  func.func @transform_1(%arg0: i32) -> (i32, i32, i32) {
    %c0_i32 = arith.constant 0 : i32
    %c0_i32_0 = arith.constant 0 : i32
    %c0_i32_1 = arith.constant 0 : i32
    return %arg0, %c0_i32, %c0_i32_0 : i32, i32, i32
  }
  func.func @transform_2(%arg0: i32) -> (i32, i32) {
    %c0_i32 = arith.constant 0 : i32
    %c0_i32_0 = arith.constant 0 : i32
    %c0_i32_1 = arith.constant 0 : i32
    return %c0_i32, %c0_i32_0 : i32, i32
  }
  func.func @transform_3(%arg0: i32) -> (i32, i32) {
    %c0_i32 = arith.constant 0 : i32
    %c0_i32_0 = arith.constant 0 : i32
    %c0_i32_1 = arith.constant 0 : i32
    return %c0_i32, %c0_i32_0 : i32, i32
  }
  func.func @transform_4(%arg0: i32) -> (i32, i32) {
    %c0_i32 = arith.constant 0 : i32
    %c0_i32_0 = arith.constant 0 : i32
    %c0_i32_1 = arith.constant 0 : i32
    return %c0_i32, %c0_i32_0 : i32, i32
  }
  func.func @transform_5(%arg0: i32) -> (i32, i32) {
    %c0_i32 = arith.constant 0 : i32
    %c0_i32_0 = arith.constant 0 : i32
    %c0_i32_1 = arith.constant 0 : i32
    return %c0_i32, %c0_i32_0 : i32, i32
  }
  func.func @transform_6(%arg0: i32) -> (i32, i32) {
    %c0_i32 = arith.constant 0 : i32
    %c0_i32_0 = arith.constant 0 : i32
    %c0_i32_1 = arith.constant 0 : i32
    return %c0_i32, %c0_i32_0 : i32, i32
  }
  func.func @transform_7(%arg0: i32) -> (i32, i32) {
    %c0_i32 = arith.constant 0 : i32
    %c0_i32_0 = arith.constant 0 : i32
    %c0_i32_1 = arith.constant 0 : i32
    return %c0_i32, %c0_i32_0 : i32, i32
  }
  func.func @transform_8(%arg0: i32) -> (i32, i32) {
    %c0_i32 = arith.constant 0 : i32
    %c0_i32_0 = arith.constant 0 : i32
    %c0_i32_1 = arith.constant 0 : i32
    return %c0_i32, %c0_i32_0 : i32, i32
  }
  func.func @transform_9(%arg0: i32) -> (i32, i32) {
    %c0_i32 = arith.constant 0 : i32
    %c0_i32_0 = arith.constant 0 : i32
    %c0_i32_1 = arith.constant 0 : i32
    return %c0_i32, %c0_i32_0 : i32, i32
  }
  func.func @transform_10(%arg0: i32) -> (i32, i32) {
    %c0_i32 = arith.constant 0 : i32
    %c0_i32_0 = arith.constant 0 : i32
    %c0_i32_1 = arith.constant 0 : i32
    return %c0_i32, %c0_i32_0 : i32, i32
  }
  func.func @transform_11(%arg0: i32) -> (i32, i32) {
    %c0_i32 = arith.constant 0 : i32
    %c0_i32_0 = arith.constant 0 : i32
    %c0_i32_1 = arith.constant 0 : i32
    return %c0_i32, %c0_i32_0 : i32, i32
  }
  func.func @transform_12(%arg0: i32) -> (i32, i32) {
    %c0_i32 = arith.constant 0 : i32
    %c0_i32_0 = arith.constant 0 : i32
    %c0_i32_1 = arith.constant 0 : i32
    return %c0_i32, %c0_i32_0 : i32, i32
  }
  func.func @transform_13(%arg0: i32) -> (i32, i32) {
    %c0_i32 = arith.constant 0 : i32
    %c0_i32_0 = arith.constant 0 : i32
    %c0_i32_1 = arith.constant 0 : i32
    return %c0_i32, %c0_i32_0 : i32, i32
  }
  func.func @transform_14(%arg0: i32) -> (i32, i32) {
    %c0_i32 = arith.constant 0 : i32
    %c0_i32_0 = arith.constant 0 : i32
    %c0_i32_1 = arith.constant 0 : i32
    return %c0_i32, %c0_i32_0 : i32, i32
  }
  func.func @transform_15(%arg0: i32) -> (i32, i32) {
    %c0_i32 = arith.constant 0 : i32
    %c0_i32_0 = arith.constant 0 : i32
    %c0_i32_1 = arith.constant 0 : i32
    return %c0_i32, %c0_i32_0 : i32, i32
  }
  func.func @transform_16(%arg0: i32) -> (i32, i32) {
    %c0_i32 = arith.constant 0 : i32
    %c0_i32_0 = arith.constant 0 : i32
    %c0_i32_1 = arith.constant 0 : i32
    return %c0_i32, %c0_i32_0 : i32, i32
  }
  func.func @transform_17(%arg0: i32) -> (i32, i32) {
    %c0_i32 = arith.constant 0 : i32
    %c0_i32_0 = arith.constant 0 : i32
    %c0_i32_1 = arith.constant 0 : i32
    return %c0_i32, %c0_i32_0 : i32, i32
  }
  func.func @transform_18(%arg0: i32) -> (i32, i32) {
    %c0_i32 = arith.constant 0 : i32
    %c0_i32_0 = arith.constant 0 : i32
    %c0_i32_1 = arith.constant 0 : i32
    return %c0_i32, %c0_i32_0 : i32, i32
  }
  func.func @transform_19(%arg0: i32) -> (i32, i32) {
    %c0_i32 = arith.constant 0 : i32
    %c0_i32_0 = arith.constant 0 : i32
    %c0_i32_1 = arith.constant 0 : i32
    return %c0_i32, %c0_i32_0 : i32, i32
  }
  func.func @transform_20(%arg0: i32) -> (i32, i32) {
    %c0_i32 = arith.constant 0 : i32
    %c0_i32_0 = arith.constant 0 : i32
    %c0_i32_1 = arith.constant 0 : i32
    return %c0_i32, %c0_i32_0 : i32, i32
  }
  func.func @transform_21(%arg0: i32) -> (i32, i32) {
    %c0_i32 = arith.constant 0 : i32
    %c0_i32_0 = arith.constant 0 : i32
    %c0_i32_1 = arith.constant 0 : i32
    return %c0_i32, %c0_i32_0 : i32, i32
  }
  func.func @transform_22(%arg0: i32) -> (i32, i32) {
    %c0_i32 = arith.constant 0 : i32
    %c0_i32_0 = arith.constant 0 : i32
    %c0_i32_1 = arith.constant 0 : i32
    return %c0_i32, %c0_i32_0 : i32, i32
  }
  func.func @transform_23(%arg0: i32) -> (i32, i32) {
    %c0_i32 = arith.constant 0 : i32
    %c0_i32_0 = arith.constant 0 : i32
    %c0_i32_1 = arith.constant 0 : i32
    return %c0_i32, %c0_i32_0 : i32, i32
  }
  func.func @transform_24(%arg0: i32) -> (i32, i32) {
    %c0_i32 = arith.constant 0 : i32
    %c0_i32_0 = arith.constant 0 : i32
    %c0_i32_1 = arith.constant 0 : i32
    return %c0_i32, %c0_i32_0 : i32, i32
  }
  func.func @transform_25(%arg0: i32) -> (i32, i32) {
    %c0_i32 = arith.constant 0 : i32
    %c0_i32_0 = arith.constant 0 : i32
    %c0_i32_1 = arith.constant 0 : i32
    return %c0_i32, %c0_i32_0 : i32, i32
  }
  func.func @transform_26(%arg0: i32) -> (i32, i32, i32) {
    %c0_i32 = arith.constant 0 : i32
    %c0_i32_0 = arith.constant 0 : i32
    %c0_i32_1 = arith.constant 0 : i32
    return %arg0, %c0_i32, %c0_i32_0 : i32, i32, i32
  }
}

</mosaic_0001>

<bundles_post_ra>
// kernel: tpu_custom_call.1
= control target key start
LH: loop header
LB: loop body
LE: loop exit
PB: predicated region body
PF: predicated region fallthrough
CT: control target
= control target key end

     0   :  { %s5543_s0 = inlined_call_operand.vmem [shape: f32[2,8,32], index: 0, kind: input, shape index: {}]   ;;  %s5544_s1 = inlined_call_operand.vmem [shape: f32[2,8,16], index: 1, kind: input, shape index: {}]   ;;  %s5545_s2 = inlined_call_operand.hbm [shape: f32[1,32], index: 2, kind: input, shape index: {}]   ;;  %s5546_s3 = inlined_call_operand.hbm [shape: f32[1,32], index: 3, kind: input, shape index: {}]   ;;  %s5547_s4 = inlined_call_operand.vmem [shape: bf16[32,96], index: 4, kind: input, shape index: {}]   ;;  %s5548_s5 = inlined_call_operand.hbm [shape: f32[1,96], index: 5, kind: input, shape index: {}]   ;;  %s5549_s6 = inlined_call_operand.vmem [shape: bf16[32,32], index: 6, kind: input, shape index: {}]   ;;  %s5550_s7 = inlined_call_operand.hbm [shape: f32[1,32], index: 7, kind: input, shape index: {}]   ;;  %s5551_s8 = inlined_call_operand.hbm [shape: f32[1,32], index: 8, kind: input, shape index: {}]   ;;  %s5552_s9 = inlined_call_operand.hbm [shape: f32[1,32], index: 9, kind: input, shape index: {}]   ;;  %s5553_s10 = inlined_call_operand.hbm [shape: bf16[32,64], index: 10, kind: input, shape index: {}]   ;;  %s5554_s11 = inlined_call_operand.hbm [shape: f32[1,64], index: 11, kind: input, shape index: {}]   ;;  %s5555_s12 = inlined_call_operand.vmem [shape: bf16[64,32], index: 12, kind: input, shape index: {}]   ;;  %s5556_s13 = inlined_call_operand.hbm [shape: f32[1,32], index: 13, kind: input, shape index: {}]   ;;  %s5557_s14 = inlined_call_operand.hbm [shape: f32[1,16], index: 14, kind: input, shape index: {}]   ;;  %s5558_s15 = inlined_call_operand.hbm [shape: f32[1,16], index: 15, kind: input, shape index: {}]   ;;  %s5559_s16 = inlined_call_operand.vmem [shape: bf16[16,48], index: 16, kind: input, shape index: {}]   ;;  %s5560_s17 = inlined_call_operand.hbm [shape: f32[1,48], index: 17, kind: input, shape index: {}]   ;;  %s5561_s18 = inlined_call_operand.vmem [shape: bf16[16,16], index: 18, kind: input, shape index: {}]   ;;  %s5562_s19 = inlined_call_operand.hbm [shape: f32[1,16], index: 19, kind: input, shape index: {}]   ;;  %s5563_s20 = inlined_call_operand.hbm [shape: f32[1,16], index: 20, kind: input, shape index: {}]   ;;  %s5564_s21 = inlined_call_operand.hbm [shape: f32[1,16], index: 21, kind: input, shape index: {}]   ;;  %s5565_s22 = inlined_call_operand.vmem [shape: bf16[16,32], index: 22, kind: input, shape index: {}]   ;;  %s5566_s23 = inlined_call_operand.vmem [shape: f32[1,32], index: 23, kind: input, shape index: {}]   ;;  %s5567_s24 = inlined_call_operand.vmem [shape: bf16[32,16], index: 24, kind: input, shape index: {}]   ;;  %s5568_s25 = inlined_call_operand.vmem [shape: f32[1,16], index: 25, kind: input, shape index: {}]   ;;  %s5569_s26 = inlined_call_operand.hbm [shape: f32[2,8,48], index: 26, kind: output, shape index: {}]  }
   0x1   :  { %5585 = sst [smem:[#allocation43_spill]] %s5543_s0 }
   0x2   :  { %5586 = sst [smem:[#allocation44_spill]] %s5544_s1 }
   0x3   :  { %5587 = sst [smem:[#allocation45_spill]] %s5545_s2 }
   0x4   :  { %5588 = sst [smem:[#allocation46_spill]] %s5546_s3 }
   0x5   :  { %5589 = sst [smem:[#allocation47_spill]] %s5547_s4 }
   0x6   :  { %5590 = sst [smem:[#allocation48_spill]] %s5548_s5 }
   0x7   :  { %5591 = sst [smem:[#allocation49_spill]] %s5549_s6 }
   0x8   :  { %5592 = sst [smem:[#allocation50_spill]] %s5550_s7 }
   0x9   :  { %5593 = sst [smem:[#allocation51_spill]] %s5551_s8 }
   0xa   :  { %5594 = sst [smem:[#allocation52_spill]] %s5552_s9 }
   0xb   :  { %5595 = sst [smem:[#allocation53_spill]] %s5553_s10 }
   0xc   :  { %5596 = sst [smem:[#allocation54_spill]] %s5554_s11 }
   0xd   :  { %5597 = sst [smem:[#allocation55_spill]] %s5569_s26 }
   0xe   :  { %31 = vsyncpa [#allocation3], 0 }
   0xf   :  { %32 = vsyncpa [#allocation6], 0 }
  0x10   :  { %33 = vsyncpa [#allocation9], 0 }
  0x11   :  { %34 = vsyncpa [#allocation12], 0 }
  0x12   :  { %35 = vsyncpa [#allocation15], 0 }
  0x13   :  { %36 = vsyncpa [#allocation18], 0 }
  0x14   :  { %37 = vsyncpa [#allocation21], 0 }
  0x15   :  { %38 = vsyncpa [#allocation24], 0 }
  0x16   :  { %39 = vsyncpa [#allocation4], 0 }
  0x17   :  { %41 = vsyncpa [#allocation4 + $0x1], 0  ;;  %s5066_s27 = smov 0   ;;  %s5068_s3 = smov 0  }
  0x18   :  { %s5070_s7 = smov 0   ;;  %s5072_s28 = smov 0  }
  0x19 LB: > { %5598 = sst [smem:[#allocation36_spill]] %s4893_s27  ;;  %s5087_s8 = sadd.s32 4294967295, %s4905_s28   ;;  %s4905_s28 = sphi %s5072_s28, %s5646_s28   ;;  %s4901_s7 = sphi %s5070_s7, %s5648_s7   ;;  %s4897_s3 = sphi %s5068_s3, %s5650_s3   ;;  %s4893_s27 = sphi %s5066_s27, %s5649_s27  }
  0x1a   : > { %5599 = sst [smem:[#allocation37_spill]] %s4901_s7  ;;  %s3829_s4 = sadd.s32 4294967294, %s4905_s28  }
  0x1b   : > { %5600 = sst [smem:[#allocation38_spill]] %s4905_s28  ;;  %s5091_s29 = sadd.s32 1, %s4905_s28  }
  0x1c   : > { %5601 = sst [smem:[#allocation39_spill]] %s5091_s29  ;;  %s610_s0 = sadd.s32 1, %s4901_s7 }
  0x1d   : > { %s607_s9 = ssub.s32 %s4905_s28, %s5091_s29  ;;  %p620_p0 = scmp.ne.s32.totalorder %s4901_s7, %s4897_s3 }
  0x1e   : > { %p608_p1 = scmp.eq.s32.totalorder %s607_s9, 0  ;;  %p621_p2 = scmp.eq.s32.totalorder %s5087_s8, 1 }
  0x1f   : > { %p626_p3 = scmp.ne.s32.totalorder %s4897_s3, %s4893_s27  ;;  %p627_p4 = scmp.eq.s32.totalorder %s3829_s4, 1 }
  0x20   : > { %s5102_s30 = scalar_select %p608_p1, %s4901_s7, %s610_s0  }
  0x21   : > { %p5104_p5 = por %p621_p2, %p620_p0  ;;  %p5108_p6 = por %p627_p4, %p626_p3 }
  0x22   : > { %5602 = sst [smem:[#allocation40_spill]] %s5102_s30  ;;  %p3830_p7 = scmp.ge.s32.totalorder %s4905_s28, 1 }
  0x23   : > { %s5603_s2 = scalar_select %p5104_p5, 1, 0 }
  0x24   : > { %s5605_s5 = scalar_select %p5108_p6, 1, 0 }
  0x25   : > { %5604 = sst [smem:[#allocation41_spill]] %s5603_s2  ;;  %p634_p8 = scmp.lt.s32.totalorder %s4905_s28, 3 }
  0x26   : > { %5606 = sst [smem:[#allocation42_spill]] %s5605_s5  ;;  %p5578_p9 = scmp.eq.s32.totalorder %s5087_s8, 0 }
  0x27   : > { %p5115_p10 = pnand %p3830_p7, %p634_p8  ;;  %s4907_s6 = smov [#allocation5]  }
  0x28   : > { %s658_s1 = sshll.u32 %s4907_s6, 4  ;;  %s4908_s4 = smov [#allocation8]   ;;  %s659_s1 = int_to_ptr.vmem [resolvable:$true] %s658_s1 }
  0x29   : > { %s5607_s10 = scalar_select %p5115_p10, 1, 0 }
  0x2a   : > { %p4200_p11 = pneg %p5115_p10  ;;  %s686_s0 = sshll.u32 %s4908_s4, 4  ;;  %s687_s0 = int_to_ptr.vmem [resolvable:$true] %s686_s0 }
  0x2b   : > { %s4909_s30 = smov [#allocation11]   ;;  %s4434_s6 = scalar_lea.vmem %s659_s1, 16 }
  0x2c   : > { %p5123_p12 = pnand %p5578_p9, %p4200_p11  ;;  %s708_s7 = sshll.u32 %s4909_s30, 4  ;;  %s5127_s7 = int_to_ptr.vmem [resolvable:$true] %s708_s7 }
  0x2d   : > { %p4435_p0 = scmp.ne.s32.totalorder %s659_s1, %s4434_s6  ;;  %s4441_s4 = scalar_lea.vmem %s659_s1, 32 }
  0x2e   : > { %p5131_p13 = pneg %p5123_p12  ;;  %p4442_p3 = scmp.lt.s32.totalorder %s659_s1, %s659_s1 }
  0x2f   : > { %p4443_p4 = scmp.lt.s32.totalorder %s4441_s4, %s4434_s6 }
  0x30   : > { %p4437_p1 = pnand %p4435_p0, %p5131_p13 }
  0x31   : > { %p4444_p7 = por %p4443_p4, %p4442_p3 }
  0x32   : > { %p4438_p2 = pneg %p4437_p1 }
  0x34   : > { %p4445_p8 = pnand %p4444_p7, %p4438_p2 }
  0x36   : > { %4448 = shalt.err (!%p4445_p8)
}
  0x37   : > { %s5610_s27 = sld [smem:[#allocation46_spill]]  ;;  %s4460_s28 = scalar_lea.vmem %s687_s0, 16 }
  0x38   : > { %p4461_p11 = scmp.ne.s32.totalorder %s687_s0, %s4460_s28  ;;  %s4467_s26 = scalar_lea.vmem %s687_s0, 32 }
  0x39   : > { %p4468_p0 = scmp.lt.s32.totalorder %s687_s0, %s687_s0  ;;  %p4469_p1 = scmp.lt.s32.totalorder %s4467_s26, %s4460_s28 }
  0x3a   : > { %p4463_p9 = pnand %p4461_p11, %p5131_p13 }
  0x3b   : > { %p4470_p5 = por %p4469_p1, %p4468_p0 }
  0x3c   : > { %p4464_p6 = pneg %p4463_p9 }
  0x3d   : > { %4206 = dma.hbm_to_vmem [thread:$0]  (!%p5123_p12), %s5610_s27, 16, %s659_s1, [#allocation6]  }
  0x3e   : > { %p4471_p10 = pnand %p4470_p5, %p4464_p6 }
  0x40   : > { %4474 = shalt.err (!%p4471_p10)
}
  0x41   : > { %s5611_s2 = sld [smem:[#allocation50_spill]]  ;;  %s4486_s27 = scalar_lea.vmem %s5127_s7, 16 }
  0x42   : > { %p4487_p2 = scmp.ne.s32.totalorder %s5127_s7, %s4486_s27  ;;  %s4493_s26 = scalar_lea.vmem %s5127_s7, 32 }
  0x43   : > { %p4494_p5 = scmp.lt.s32.totalorder %s5127_s7, %s5127_s7  ;;  %p4495_p6 = scmp.lt.s32.totalorder %s4493_s26, %s4486_s27 }
  0x44   : > { %p4489_p9 = pnand %p4487_p2, %p5131_p13 }
  0x45   : > { %p4496_p10 = por %p4495_p6, %p4494_p5 }
  0x46   : > { %p4490_p3 = pneg %p4489_p9 }
  0x47   : > { %4212 = dma.hbm_to_vmem [thread:$0]  (!%p5123_p12), %s5611_s2, 16, %s687_s0, [#allocation9]  }
  0x48   : > { %p4497_p4 = pnand %p4496_p10, %p4490_p3 }
  0x4a   : > { %4500 = shalt.err (!%p4497_p4)
}
  0x4b   : > { %s5612_s1 = sld [smem:[#allocation52_spill]]  ;;  %s4910_s2 = smov [#allocation14]  }
  0x4c   : > { %s732_s0 = sshll.u32 %s4910_s2, 4  ;;  %s4911_s30 = smov [#allocation17]   ;;  %s733_s0 = int_to_ptr.vmem [resolvable:$true] %s732_s0 }
  0x4d   : > { %s757_s6 = sshll.u32 %s4911_s30, 4  ;;  %s4512_s4 = scalar_lea.vmem %s733_s0, 16  ;;  %s758_s6 = int_to_ptr.vmem [resolvable:$true] %s757_s6 }
  0x4e   : > { %p4513_p7 = scmp.ne.s32.totalorder %s733_s0, %s4512_s4  ;;  %s4519_s27 = scalar_lea.vmem %s733_s0, 32 }
  0x4f   : > { %p4520_p0 = scmp.lt.s32.totalorder %s733_s0, %s733_s0  ;;  %p4521_p1 = scmp.lt.s32.totalorder %s4519_s27, %s4512_s4 }
  0x50   : > { %p4515_p8 = pnand %p4513_p7, %p5131_p13 }
  0x51   : > { %4218 = dma.hbm_to_vmem [thread:$0]  (!%p5123_p12), %s5612_s1, 16, %s5127_s7, [#allocation12]  }
  0x52   : > { %p4516_p11 = pneg %p4515_p8  ;;  %p4522_p2 = por %p4521_p1, %p4520_p0 }
  0x54   : > { %p4523_p9 = pnand %p4522_p2, %p4516_p11 }
  0x56   : > { %4526 = shalt.err (!%p4523_p9)
}
  0x57   : > { %s5613_s11 = sld [smem:[#allocation54_spill]]  ;;  %s4538_s28 = scalar_lea.vmem %s758_s6, 16 }
  0x58   : > { %p4539_p3 = scmp.ne.s32.totalorder %s758_s6, %s4538_s28  ;;  %s4545_s5 = scalar_lea.vmem %s758_s6, 32 }
  0x59   : > { %p4546_p10 = scmp.lt.s32.totalorder %s758_s6, %s758_s6  ;;  %p4547_p4 = scmp.lt.s32.totalorder %s4545_s5, %s4538_s28 }
  0x5a   : > { %p4541_p5 = pnand %p4539_p3, %p5131_p13 }
  0x5b   : > { %p4548_p7 = por %p4547_p4, %p4546_p10 }
  0x5c   : > { %p4542_p6 = pneg %p4541_p5 }
  0x5d   : > { %4224 = dma.hbm_to_vmem [thread:$0]  (!%p5123_p12), %s5613_s11, 16, %s733_s0, [#allocation15]  }
  0x5e   : > { %p4549_p8 = pnand %p4548_p7, %p4542_p6 }
  0x60   : > { %4552 = shalt.err (!%p4549_p8)
}
  0x61   : > { %4230 = dma.hbm_to_vmem [thread:$0]  (!%p5123_p12), %s5557_s14, 16, %s758_s6, [#allocation18]  }
  0x62   : > { %s4912_s0 = smov [#allocation20]   ;;  %s4913_s4 = smov [#allocation23]  }
  0x63   : > { %s782_s30 = sshll.u32 %s4912_s0, 4  ;;  %s807_s27 = sshll.u32 %s4913_s4, 4  ;;  %s783_s30 = int_to_ptr.vmem [resolvable:$true] %s782_s30  ;;  %s808_s27 = int_to_ptr.vmem [resolvable:$true] %s807_s27 }
  0x64   : > { %s4564_s26 = scalar_lea.vmem %s783_s30, 16  ;;  %s4571_s7 = scalar_lea.vmem %s783_s30, 32 }
  0x65   : > { %p4565_p11 = scmp.ne.s32.totalorder %s783_s30, %s4564_s26  ;;  %p4572_p2 = scmp.lt.s32.totalorder %s783_s30, %s783_s30 }
  0x66   : > { %p4573_p9 = scmp.lt.s32.totalorder %s4571_s7, %s4564_s26 }
  0x67   : > { %p4567_p0 = pnand %p4565_p11, %p5131_p13 }
  0x68   : > { %p4574_p3 = por %p4573_p9, %p4572_p2 }
  0x69   : > { %p4568_p1 = pneg %p4567_p0 }
  0x6b   : > { %p4575_p5 = pnand %p4574_p3, %p4568_p1 }
  0x6d   : > { %4578 = shalt.err (!%p4575_p5)
}
  0x6e   : > { %4236 = dma.hbm_to_vmem [thread:$0]  (!%p5123_p12), %s5560_s17, 16, %s783_s30, [#allocation21]  }
  0x6f   : > { %s4590_s5 = scalar_lea.vmem %s808_s27, 16  ;;  %s4597_s1 = scalar_lea.vmem %s808_s27, 32 }
  0x70   : > { %p4591_p6 = scmp.ne.s32.totalorder %s808_s27, %s4590_s5  ;;  %p4598_p7 = scmp.lt.s32.totalorder %s808_s27, %s808_s27 }
  0x71   : > { %p4599_p8 = scmp.lt.s32.totalorder %s4597_s1, %s4590_s5 }
  0x72   : > { %p4593_p10 = pnand %p4591_p6, %p5131_p13 }
  0x73   : > { %p4600_p11 = por %p4599_p8, %p4598_p7 }
  0x74   : > { %p4594_p4 = pneg %p4593_p10 }
  0x76   : > { %p4601_p0 = pnand %p4600_p11, %p4594_p4 }
  0x78   : > { %4604 = shalt.err (!%p4601_p0)
}
  0x79   : > { %4242 = dma.hbm_to_vmem [thread:$0]  (!%p5123_p12), %s5563_s20, 16, %s808_s27, [#allocation24]  }
  0x7a   : > { %s4914_s30 = smov [#allocation2]   ;;  %s4915_s26 = smov [#allocation7]  }
  0x7b   : > { %s647_s4 = sshll.u32 %s4914_s30, 4  ;;  %s672_s7 = sshll.u32 %s4915_s26, 4  ;;  %s648_s4 = int_to_ptr.vmem [resolvable:$true] %s647_s4  ;;  %s673_s7 = int_to_ptr.vmem [resolvable:$true] %s672_s7 }
  0x7c   : > { %s4616_s28 = scalar_lea.vmem %s648_s4, 16  ;;  %s4623_s6 = scalar_lea.vmem %s648_s4, 32 }
  0x7d   : > { %p4617_p1 = scmp.ne.s32.totalorder %s648_s4, %s4616_s28  ;;  %p4624_p3 = scmp.lt.s32.totalorder %s648_s4, %s648_s4 }
  0x7e   : > { %p4625_p5 = scmp.lt.s32.totalorder %s4623_s6, %s4616_s28 }
  0x7f   : > { %p4619_p2 = pnand %p4617_p1, %p5131_p13 }
  0x80   : > { %p4626_p6 = por %p4625_p5, %p4624_p3 }
  0x81   : > { %p4620_p9 = pneg %p4619_p2 }
  0x83   : > { %p4627_p10 = pnand %p4626_p6, %p4620_p9 }
  0x85   : > { %4630 = shalt.err (!%p4627_p10)
}
  0x86   : > { %s5614_s1 = sld [smem:[#allocation45_spill]]  ;;  %s4642_s2 = scalar_lea.vmem %s673_s7, 16 }
  0x87   : > { %p4643_p4 = scmp.ne.s32.totalorder %s673_s7, %s4642_s2  ;;  %s4649_s0 = scalar_lea.vmem %s673_s7, 32 }
  0x88   : > { %p4650_p11 = scmp.lt.s32.totalorder %s673_s7, %s673_s7  ;;  %p4651_p0 = scmp.lt.s32.totalorder %s4649_s0, %s4642_s2 }
  0x89   : > { %p4645_p7 = pnand %p4643_p4, %p5131_p13 }
  0x8a   : > { %p4652_p1 = por %p4651_p0, %p4650_p11 }
  0x8b   : > { %p4646_p8 = pneg %p4645_p7 }
  0x8c   : > { %4203 = dma.hbm_to_vmem [thread:$0]  (!%p5123_p12), %s5614_s1, 16, %s648_s4, [#allocation3]  }
  0x8d   : > { %p4653_p2 = pnand %p4652_p1, %p4646_p8 }
  0x8f   : > { %4656 = shalt.err (!%p4653_p2)
}
  0x90   : > { %s5615_s28 = sld [smem:[#allocation48_spill]]  ;;  %s4916_s4 = smov [#allocation10]  }
  0x91   : > { %s697_s6 = sshll.u32 %s4916_s4, 4  ;;  %s4917_s5 = smov [#allocation13]   ;;  %s698_s6 = int_to_ptr.vmem [resolvable:$true] %s697_s6 }
  0x92   : > { %s718_s27 = sshll.u32 %s4917_s5, 4  ;;  %s4668_s1 = scalar_lea.vmem %s698_s6, 16  ;;  %s719_s27 = int_to_ptr.vmem [resolvable:$true] %s718_s27 }
  0x93   : > { %p4669_p9 = scmp.ne.s32.totalorder %s698_s6, %s4668_s1  ;;  %s4675_s2 = scalar_lea.vmem %s698_s6, 32 }
  0x94   : > { %p4676_p6 = scmp.lt.s32.totalorder %s698_s6, %s698_s6  ;;  %p4677_p10 = scmp.lt.s32.totalorder %s4675_s2, %s4668_s1 }
  0x95   : > { %p4671_p3 = pnand %p4669_p9, %p5131_p13 }
  0x96   : > { %4209 = dma.hbm_to_vmem [thread:$0]  (!%p5123_p12), %s5615_s28, 16, %s673_s7, [#allocation6]  }
  0x97   : > { %p4672_p5 = pneg %p4671_p3  ;;  %p4678_p4 = por %p4677_p10, %p4676_p6 }
  0x99   : > { %p4679_p7 = pnand %p4678_p4, %p4672_p5 }
  0x9b   : > { %4682 = shalt.err (!%p4679_p7)
}
  0x9c   : > { %s5616_s30 = sld [smem:[#allocation51_spill]]  ;;  %s4694_s26 = scalar_lea.vmem %s719_s27, 256 }
  0x9d   : > { %p4695_p8 = scmp.ne.s32.totalorder %s719_s27, %s4694_s26  ;;  %p4702_p1 = scmp.lt.s32.totalorder %s719_s27, %s719_s27 }
  0x9e   : > { %p4703_p2 = scmp.lt.s32.totalorder %s4694_s26, %s4694_s26 }
  0x9f   : > { %p4697_p11 = pnand %p4695_p8, %p5131_p13 }
  0xa0   : > { %p4704_p9 = por %p4703_p2, %p4702_p1 }
  0xa1   : > { %p4698_p0 = pneg %p4697_p11 }
  0xa2   : > { %4215 = dma.hbm_to_vmem [thread:$0]  (!%p5123_p12), %s5616_s30, 16, %s698_s6, [#allocation9]  }
  0xa3   : > { %p4705_p3 = pnand %p4704_p9, %p4698_p0 }
  0xa5   : > { %4708 = shalt.err (!%p4705_p3)
}
  0xa6   : > { %s4918_s28 = smov 64   ;;  %s4919_s4 = smov 4  }
  0xa7   : > { %s5617_s2 = sld [smem:[#allocation53_spill]]  ;;  %s4920_s6 = smov [#allocation16]  }
  0xa8   : > { %s746_s0 = sshll.u32 %s4920_s6, 4  ;;  %s4921_s7 = smov [#allocation19]   ;;  %s747_s0 = int_to_ptr.vmem [resolvable:$true] %s746_s0 }
  0xa9   : > { %s768_s30 = sshll.u32 %s4921_s7, 4  ;;  %s4720_s11 = scalar_lea.vmem %s747_s0, 16  ;;  %s769_s30 = int_to_ptr.vmem [resolvable:$true] %s768_s30 }
  0xaa   : > { %p4721_p5 = scmp.ne.s32.totalorder %s747_s0, %s4720_s11  ;;  %s4727_s26 = scalar_lea.vmem %s747_s0, 32 }
  0xab   : > { %p4728_p4 = scmp.lt.s32.totalorder %s747_s0, %s747_s0  ;;  %p4729_p7 = scmp.lt.s32.totalorder %s4727_s26, %s4720_s11 }
  0xac   : > { %p4723_p6 = pnand %p4721_p5, %p5131_p13 }
  0xad   : > { %4221 = dma.hbm_to_vmem [thread:$0]  (!%p5123_p12), %s5617_s2, 256, %s719_s27, [#allocation12], %s4918_s28, %s4918_s28, %s4919_s4  }
  0xae   : > { %p4724_p10 = pneg %p4723_p6  ;;  %p4730_p8 = por %p4729_p7, %p4728_p4 }
  0xb0   : > { %p4731_p11 = pnand %p4730_p8, %p4724_p10 }
  0xb2   : > { %4734 = shalt.err (!%p4731_p11)
}
  0xb3   : > { %4227 = dma.hbm_to_vmem [thread:$0]  (!%p5123_p12), %s5556_s13, 16, %s747_s0, [#allocation15]  }
  0xb4   : > { %s4746_s28 = scalar_lea.vmem %s769_s30, 16  ;;  %s4753_s4 = scalar_lea.vmem %s769_s30, 32 }
  0xb5   : > { %p4747_p0 = scmp.ne.s32.totalorder %s769_s30, %s4746_s28  ;;  %p4754_p9 = scmp.lt.s32.totalorder %s769_s30, %s769_s30 }
  0xb6   : > { %p4755_p3 = scmp.lt.s32.totalorder %s4753_s4, %s4746_s28 }
  0xb7   : > { %p4749_p1 = pnand %p4747_p0, %p5131_p13 }
  0xb8   : > { %p4756_p5 = por %p4755_p3, %p4754_p9 }
  0xb9   : > { %p4750_p2 = pneg %p4749_p1 }
  0xbb   : > { %p4757_p6 = pnand %p4756_p5, %p4750_p2 }
  0xbd   : > { %4760 = shalt.err (!%p4757_p6)
}
  0xbe   : > { %4233 = dma.hbm_to_vmem [thread:$0]  (!%p5123_p12), %s5558_s15, 16, %s769_s30, [#allocation18]  }
  0xbf   : > { %s4922_s2 = smov [#allocation22]   ;;  %s4923_s0 = smov [#allocation25]  }
  0xc0   : > { %s796_s6 = sshll.u32 %s4922_s2, 4  ;;  %s818_s7 = sshll.u32 %s4923_s0, 4  ;;  %s797_s6 = int_to_ptr.vmem [resolvable:$true] %s796_s6  ;;  %s819_s7 = int_to_ptr.vmem [resolvable:$true] %s818_s7 }
  0xc1   : > { %s4772_s26 = scalar_lea.vmem %s797_s6, 16  ;;  %s4779_s5 = scalar_lea.vmem %s797_s6, 32 }
  0xc2   : > { %p4773_p10 = scmp.ne.s32.totalorder %s797_s6, %s4772_s26  ;;  %p4780_p8 = scmp.lt.s32.totalorder %s797_s6, %s797_s6 }
  0xc3   : > { %p4781_p11 = scmp.lt.s32.totalorder %s4779_s5, %s4772_s26 }
  0xc4   : > { %p4775_p4 = pnand %p4773_p10, %p5131_p13 }
  0xc5   : > { %p4782_p0 = por %p4781_p11, %p4780_p8 }
  0xc6   : > { %p4776_p7 = pneg %p4775_p4 }
  0xc8   : > { %p4783_p1 = pnand %p4782_p0, %p4776_p7 }
  0xca   : > { %4786 = shalt.err (!%p4783_p1)
}
  0xcb   : > { %4239 = dma.hbm_to_vmem [thread:$0]  (!%p5123_p12), %s5562_s19, 16, %s797_s6, [#allocation21]  }
  0xcc   : > { %s4798_s28 = scalar_lea.vmem %s819_s7, 16  ;;  %s4805_s4 = scalar_lea.vmem %s819_s7, 32 }
  0xcd   : > { %p4799_p2 = scmp.ne.s32.totalorder %s819_s7, %s4798_s28  ;;  %p4806_p5 = scmp.lt.s32.totalorder %s819_s7, %s819_s7 }
  0xce   : > { %p4807_p6 = scmp.lt.s32.totalorder %s4805_s4, %s4798_s28 }
  0xcf   : > { %p4801_p9 = pnand %p4799_p2, %p5131_p13 }
  0xd0   : > { %p4808_p10 = por %p4807_p6, %p4806_p5 }
  0xd1   : > { %p4802_p3 = pneg %p4801_p9 }
  0xd3   : > { %p4809_p4 = pnand %p4808_p10, %p4802_p3 }
  0xd5   : > { %4812 = shalt.err (!%p4809_p4)
}
  0xd6   : > { %4245 = dma.hbm_to_vmem [thread:$0]  (!%p5123_p12), %s5564_s21, 16, %s819_s7, [#allocation24]  }
  0xd7   : > { %p5618_p7 = scmp.ne.s32.totalorder %s5607_s10, 0 }
  0xd8   : > { %p5619_p8 = scmp.eq.s32.totalorder (!%p5618_p7), %s5087_s8, 0 }
  0xd9   : > { %857 = sbr.rel (%p5618_p7) target bundleno = 4958 (0x135e), region = 124 }
  0xde   : > { %4856 = dma.done.wait (%p5619_p8), [#allocation3], 16   ;;  %p5620_p13 = pmov %p5619_p8 }
  0xdf   : > { %p5621_p11 = pmov %p5619_p8 }
  0xe0   : > { %4858 = vsyncadd (%p5620_p13), [#allocation3], 4294967280 }
  0xe1   : > { %4860 = dma.done.wait (%p5621_p11), [#allocation6], 32   ;;  %p5622_p0 = pmov %p5619_p8 }
  0xe3   : > { %4862 = vsyncadd (%p5622_p0), [#allocation6], 4294967264  ;;  %p5623_p1 = pmov %p5622_p0 }
  0xe4   : > { %p5624_p12 = pmov %p5622_p0 }
  0xe5   : > { %4864 = dma.done.wait (%p5623_p1), [#allocation9], 32  }
  0xe6   : > { %4866 = vsyncadd (%p5624_p12), [#allocation9], 4294967264  ;;  %p5625_p2 = pmov %p5622_p0 }
  0xe7   : > { %p5626_p9 = pmov %p5622_p0 }
  0xe8   : > { %4868 = dma.done.wait (%p5625_p2), [#allocation12], 272  }
  0xe9   : > { %4870 = vsyncadd (%p5626_p9), [#allocation12], 4294967024  ;;  %p5627_p3 = pmov %p5622_p0 }
  0xea   : > { %p5628_p5 = pmov %p5622_p0 }
  0xeb   : > { %4872 = dma.done.wait (%p5627_p3), [#allocation15], 32  }
  0xec   : > { %4874 = vsyncadd (%p5628_p5), [#allocation15], 4294967264  ;;  %p5629_p6 = pmov %p5622_p0 }
  0xed   : > { %p5630_p10 = pmov %p5622_p0 }
  0xee   : > { %4876 = dma.done.wait (%p5629_p6), [#allocation18], 32  }
  0xef   : > { %4878 = vsyncadd (%p5630_p10), [#allocation18], 4294967264  ;;  %p5631_p4 = pmov %p5622_p0 }
  0xf0   : > { %p5632_p7 = pmov %p5622_p0 }
  0xf1   : > { %4880 = dma.done.wait (%p5631_p4), [#allocation21], 32  }
  0xf2   : > { %4882 = vsyncadd (%p5632_p7), [#allocation21], 4294967264  ;;  %p5633_p8 = pmov %p5622_p0 }
  0xf3   : > { %p5634_p13 = pmov %p5622_p0 }
  0xf4   : > { %4884 = dma.done.wait (%p5633_p8), [#allocation24], 32  }
  0xf5   : > { %4886 = vsyncadd (%p5634_p13), [#allocation24], 4294967264  ;;  %p986_p11 = scmp.lt.s32.totalorder %s5087_s8, 1  ;;  %s5635_s6 = sld [smem:[#allocation43_spill]]  ;;  %vm998_vm0 = vcmask 261120   ;;  %v4924_v8 = vmov 0.0  }
  0xf6   : > { %s5636_s5 = sld [smem:[#allocation47_spill]]  ;;  %3980 = vmatprep.subr.bf16.mxu0 %v4924_v8  ;;  %vm4925_vm1 = vmmov 0   ;;  %3988 = vmatprep.subr.bf16.mxu1 %v4924_v8  ;;  %v3866_v14 = vld [vmem:[#allocation2] ss:$0 sm:$0xff]  ;;  %v3867_v16 = vld [vmem:[#allocation5] ss:$0 sm:$0xff] }
  0xf7   : > { %s5282_s29 = scalar_select %p986_p11, %s5087_s8, 1  ;;  %3984 = vmatprep.mubr.msk.bf16.mxu0 %vm4925_vm1, %v4924_v8  ;;  %3990 = vmatprep.mubr.msk.bf16.mxu1 %vm4925_vm1, %v4924_v8  ;;  %v3868_v20 = vld [vmem:[#allocation7] ss:$0 sm:$0xff]  ;;  %vm1465_vm2 = vcmask 1043456   ;;  %vm1461_vm3 = vcmask 64512   ;;  %vm2304_vm4 = vcmask 130048  }
  0xf8   : > { %s4926_s28 = smov 96   ;;  %s4927_s4 = smov 64   ;;  %vm2256_vm5 = vcmask 523264   ;;  %vm2781_vm6 = vcmask 1041408   ;;  %vm2777_vm7 = vcmask 31744   ;;  %vm3597_vm8 = vcmask 392192  }
  0xf9   : > { %s3864_s10 = sshll.u32 %s5282_s29, 3  ;;  %s5637_s9 = sld [smem:[#allocation49_spill]] }
  0xfa   : > { %s5638_s26 = sld [smem:[#allocation44_spill]] }
  0xfb   : > { %s989_s0 = scalar_lea.vmem %s5635_s6, %s3864_s10  ;;  %s5639_s29 = sld [smem:[#allocation41_spill]] }
  0xfc   : > { %v5290_v0 = vld [vmem:[%s989_s0] sm:$0xff]  ;;  %v4364_v7 = vld [vmem:[%s5636_s5 + $0x8] sm:$0xff]   ;;  %s5640_s2 = sld [smem:[#allocation55_spill]] }
  0xfd   : > { %v999_v1 = vsel %vm998_vm0, %v5290_v0, 0.0  ;;  %3981 = vmatpush3.bf16.msra.mxu0 %v4364_v7  ;;  %v4365_v9 = vld [vmem:[%s5636_s5] sm:$0xff]  }
  0xfe   : > { %1000 = vadd.xlane.f32.xlu0 %v999_v1  ;;  %3982 = vmatprep.subr.bf16.mxu0 %v4924_v8 }
 0x100   : > { %s993_s27 = scalar_lea.vmem %s5638_s26, %s3864_s10  ;;  %s4928_s26 = smov 112  }
 0x101   : > { %3983 = vmatpush3.bf16.msra.mxu0 %v4365_v9  ;;  %s3922_s10 = sshll.u32 %s5087_s8, 7  ;;  %p5641_p1 = scmp.ne.s32.totalorder %s5639_s29, 0 }
 0x102   : > { %4000 = vmatprep.subr.bf16.mxu0 %v4924_v8  ;;  %s5507_s6 = scalar_lea.hbm %s5640_s2, %s3922_s10  ;;  %s4930_s8 = smov [#allocation26]  }
 0x187   : > { %v1001_v2 = vpop.xlane.xlu0 %1000 }
 0x188   : > { %v1003_v3 = vmul.f32 0.03125, %v1001_v2 }
 0x18a   : > { %v1004_v4 = vsub.f32 %v5290_v0, %v1003_v3 }
 0x18c   : > { %v1005_v5 = vmul.f32 %v1004_v4, %v1004_v4 }
 0x18e   : > { %v1006_v6 = vsel %vm998_vm0, %v1005_v5, 0.0 }
 0x18f   : > { %1007 = vadd.xlane.f32.xlu0 %v1006_v6 }
 0x218   : > { %v1008_v10 = vpop.xlane.xlu0 %1007 }
 0x219   : > { %v1009_v11 = vmul.f32 0.03125, %v1008_v10 }
 0x21b   : > { %v1010_v12 = vadd.f32 1e-05, %v1009_v11 }
 0x21d   : > { %4379 = vrsqrt.f32 %v1010_v12 }
 0x22a   : > { %v4380_v13 = vpop.eup %4379 }
 0x22b   : > { %v1012_v15 = vmul.f32 %v4380_v13, %v1004_v4 }
 0x22d   : > { %v1019_v17 = vmul.f32 %v3866_v14, %v1012_v15 }
 0x22f   : > { %v1026_v18 = vadd.f32 %v3867_v16, %v1019_v17 }
 0x231   : > { %v1027_v19 = vpack.c.bf16 %v1026_v18, %v1026_v18 }
 0x233   : > { %3985 = vmatmul.mubr.msk.bf16.vlgmr.msra.gmra.mxu0 %vm998_vm0, %v1027_v19 }
 0x234   : > { %4002 = vmatprep.mubr.msk.bf16.mxu0 %vm4925_vm1, %v4924_v8 }
 0x2f3   : > { %v1088_v21 = vpop.f32.mrf.mxu0 }
 0x2f4   : > { %v1089_v22 = vadd.f32 %v3868_v20, %v1088_v21 }
 0x2f5   : > { %v3986_v23 = vpop.f32.mrf.mxu0 }
 0x2f6   : > { %1255 = vrot.lane.b32.xlu1 %v1089_v22, %s4926_s28 }
 0x2f7   : > { %v1091_v24 = vpop.f32.mrf.mxu0 }
 0x2f9   : > { %v3987_v25 = vpop.f32.mrf.mxu0 }
 0x31f   : > { %1094 = vxpose.xlu1.b32.start.end [1/1] (short) (narrow) %v1089_v22, 32 }
 0x368   : > { %v1256_v26 = vpop.permute.xlu1 %1255 }
 0x369   : > { %1258 = vxpose.xlu0.b32.start.end [1/1] (short) (narrow) %v1256_v26, 32 }
 0x39b   : > { %v1110_v27 = vpop.trf.xlu1 }
 0x39c   : > { %1126 = vxpose.xlu1.b32.start.end [1/1] (short) (narrow) %v1110_v27, 8 }
 0x39f   : > { %v1111_v28 = vpop.trf.xlu1 }
 0x3a0   : > { %1158 = vxpose.xlu0.b32.start.end [1/1] (short) (narrow) %v1111_v28, 8 }
 0x3a3   : > { %v1112_v29 = vpop.trf.xlu1 }
 0x3a4   : > { %1190 = vxpose.xlu1.b32.start.end [1/1] (short) (narrow) %v1112_v29, 8 }
 0x3a7   : > { %v1113_v30 = vpop.trf.xlu1 }
 0x3a8   : > { %1222 = vxpose.xlu1.b32.start.end [1/1] (short) (narrow) %v1113_v30, 8 }
 0x3c9   : > { %1290 = vrot.lane.b32.xlu0 %v1089_v22, %s4927_s4 }
 0x3e5   : > { %v1274_v31 = vpop.trf.xlu0 }
 0x3e6   : > { %v1457_v32 = vpack.c.bf16 %v1274_v31, %v1274_v31 }
 0x3e8   : > { %v1467_v33 = vsel %vm1465_vm2, %v1457_v32, 0 }
 0x3e9   : > { %3989 = vmatpush3.bf16.msra.mxu1 %v1467_v33  ;;  %v1275_v34 = vpop.trf.xlu0 }
 0x3ea   : > { %3994 = vmatprep.subr.bf16.mxu1 %v4924_v8  ;;  %v1458_v39 = vpack.c.bf16 %v1275_v34, %v1275_v34 }
 0x3ec   : > { %v1513_v42 = vsel %vm1465_vm2, %v1458_v39, 0 }
 0x3ed   : > { %v1276_v35 = vpop.trf.xlu0 }
 0x3ee   : > { %v1459_v36 = vpack.c.bf16 %v1276_v35, %v1276_v35 }
 0x3f0   : > { %v1559_v37 = vsel %vm1465_vm2, %v1459_v36, 0 }
 0x3f1   : > { %4001 = vmatpush3.bf16.msra.mxu0 %v1559_v37  ;;  %v1277_v38 = vpop.trf.xlu0 }
 0x3f2   : > { %4012 = vmatprep.subr.bf16.mxu0 %v4924_v8  ;;  %v1460_v44 = vpack.c.bf16 %v1277_v38, %v1277_v38 }
 0x3f4   : > { %v1605_v48 = vsel %vm1465_vm2, %v1460_v44, 0 }
 0x418   : > { %v1142_v40 = vpop.trf.xlu1 }
 0x419   : > { %v1453_v41 = vpack.c.bf16 %v1142_v40, %v1142_v40 }
 0x41b   : > { %3991 = vmatmul.mubr.msk.bf16.vlgmr.msra.gmra.mxu1 %vm1461_vm3, %v1453_v41 }
 0x41c   : > { %3995 = vmatpush3.bf16.msra.mxu1 %v1513_v42  ;;  %v1174_v43 = vpop.trf.xlu0  ;;  %3996 = vmatprep.mubr.msk.bf16.mxu1 %vm4925_vm1, %v4924_v8 }
 0x41d   : > { %4006 = vmatprep.subr.bf16.mxu1 %v4924_v8  ;;  %v1454_v45 = vpack.c.bf16 %v1174_v43, %v1174_v43 }
 0x420   : > { %v1206_v46 = vpop.trf.xlu1 }
 0x421   : > { %v1455_v47 = vpack.c.bf16 %v1206_v46, %v1206_v46 }
 0x423   : > { %3997 = vmatmul.mubr.msk.bf16.vlgmr.msra.gmra.mxu1 %vm1461_vm3, %v1454_v45  ;;  %4003 = vmatmul.mubr.msk.bf16.vlgmr.msra.gmra.mxu0 %vm1461_vm3, %v1455_v47 }
 0x424   : > { %4007 = vmatpush3.bf16.msra.mxu1 %v1605_v48  ;;  %v1238_v49 = vpop.trf.xlu1  ;;  %4008 = vmatprep.mubr.msk.bf16.mxu1 %vm4925_vm1, %v4924_v8 }
 0x425   : > { %4014 = vmatprep.mubr.msk.bf16.mxu0 %vm4925_vm1, %v4924_v8  ;;  %4018 = vmatprep.subr.bf16.mxu1 %v4924_v8  ;;  %v1456_v50 = vpack.c.bf16 %v1238_v49, %v1238_v49 }
 0x42b   : > { %4009 = vmatmul.mubr.msk.bf16.vlgmr.msra.gmra.mxu1 %vm1461_vm3, %v1456_v50 }
 0x42c   : > { %4020 = vmatprep.mubr.msk.bf16.mxu1 %vm4925_vm1, %v4924_v8 }
 0x43b   : > { %v1291_v51 = vpop.permute.xlu0 %1290 }
 0x43c   : > { %1293 = vxpose.xlu1.b32.start.end [1/1] (short) (narrow) %v1291_v51, 32 }
 0x4b8   : > { %v1309_v9 = vpop.trf.xlu1 }
 0x4bc   : > { %v1310_v10 = vpop.trf.xlu1 }
 0x4c0   : > { %v1311_v11 = vpop.trf.xlu1 }
 0x4c4   : > { %v1312_v13 = vpop.trf.xlu1 }
 0x4db   : > { %v1503_v52 = vpop.f32.mrf.mxu1 }
 0x4dc   : > { %v1647_v53 = vsel %vm1461_vm3, %v1503_v52, -inf }
 0x4dd   : > { %1648 = vmax.xlane.f32.xlu1 %v1647_v53  ;;  %v3992_v54 = vpop.f32.mrf.mxu1 }
 0x4df   : > { %v1506_v55 = vpop.f32.mrf.mxu1 }
 0x4e1   : > { %v3993_v56 = vpop.f32.mrf.mxu1 }
 0x4e3   : > { %v1549_v57 = vpop.f32.mrf.mxu1  ;;  %v1595_v58 = vpop.f32.mrf.mxu0 }
 0x4e4   : > { %v1650_v59 = vsel %vm1461_vm3, %v1549_v57, -inf  ;;  %v1653_v60 = vsel %vm1461_vm3, %v1595_v58, -inf }
 0x4e5   : > { %1651 = vmax.xlane.f32.xlu1 %v1650_v59  ;;  %v3998_v61 = vpop.f32.mrf.mxu1  ;;  %1654 = vmax.xlane.f32.xlu0 %v1653_v60  ;;  %v4004_v62 = vpop.f32.mrf.mxu0 }
 0x4e7   : > { %v1552_v63 = vpop.f32.mrf.mxu1  ;;  %v1598_v1 = vpop.f32.mrf.mxu0 }
 0x4e9   : > { %v3999_v2 = vpop.f32.mrf.mxu1  ;;  %v4005_v3 = vpop.f32.mrf.mxu0 }
 0x4eb   : > { %v1641_v4 = vpop.f32.mrf.mxu1 }
 0x4ec   : > { %v1656_v12 = vsel %vm1461_vm3, %v1641_v4, -inf }
 0x4ed   : > { %v4010_v5 = vpop.f32.mrf.mxu1 }
 0x4ef   : > { %v1644_v6 = vpop.f32.mrf.mxu1 }
 0x4f1   : > { %v4011_v7 = vpop.f32.mrf.mxu1 }
 0x512   : > { %1325 = vxpose.xlu0.b32.start.end [1/1] (short) (narrow) %v1309_v9, 8 }
 0x518   : > { %1357 = vxpose.xlu1.b32.start.end [1/1] (short) (narrow) %v1310_v10, 8 }
 0x51c   : > { %1389 = vxpose.xlu1.b32.start.end [1/1] (short) (narrow) %v1311_v11, 8 }
 0x543   : > { %1657 = vmax.xlane.f32.xlu1 %v1656_v12  ;;  %v4366_v12 = vld [vmem:[%s5637_s9 + $0x8] sm:$0xff]  }
 0x566   : > { %v1649_v14 = vpop.xlane.xlu1 %1648 }
 0x567   : > { %v1659_v15 = vsub.f32 %v1503_v52, %v1649_v14 }
 0x569   : > { %v1663_v16 = vmul.f32 1.442695, %v1659_v15  ;;  %v4367_v15 = vld [vmem:[%s5637_s9] sm:$0xff]  }
 0x56b   : > { %4381 = vpow2.f32 %v1663_v16 }
 0x56e   : > { %v1652_v19 = vpop.xlane.xlu1 %1651  ;;  %v1655_v21 = vpop.xlane.xlu0 %1654 }
 0x56f   : > { %v1660_v20 = vsub.f32 %v1549_v57, %v1652_v19  ;;  %v1661_v23 = vsub.f32 %v1595_v58, %v1655_v21 }
 0x571   : > { %v1665_v22 = vmul.f32 1.442695, %v1660_v20  ;;  %v1667_v24 = vmul.f32 1.442695, %v1661_v23 }
 0x573   : > { %4383 = vpow2.f32 %v1665_v22 }
 0x574   : > { %4385 = vpow2.f32 %v1667_v24  ;;  %v5378_v24 = vld [vmem:[%s993_s27] sm:$0xff] }
 0x576   : > { %1421 = vxpose.xlu1.b32.start.end [1/1] (short) (narrow) %v1312_v13, 8 }
 0x578   : > { %v4382_v17 = vpop.eup %4381 }
 0x579   : > { %v1671_v18 = vsel %vm1461_vm3, %v4382_v17, 0.0  ;;  %v1683_v28 = vpack.c.bf16 %v4382_v17, %v4382_v17 }
 0x57a   : > { %1672 = vadd.xlane.f32.xlu0 %v1671_v18 }
 0x580   : > { %v4384_v31 = vpop.eup %4383 }
 0x581   : > { %v1684_v35 = vpack.c.bf16 %v4384_v31, %v4384_v31  ;;  %v4386_v36 = vpop.eup %4385  ;;  %v1674_v38 = vsel %vm1461_vm3, %v4384_v31, 0.0 }
 0x582   : > { %v1685_v39 = vpack.c.bf16 %v4386_v36, %v4386_v36  ;;  %v1677_v40 = vsel %vm1461_vm3, %v4386_v36, 0.0 }
 0x58e   : > { %v1341_v25 = vpop.trf.xlu0 }
 0x58f   : > { %v1687_v26 = vpack.c.bf16 %v1341_v25, %v1341_v25  ;;  %v2305_v25 = vsel %vm2304_vm4, %v5378_v24, 0.0 }
 0x591   : > { %v1695_v27 = vsel %vm1465_vm2, %v1687_v26, 0  ;;  %v3880_v26 = vld [vmem:[#allocation8] ss:$0 sm:$0xff] }
 0x592   : > { %4013 = vmatpush3.bf16.msra.mxu0 %v1695_v27 }
 0x593   : > { %4024 = vmatprep.subr.bf16.mxu0 %v4924_v8 }
 0x594   : > { %v1373_v29 = vpop.trf.xlu1 }
 0x595   : > { %v1688_v30 = vpack.c.bf16 %v1373_v29, %v1373_v29  ;;  %4015 = vmatmul.mubr.msk.bf16.vlgmr.msra.gmra.mxu0 %vm1461_vm3, %v1683_v28 }
 0x596   : > { %4026 = vmatprep.mubr.msk.bf16.mxu0 %vm4925_vm1, %v4924_v8 }
 0x597   : > { %v1741_v32 = vsel %vm1465_vm2, %v1688_v30, 0 }
 0x598   : > { %4019 = vmatpush3.bf16.msra.mxu1 %v1741_v32  ;;  %v1405_v33 = vpop.trf.xlu1 }
 0x599   : > { %v1689_v34 = vpack.c.bf16 %v1405_v33, %v1405_v33  ;;  %4030 = vmatprep.subr.bf16.mxu1 %v4924_v8 }
 0x59b   : > { %v1787_v37 = vsel %vm1465_vm2, %v1689_v34, 0  ;;  %4021 = vmatmul.mubr.msk.bf16.vlgmr.msra.gmra.mxu1 %vm1461_vm3, %v1684_v35 }
 0x59c   : > { %4025 = vmatpush3.bf16.msra.mxu0 %v1787_v37  ;;  %4032 = vmatprep.mubr.msk.bf16.mxu1 %vm4925_vm1, %v4924_v8 }
 0x59d   : > { %1675 = vadd.xlane.f32.xlu1 %v1674_v38  ;;  %4036 = vmatprep.subr.bf16.mxu0 %v4924_v8 }
 0x59f   : > { %4027 = vmatmul.mubr.msk.bf16.vlgmr.msra.gmra.mxu0 %vm1461_vm3, %v1685_v39 }
 0x5a0   : > { %4040 = vmatprep.mubr.msk.bf16.mxu0 %vm4925_vm1, %v4924_v8  ;;  %4037 = vmatpush3.bf16.msra.mxu0 %v4366_v12 }
 0x5a1   : > { %1678 = vadd.xlane.f32.xlu1 %v1677_v40  ;;  %4038 = vmatprep.subr.bf16.mxu0 %v4924_v8 }
 0x5a4   : > { %4039 = vmatpush3.bf16.msra.mxu0 %v4367_v15 }
 0x5a5   : > { %4052 = vmatprep.subr.bf16.mxu0 %v4924_v8 }
 0x5cc   : > { %v1658_v41 = vpop.xlane.xlu1 %1657 }
 0x5cd   : > { %v1662_v42 = vsub.f32 %v1641_v4, %v1658_v41 }
 0x5cf   : > { %v1669_v43 = vmul.f32 1.442695, %v1662_v42 }
 0x5d1   : > { %4387 = vpow2.f32 %v1669_v43  ;;  %v4368_v43 = vld [vmem:[#allocation13 + $0x8] sm:$0xff]  }
 0x5de   : > { %v4388_v44 = vpop.eup %4387 }
 0x5df   : > { %v1680_v45 = vsel %vm1461_vm3, %v4388_v44, 0.0  ;;  %v1686_v49 = vpack.c.bf16 %v4388_v44, %v4388_v44  ;;  %v4369_v44 = vld [vmem:[#allocation13] sm:$0xff]  }
 0x5e0   : > { %1681 = vadd.xlane.f32.xlu0 %v1680_v45 }
 0x5f2   : > { %v1437_v46 = vpop.trf.xlu1 }
 0x5f3   : > { %v1690_v47 = vpack.c.bf16 %v1437_v46, %v1437_v46 }
 0x5f5   : > { %v1833_v48 = vsel %vm1465_vm2, %v1690_v47, 0 }
 0x5f6   : > { %4031 = vmatpush3.bf16.msra.mxu1 %v1833_v48 }
 0x5f7   : > { %4044 = vmatprep.subr.bf16.mxu1 %v4924_v8 }
 0x5f9   : > { %4033 = vmatmul.mubr.msk.bf16.vlgmr.msra.gmra.mxu1 %vm1461_vm3, %v1686_v49 }
 0x5fa   : > { %4048 = vmatprep.mubr.msk.bf16.mxu1 %vm4925_vm1, %v4924_v8  ;;  %4045 = vmatpush3.bf16.msra.mxu1 %v4368_v43 }
 0x5fb   : > { %4046 = vmatprep.subr.bf16.mxu1 %v4924_v8 }
 0x5fe   : > { %4047 = vmatpush3.bf16.msra.mxu1 %v4369_v44 }
 0x5ff   : > { %4064 = vmatprep.subr.bf16.mxu1 %v4924_v8 }
 0x603   : > { %v1673_v50 = vpop.xlane.xlu0 %1672 }
 0x604   : > { %4389 = vrcp.f32 %v1673_v50 }
 0x611   : > { %v4390_v53 = vpop.eup %4389 }
 0x626   : > { %v1676_v51 = vpop.xlane.xlu1 %1675 }
 0x627   : > { %4391 = vrcp.f32 %v1676_v51 }
 0x62a   : > { %v1679_v52 = vpop.xlane.xlu1 %1678 }
 0x62b   : > { %4393 = vrcp.f32 %v1679_v52  ;;  %v3884_v52 = vld [vmem:[#allocation10] ss:$0 sm:$0xff] }
 0x634   : > { %v4392_v58 = vpop.eup %4391 }
 0x638   : > { %v4394_v63 = vpop.eup %4393 }
 0x655   : > { %v1731_v54 = vpop.f32.mrf.mxu0 }
 0x656   : > { %v1879_v55 = vmul.f32 %v4390_v53, %v1731_v54  ;;  %v3885_v54 = vld [vmem:[#allocation11] ss:$0 sm:$0xff] }
 0x657   : > { %v4016_v56 = vpop.f32.mrf.mxu0 }
 0x658   : > { %1883 = vxpose.xlu1.b32.start.end [1/1] (short) (narrow) %v1879_v55, 8 }
 0x659   : > { %v1734_v57 = vpop.f32.mrf.mxu0 }
 0x65a   : > { %v3896_v57 = vld [vmem:[#allocation17] ss:$0 sm:$0xff] }
 0x65b   : > { %v4017_v59 = vpop.f32.mrf.mxu0  ;;  %v1777_v60 = vpop.f32.mrf.mxu1 }
 0x65c   : > { %v1880_v61 = vmul.f32 %v4392_v58, %v1777_v60  ;;  %v4370_v60 = vld [vmem:[%s5559_s16] sm:$0xff]  }
 0x65d   : > { %v4022_v62 = vpop.f32.mrf.mxu1 }
 0x65e   : > { %1915 = vxpose.xlu0.b32.start.end [1/1] (short) (narrow) %v1880_v61, 8 }
 0x65f   : > { %v1780_v1 = vpop.f32.mrf.mxu1  ;;  %v1823_v2 = vpop.f32.mrf.mxu0 }
 0x660   : > { %v1881_v3 = vmul.f32 %v4394_v63, %v1823_v2  ;;  %v3897_v63 = vld [vmem:[#allocation19] ss:$0 sm:$0xff] }
 0x661   : > { %v4023_v4 = vpop.f32.mrf.mxu1  ;;  %v4028_v5 = vpop.f32.mrf.mxu0 }
 0x662   : > { %1947 = vxpose.xlu0.b32.start.end [1/1] (short) (narrow) %v1881_v3, 8  ;;  %v4371_v3 = vld [vmem:[%s5555_s12 + $0x18] sm:$0xff]   ;;  %v4372_v4 = vld [vmem:[%s5555_s12 + $0x10] sm:$0xff]   ;;  %v4373_v5 = vld [vmem:[%s5555_s12 + $0x8] sm:$0xff]  }
 0x663   : > { %v1826_v6 = vpop.f32.mrf.mxu0 }
 0x664   : > { %v4374_v6 = vld [vmem:[%s5555_s12] sm:$0xff]  }
 0x665   : > { %v4029_v7 = vpop.f32.mrf.mxu0 }
 0x666   : > { %v3886_v7 = vld [vmem:[#allocation14] ss:$0 sm:$0xff] }
 0x669   : > { %v1682_v9 = vpop.xlane.xlu0 %1681 }
 0x66a   : > { %4395 = vrcp.f32 %v1682_v9 }
 0x677   : > { %v4396_v10 = vpop.eup %4395 }
 0x6b9   : > { %v1869_v11 = vpop.f32.mrf.mxu1 }
 0x6ba   : > { %v1882_v13 = vmul.f32 %v4396_v10, %v1869_v11 }
 0x6bb   : > { %v4034_v14 = vpop.f32.mrf.mxu1 }
 0x6bc   : > { %1979 = vxpose.xlu1.b32.start.end [1/1] (short) (narrow) %v1882_v13, 8 }
 0x6bd   : > { %v1872_v16 = vpop.f32.mrf.mxu1 }
 0x6be   : > { %v3898_v16 = vld [vmem:[#allocation20] ss:$0 sm:$0xff] }
 0x6bf   : > { %v4035_v17 = vpop.f32.mrf.mxu1 }
 0x6d4   : > { %v1899_v18 = vpop.trf.xlu1 }
 0x6d5   : > { %2011 = vxpose.xlu0.b32.start [1/4] (short) (narrow) %v1899_v18, 8 }
 0x6da   : > { %v1931_v19 = vpop.trf.xlu0 }
 0x6db   : > { %2012 = vxpose.xlu0.b32.cont [2/4] (short) (narrow) %v1931_v19, 8 }
 0x6de   : > { %v1963_v20 = vpop.trf.xlu0 }
 0x6df   : > { %2013 = vxpose.xlu0.b32.cont [3/4] (short) (narrow) %v1963_v20, 8 }
 0x738   : > { %v1995_v21 = vpop.trf.xlu1 }
 0x739   : > { %2014 = vxpose.xlu0.b32.end [4/4] (short) (narrow) %v1995_v21, 8 }
 0x766   : > { %2306 = vadd.xlane.f32.xlu0 %v2305_v25 }
 0x7a9   : > { %v2027_v22 = vpop.trf.xlu0 }
 0x7aa   : > { %v2043_v23 = vpack.c.bf16 %v2027_v22, %v2027_v22 }
 0x7ac   : > { %4041 = vmatmul.mubr.msk.bf16.vlgmr.msra.gmra.mxu0 %vm998_vm0, %v2043_v23 }
 0x7ad   : > { %4060 = vmatprep.mubr.msk.bf16.mxu0 %vm4925_vm1, %v4924_v8  ;;  %4053 = vmatpush3.bf16.msra.mxu0 %v4371_v3 }
 0x7ae   : > { %4054 = vmatprep.subr.bf16.mxu0 %v4924_v8 }
 0x7b1   : > { %4055 = vmatpush3.bf16.msra.mxu0 %v4372_v4 }
 0x7b2   : > { %4056 = vmatprep.subr.bf16.mxu0 %v4924_v8 }
 0x7b5   : > { %4057 = vmatpush3.bf16.msra.mxu0 %v4373_v5 }
 0x7b6   : > { %4058 = vmatprep.subr.bf16.mxu0 %v4924_v8 }
 0x7b9   : > { %4059 = vmatpush3.bf16.msra.mxu0 %v4374_v6 }
 0x7ba   : > { %4076 = vmatprep.subr.bf16.mxu0 %v4924_v8 }
 0x7ef   : > { %v2307_v34 = vpop.xlane.xlu0 %2306 }
 0x7f0   : > { %v2309_v35 = vmul.f32 0.0625, %v2307_v34 }
 0x7f2   : > { %v2310_v38 = vsub.f32 %v5378_v24, %v2309_v35 }
 0x7f4   : > { %v2311_v41 = vmul.f32 %v2310_v38, %v2310_v38 }
 0x86c   : > { %v2104_v27 = vpop.f32.mrf.mxu0 }
 0x86d   : > { %v2105_v28 = vadd.f32 %v3880_v26, %v2104_v27 }
 0x86e   : > { %v4042_v29 = vpop.f32.mrf.mxu0 }
 0x86f   : > { %v5383_v30 = vadd.f32 %v2105_v28, %v5290_v0  ;;  %v2312_v0 = vsel %vm2304_vm4, %v2311_v41, 0.0 }
 0x870   : > { %v2107_v31 = vpop.f32.mrf.mxu0 }
 0x871   : > { %v2113_v32 = vsel %vm998_vm0, %v5383_v30, 0.0 }
 0x872   : > { %2114 = vadd.xlane.f32.xlu1 %v2113_v32  ;;  %v4043_v33 = vpop.f32.mrf.mxu0 }
 0x8fb   : > { %v2115_v36 = vpop.xlane.xlu1 %2114 }
 0x8fc   : > { %v2116_v37 = vmul.f32 0.03125, %v2115_v36 }
 0x8fe   : > { %v2117_v39 = vsub.f32 %v5383_v30, %v2116_v37 }
 0x900   : > { %v2118_v40 = vmul.f32 %v2117_v39, %v2117_v39 }
 0x902   : > { %v2119_v42 = vsel %vm998_vm0, %v2118_v40, 0.0 }
 0x903   : > { %2120 = vadd.xlane.f32.xlu1 %v2119_v42 }
 0x907   : > { %2313 = vadd.xlane.f32.xlu1 %v2312_v0 }
 0x98c   : > { %v2121_v45 = vpop.xlane.xlu1 %2120 }
 0x98d   : > { %v2122_v46 = vmul.f32 0.03125, %v2121_v45 }
 0x98f   : > { %v2123_v47 = vadd.f32 1e-05, %v2122_v46 }
 0x990   : > { %v2314_v48 = vpop.xlane.xlu1 %2313 }
 0x991   : > { %4397 = vrsqrt.f32 %v2123_v47  ;;  %v2315_v49 = vmul.f32 0.0625, %v2314_v48 }
 0x993   : > { %v2316_v50 = vadd.f32 1e-05, %v2315_v49 }
 0x995   : > { %4399 = vrsqrt.f32 %v2316_v50 }
 0x99e   : > { %v4398_v51 = vpop.eup %4397 }
 0x99f   : > { %v2125_v53 = vmul.f32 %v4398_v51, %v2117_v39 }
 0x9a1   : > { %v2132_v55 = vmul.f32 %v3884_v52, %v2125_v53 }
 0x9a2   : > { %v4400_v56 = vpop.eup %4399 }
 0x9a3   : > { %v2318_v58 = vmul.f32 %v4400_v56, %v2310_v38  ;;  %v2139_v59 = vadd.f32 %v3885_v54, %v2132_v55 }
 0x9a5   : > { %v2140_v61 = vpack.c.bf16 %v2139_v59, %v2139_v59  ;;  %v2325_v62 = vmul.f32 %v3896_v57, %v2318_v58 }
 0x9a7   : > { %4049 = vmatmul.mubr.msk.bf16.vlgmr.msra.gmra.mxu1 %vm998_vm0, %v2140_v61  ;;  %v2332_v1 = vadd.f32 %v3897_v63, %v2325_v62 }
 0x9a8   : > { %4065 = vmatpush3.bf16.msra.mxu1 %v4370_v60  ;;  %4066 = vmatprep.mubr.msk.bf16.mxu1 %vm4925_vm1, %v4924_v8 }
 0x9a9   : > { %4070 = vmatprep.subr.bf16.mxu1 %v4924_v8  ;;  %v2333_v2 = vpack.c.bf16 %v2332_v1, %v2332_v1 }
 0x9af   : > { %4067 = vmatmul.mubr.msk.bf16.vlgmr.msra.gmra.mxu1 %vm2304_vm4, %v2333_v2 }
 0x9b0   : > { %4072 = vmatprep.mubr.msk.bf16.mxu1 %vm4925_vm1, %v4924_v8 }
 0xa67   : > { %v2201_v9 = vpop.f32.mrf.mxu1 }
 0xa68   : > { %v2202_v10 = vadd.f32 %v3886_v7, %v2201_v9 }
 0xa69   : > { %v4050_v11 = vpop.f32.mrf.mxu1 }
 0xa6a   : > { %v2208_v12 = vmul.f32 0.044715, %v2202_v10  ;;  %v2207_v27 = vmul.f32 0.5, %v2202_v10 }
 0xa6b   : > { %v2204_v13 = vpop.f32.mrf.mxu1 }
 0xa6c   : > { %v2209_v14 = vmul.f32 %v2208_v12, %v2202_v10 }
 0xa6d   : > { %v4051_v15 = vpop.f32.mrf.mxu1 }
 0xa6e   : > { %v2210_v17 = vmul.f32 %v2209_v14, %v2202_v10 }
 0xa6f   : > { %v2386_v18 = vpop.f32.mrf.mxu1 }
 0xa70   : > { %v2211_v19 = vadd.f32 %v2210_v17, %v2202_v10  ;;  %v2387_v20 = vadd.f32 %v3898_v16, %v2386_v18 }
 0xa71   : > { %v4068_v21 = vpop.f32.mrf.mxu1 }
 0xa72   : > { %v2212_v22 = vmul.f32 0.7978846, %v2211_v19  ;;  %2392 = vxpose.xlu0.b32.start.end [1/1] (short) (narrow) %v2387_v20, 16  ;;  %2559 = vrot.lane.b32.xlu1 %v2387_v20, %s4928_s26  ;;  %s4929_s26 = smov 32  }
 0xa73   : > { %v2389_v23 = vpop.f32.mrf.mxu1 }
 0xa74   : > { %4401 = vtanh.f32 %v2212_v22 }
 0xa75   : > { %v4069_v25 = vpop.f32.mrf.mxu1 }
 0xa81   : > { %v4402_v26 = vpop.eup %4401 }
 0xa82   : > { %v2214_v28 = vadd.f32 1.0, %v4402_v26 }
 0xa84   : > { %v2215_v29 = vmul.f32 %v2214_v28, %v2207_v27 }
 0xa86   : > { %v2216_v31 = vpack.c.bf16 %v2215_v29, %v2215_v29 }
 0xa88   : > { %4061 = vmatmul.mubr.msk.bf16.vlgmr.msra.gmra.mxu0 %vm2256_vm5, %v2216_v31 }
 0xa89   : > { %4078 = vmatprep.mubr.msk.bf16.mxu0 %vm4925_vm1, %v4924_v8 }
 0xae4   : > { %v2560_v32 = vpop.permute.xlu1 %2559 }
 0xae5   : > { %2562 = vxpose.xlu1.b32.start.end [1/1] (short) (narrow) %v2560_v32, 16 }
 0xaee   : > { %v2408_v33 = vpop.trf.xlu0 }
 0xaef   : > { %v2426_v34 = vcombine.high %v2408_v33, %v2408_v33 }
 0xaf1   : > { %v4336_v35 = vpack.i.bf16 %v2426_v34, %v2408_v33 }
 0xaf2   : > { %v2409_v36 = vpop.trf.xlu0 }
 0xaf3   : > { %4337 = vxpose.xlu0.b32.start.end [1/1] (short) (narrow) %v4336_v35, 8  ;;  %v2427_v37 = vcombine.high %v2409_v36, %v2409_v36 }
 0xaf5   : > { %v4343_v38 = vpack.i.bf16 %v2427_v37, %v2409_v36 }
 0xaf7   : > { %4344 = vxpose.xlu1.b32.start.end [1/1] (short) (narrow) %v4343_v38, 8 }
 0xb1c   : > { %2600 = vrot.lane.b32.xlu0 %v2387_v20, %s4926_s28  ;;  %s983_s28 = sand.u32 1, %s4897_s3  }
 0xb1d   : > { %s3863_s27 = sshll.u32 %s983_s28, 3  ;;  %s3600_s0 = scalar_lea.sflag [#allocation4], %s983_s28 }
 0xb1e   : > { %s985_s30 = scalar_lea.vmem [#allocation26], %s3863_s27 }
 0xb1f   : > { %s3613_s4 = sshll.u32 %s985_s30, 4  ;;  %s3614_s4 = int_to_ptr.vmem [resolvable:$true] %s3613_s4 }
 0xb20   : > { %s4813_s7 = scalar_lea.vmem %s3614_s4, 128 }
 0xb21   : > { %p4814_p0 = scmp.ne.s32.totalorder %s3614_s4, %s4813_s7 }
 0xb23   : > { %p4815_p12 = pnand %p4814_p0, %p5641_p1 }
 0xb25   : > { %p4816_p2 = pneg %p4815_p12 }
 0xb48   : > { %v5422_v39 = vpop.f32.mrf.mxu0 }
 0xb4a   : > { %v4062_v40 = vpop.f32.mrf.mxu0 }
 0xb4c   : > { %v2297_v41 = vpop.f32.mrf.mxu0 }
 0xb4e   : > { %v4063_v42 = vpop.f32.mrf.mxu0 }
 0xb61   : > { %v2578_v0 = vpop.trf.xlu1 }
 0xb62   : > { %v2596_v43 = vcombine.high %v2578_v0, %v2578_v0  ;;  %v2773_v44 = vpack.c.bf16 %v2578_v0, %v2578_v0 }
 0xb64   : > { %v2774_v45 = vpack.c.bf16 %v2596_v43, %v2596_v43  ;;  %v2783_v46 = vsel %vm2781_vm6, %v2773_v44, 0 }
 0xb65   : > { %4071 = vmatpush3.bf16.msra.mxu1 %v2783_v46  ;;  %v2579_v48 = vpop.trf.xlu1 }
 0xb66   : > { %v2829_v47 = vsel %vm2781_vm6, %v2774_v45, 0  ;;  %4082 = vmatprep.subr.bf16.mxu1 %v4924_v8  ;;  %v2597_v49 = vcombine.high %v2579_v48, %v2579_v48  ;;  %v2775_v50 = vpack.c.bf16 %v2579_v48, %v2579_v48 }
 0xb67   : > { %4077 = vmatpush3.bf16.msra.mxu0 %v2829_v47 }
 0xb68   : > { %4088 = vmatprep.subr.bf16.mxu0 %v4924_v8  ;;  %v2776_v52 = vpack.c.bf16 %v2597_v49, %v2597_v49  ;;  %v2875_v57 = vsel %vm2781_vm6, %v2775_v50, 0 }
 0xb6a   : > { %v2921_v59 = vsel %vm2781_vm6, %v2776_v52, 0 }
 0xb6f   : > { %v4338_v51 = vpop.trf.xlu0 }
 0xb70   : > { %v4342_v53 = vunpack.i.h.bf16 %v4338_v51  ;;  %v4339_v54 = vunpack.i.l.bf16 %v4338_v51 }
 0xb72   : > { %v2770_v55 = vpack.c.bf16 %v4342_v53, %v4342_v53  ;;  %v2769_v56 = vpack.c.bf16 %v4339_v54, %v4339_v54 }
 0xb73   : > { %v4345_v58 = vpop.trf.xlu1 }
 0xb74   : > { %4073 = vmatmul.mubr.msk.bf16.vlgmr.msra.gmra.mxu1 %vm2777_vm7, %v2769_v56  ;;  %4079 = vmatmul.mubr.msk.bf16.vlgmr.msra.gmra.mxu0 %vm2777_vm7, %v2770_v55  ;;  %v4349_v60 = vunpack.i.h.bf16 %v4345_v58  ;;  %v4346_v61 = vunpack.i.l.bf16 %v4345_v58 }
 0xb75   : > { %4083 = vmatpush3.bf16.msra.mxu1 %v2875_v57  ;;  %4084 = vmatprep.mubr.msk.bf16.mxu1 %vm4925_vm1, %v4924_v8 }
 0xb76   : > { %4089 = vmatpush3.bf16.msra.mxu0 %v2921_v59  ;;  %4090 = vmatprep.mubr.msk.bf16.mxu0 %vm4925_vm1, %v4924_v8  ;;  %v2772_v62 = vpack.c.bf16 %v4349_v60, %v4349_v60  ;;  %v2771_v63 = vpack.c.bf16 %v4346_v61, %v4346_v61 }
 0xb77   : > { %4094 = vmatprep.subr.bf16.mxu1 %v4924_v8  ;;  %4100 = vmatprep.subr.bf16.mxu0 %v4924_v8 }
 0xb7c   : > { %4085 = vmatmul.mubr.msk.bf16.vlgmr.msra.gmra.mxu1 %vm2777_vm7, %v2771_v63  ;;  %4091 = vmatmul.mubr.msk.bf16.vlgmr.msra.gmra.mxu0 %vm2777_vm7, %v2772_v62 }
 0xb7d   : > { %4096 = vmatprep.mubr.msk.bf16.mxu1 %vm4925_vm1, %v4924_v8  ;;  %4102 = vmatprep.mubr.msk.bf16.mxu0 %vm4925_vm1, %v4924_v8 }
 0xb8e   : > { %v2601_v21 = vpop.permute.xlu0 %2600 }
 0xc34   : > { %v2819_v1 = vpop.f32.mrf.mxu1  ;;  %v2865_v2 = vpop.f32.mrf.mxu0 }
 0xc35   : > { %v2963_v3 = vsel %vm1461_vm3, %v2819_v1, -inf  ;;  %v2966_v9 = vsel %vm1461_vm3, %v2865_v2, -inf }
 0xc36   : > { %2964 = vmax.xlane.f32.xlu1 %v2963_v3  ;;  %v4074_v4 = vpop.f32.mrf.mxu1  ;;  %v4080_v5 = vpop.f32.mrf.mxu0 }
 0xc38   : > { %v2822_v6 = vpop.f32.mrf.mxu1  ;;  %v2868_v7 = vpop.f32.mrf.mxu0 }
 0xc3a   : > { %v4075_v10 = vpop.f32.mrf.mxu1  ;;  %2967 = vmax.xlane.f32.xlu1 %v2966_v9  ;;  %v4081_v11 = vpop.f32.mrf.mxu0 }
 0xc3c   : > { %v2911_v12 = vpop.f32.mrf.mxu1  ;;  %v2957_v13 = vpop.f32.mrf.mxu0 }
 0xc3d   : > { %v2969_v14 = vsel %vm1461_vm3, %v2911_v12, -inf  ;;  %v2972_v22 = vsel %vm1461_vm3, %v2957_v13, -inf }
 0xc3e   : > { %2970 = vmax.xlane.f32.xlu0 %v2969_v14  ;;  %v4086_v15 = vpop.f32.mrf.mxu1  ;;  %v4092_v16 = vpop.f32.mrf.mxu0 }
 0xc40   : > { %v2914_v17 = vpop.f32.mrf.mxu1  ;;  %v2960_v18 = vpop.f32.mrf.mxu0 }
 0xc42   : > { %v4087_v19 = vpop.f32.mrf.mxu1  ;;  %v4093_v20 = vpop.f32.mrf.mxu0 }
 0xc6d   : > { %2603 = vxpose.xlu1.b32.start.end [1/1] (short) (narrow) %v2601_v21, 16 }
 0xc98   : > { %2973 = vmax.xlane.f32.xlu1 %v2972_v22 }
 0xcbf   : > { %v2965_v23 = vpop.xlane.xlu1 %2964 }
 0xcc0   : > { %v2975_v33 = vsub.f32 %v2819_v1, %v2965_v23 }
 0xcc2   : > { %v2979_v36 = vmul.f32 1.442695, %v2975_v33 }
 0xcc3   : > { %v2968_v25 = vpop.xlane.xlu1 %2967 }
 0xcc4   : > { %v2976_v35 = vsub.f32 %v2865_v2, %v2968_v25  ;;  %4403 = vpow2.f32 %v2979_v36 }
 0xcc6   : > { %v2981_v38 = vmul.f32 1.442695, %v2976_v35 }
 0xcc7   : > { %v2971_v34 = vpop.xlane.xlu0 %2970 }
 0xcc8   : > { %v2977_v37 = vsub.f32 %v2911_v12, %v2971_v34  ;;  %4405 = vpow2.f32 %v2981_v38 }
 0xcca   : > { %v2983_v40 = vmul.f32 1.442695, %v2977_v37  ;;  %v4375_v37 = vld [vmem:[%s5561_s18] sm:$0xff]  }
 0xccc   : > { %4407 = vpow2.f32 %v2983_v40 }
 0xcd1   : > { %v4404_v41 = vpop.eup %4403 }
 0xcd2   : > { %v2987_v0 = vsel %vm1461_vm3, %v4404_v41, 0.0  ;;  %v2999_v61 = vpack.c.bf16 %v4404_v41, %v4404_v41 }
 0xcd5   : > { %v4406_v42 = vpop.eup %4405 }
 0xcd6   : > { %v2990_v44 = vsel %vm1461_vm3, %v4406_v42, 0.0  ;;  %v3000_v62 = vpack.c.bf16 %v4406_v42, %v4406_v42 }
 0xcd9   : > { %v4408_v43 = vpop.eup %4407 }
 0xcda   : > { %v2993_v45 = vsel %vm1461_vm3, %v4408_v43, 0.0  ;;  %v3001_v4 = vpack.c.bf16 %v4408_v43, %v4408_v43 }
 0xce9   : > { %v2619_v26 = vpop.trf.xlu1 }
 0xcea   : > { %v2637_v27 = vcombine.high %v2619_v26, %v2619_v26 }
 0xcec   : > { %v4350_v28 = vpack.i.bf16 %v2637_v27, %v2619_v26 }
 0xced   : > { %v2620_v29 = vpop.trf.xlu1 }
 0xcee   : > { %v2638_v31 = vcombine.high %v2620_v29, %v2620_v29  ;;  %4351 = vxpose.xlu0.b32.start.end [1/1] (short) (narrow) %v4350_v28, 8 }
 0xcf0   : > { %v4357_v32 = vpack.i.bf16 %v2638_v31, %v2620_v29 }
 0xcf2   : > { %4358 = vxpose.xlu1.b32.start.end [1/1] (short) (narrow) %v4357_v32, 8 }
 0xd19   : > { %2988 = vadd.xlane.f32.xlu1 %v2987_v0 }
 0xd1b   : > { %2991 = vadd.xlane.f32.xlu0 %v2990_v44 }
 0xd1d   : > { %2994 = vadd.xlane.f32.xlu1 %v2993_v45 }
 0xd21   : > { %v2974_v46 = vpop.xlane.xlu1 %2973 }
 0xd22   : > { %v2978_v47 = vsub.f32 %v2957_v13, %v2974_v46  ;;  %v3909_v46 = vld [vmem:[#allocation22] ss:$0 sm:$0xff] }
 0xd24   : > { %v2985_v48 = vmul.f32 1.442695, %v2978_v47 }
 0xd26   : > { %4409 = vpow2.f32 %v2985_v48 }
 0xd33   : > { %v4410_v49 = vpop.eup %4409 }
 0xd34   : > { %v2996_v50 = vsel %vm1461_vm3, %v4410_v49, 0.0  ;;  %v3002_v5 = vpack.c.bf16 %v4410_v49, %v4410_v49 }
 0xd35   : > { %2997 = vadd.xlane.f32.xlu1 %v2996_v50 }
 0xd6a   : > { %v4352_v51 = vpop.trf.xlu0 }
 0xd6b   : > { %v4356_v52 = vunpack.i.h.bf16 %v4352_v51  ;;  %v4353_v53 = vunpack.i.l.bf16 %v4352_v51 }
 0xd6d   : > { %v3003_v54 = vpack.c.bf16 %v4353_v53, %v4353_v53  ;;  %v3004_v55 = vpack.c.bf16 %v4356_v52, %v4356_v52 }
 0xd6e   : > { %v4359_v56 = vpop.trf.xlu1 }
 0xd6f   : > { %v3011_v57 = vsel %vm1465_vm2, %v3003_v54, 0  ;;  %v3057_v58 = vsel %vm1465_vm2, %v3004_v55, 0  ;;  %v4363_v59 = vunpack.i.h.bf16 %v4359_v56  ;;  %v4360_v60 = vunpack.i.l.bf16 %v4359_v56 }
 0xd70   : > { %4095 = vmatpush3.bf16.msra.mxu1 %v3011_v57  ;;  %4101 = vmatpush3.bf16.msra.mxu0 %v3057_v58 }
 0xd71   : > { %4106 = vmatprep.subr.bf16.mxu1 %v4924_v8  ;;  %4112 = vmatprep.subr.bf16.mxu0 %v4924_v8  ;;  %v3006_v63 = vpack.c.bf16 %v4363_v59, %v4363_v59  ;;  %v3005_v1 = vpack.c.bf16 %v4360_v60, %v4360_v60  ;;  %v4376_v59 = vld [vmem:[%s5565_s22] sm:$0xff]  }
 0xd73   : > { %4097 = vmatmul.mubr.msk.bf16.vlgmr.msra.gmra.mxu1 %vm1461_vm3, %v2999_v61  ;;  %4103 = vmatmul.mubr.msk.bf16.vlgmr.msra.gmra.mxu0 %vm1461_vm3, %v3000_v62  ;;  %v3149_v2 = vsel %vm1465_vm2, %v3006_v63, 0  ;;  %v3103_v3 = vsel %vm1465_vm2, %v3005_v1, 0  ;;  %v3912_v63 = vld [vmem:[#allocation23] ss:$0 sm:$0xff] }
 0xd74   : > { %4113 = vmatpush3.bf16.msra.mxu0 %v3149_v2  ;;  %4108 = vmatprep.mubr.msk.bf16.mxu1 %vm4925_vm1, %v4924_v8  ;;  %v3913_v2 = vld [vmem:[#allocation25] ss:$0 sm:$0xff] }
 0xd75   : > { %4107 = vmatpush3.bf16.msra.mxu1 %v3103_v3  ;;  %4114 = vmatprep.mubr.msk.bf16.mxu0 %vm4925_vm1, %v4924_v8 }
 0xd76   : > { %4118 = vmatprep.subr.bf16.mxu1 %v4924_v8  ;;  %4124 = vmatprep.subr.bf16.mxu0 %v4924_v8 }
 0xd7b   : > { %4109 = vmatmul.mubr.msk.bf16.vlgmr.msra.gmra.mxu1 %vm1461_vm3, %v3001_v4  ;;  %4115 = vmatmul.mubr.msk.bf16.vlgmr.msra.gmra.mxu0 %vm1461_vm3, %v3002_v5 }
 0xd7c   : > { %4120 = vmatprep.mubr.msk.bf16.mxu1 %vm4925_vm1, %v4924_v8  ;;  %4126 = vmatprep.mubr.msk.bf16.mxu0 %vm4925_vm1, %v4924_v8 }
 0xd7d   : > { %4119 = vmatpush3.bf16.msra.mxu1 %v4375_v37  ;;  %4125 = vmatpush3.bf16.msra.mxu0 %v4376_v59 }
 0xd7e   : > { %4130 = vmatprep.subr.bf16.mxu1 %v4924_v8 }
 0xda2   : > { %v2989_v6 = vpop.xlane.xlu1 %2988 }
 0xda3   : > { %4411 = vrcp.f32 %v2989_v6  ;;  %v4377_v6 = vld [vmem:[%s5567_s24 + $0x8] sm:$0xff]  }
 0xda4   : > { %v2992_v7 = vpop.xlane.xlu0 %2991 }
 0xda5   : > { %4413 = vrcp.f32 %v2992_v7  ;;  %v4378_v7 = vld [vmem:[%s5567_s24] sm:$0xff]  }
 0xda6   : > { %v2995_v9 = vpop.xlane.xlu1 %2994 }
 0xda7   : > { %4415 = vrcp.f32 %v2995_v9  ;;  %v3914_v9 = vld [vmem:[%s5566_s23] ss:$0 sm:$0xff] }
 0xdb0   : > { %v4412_v11 = vpop.eup %4411 }
 0xdb2   : > { %v4414_v12 = vpop.eup %4413 }
 0xdb4   : > { %v4416_v23 = vpop.eup %4415 }
 0xdbe   : > { %v2998_v10 = vpop.xlane.xlu1 %2997 }
 0xdbf   : > { %4417 = vrcp.f32 %v2998_v10 }
 0xdcc   : > { %v4418_v31 = vpop.eup %4417 }
 0xe33   : > { %v3047_v13 = vpop.f32.mrf.mxu1  ;;  %v3093_v14 = vpop.f32.mrf.mxu0 }
 0xe34   : > { %v3195_v15 = vmul.f32 %v4412_v11, %v3047_v13  ;;  %v3196_v16 = vmul.f32 %v4414_v12, %v3093_v14 }
 0xe35   : > { %v4098_v17 = vpop.f32.mrf.mxu1  ;;  %v4104_v18 = vpop.f32.mrf.mxu0 }
 0xe36   : > { %3199 = vxpose.xlu1.b32.start.end [1/1] (short) (narrow) %v3195_v15, 8  ;;  %3231 = vxpose.xlu0.b32.start.end [1/1] (short) (narrow) %v3196_v16, 8 }
 0xe37   : > { %v3050_v19 = vpop.f32.mrf.mxu1  ;;  %v3096_v20 = vpop.f32.mrf.mxu0 }
 0xe39   : > { %v4099_v21 = vpop.f32.mrf.mxu1  ;;  %v4105_v22 = vpop.f32.mrf.mxu0 }
 0xe3b   : > { %v3139_v25 = vpop.f32.mrf.mxu1  ;;  %v3185_v26 = vpop.f32.mrf.mxu0 }
 0xe3c   : > { %v3197_v27 = vmul.f32 %v4416_v23, %v3139_v25  ;;  %v3198_v34 = vmul.f32 %v4418_v31, %v3185_v26  ;;  %v3917_v25 = vld [vmem:[%s5568_s25] ss:$0 sm:$0xff] }
 0xe3d   : > { %v4110_v28 = vpop.f32.mrf.mxu1  ;;  %v4116_v29 = vpop.f32.mrf.mxu0 }
 0xe3e   : > { %3263 = vxpose.xlu1.b32.start.end [1/1] (short) (narrow) %v3197_v27, 8 }
 0xe3f   : > { %v3142_v32 = vpop.f32.mrf.mxu1  ;;  %v3188_v33 = vpop.f32.mrf.mxu0 }
 0xe40   : > { %v3890_v33 = vld [vmem:[#allocation16] ss:$0 sm:$0xff] }
 0xe41   : > { %v4111_v35 = vpop.f32.mrf.mxu1  ;;  %v4117_v36 = vpop.f32.mrf.mxu0 }
 0xe42   : > { %3295 = vxpose.xlu1.b32.start.end [1/1] (short) (narrow) %v3198_v34, 8  ;;  %v2295_v34 = vadd.f32 %v3890_v33, %v5422_v39 }
 0xe44   : > { %v2300_v35 = vadd.f32 %v2295_v34, %v5383_v30 }
 0xeb2   : > { %v3215_v38 = vpop.trf.xlu1  ;;  %v3247_v40 = vpop.trf.xlu0 }
 0xeb3   : > { %v3331_v41 = vcombine.low %v3215_v38, %v3247_v40 }
 0xeb5   : > { %3335 = vxpose.xlu0.b32.start [1/2] (short) (narrow) %v3331_v41, 8 }
 0xeba   : > { %v3279_v42 = vpop.trf.xlu1 }
 0xebe   : > { %v3311_v0 = vpop.trf.xlu1 }
 0xebf   : > { %v3332_v43 = vcombine.low %v3279_v42, %v3311_v0 }
 0xec1   : > { %3336 = vxpose.xlu0.b32.end [2/2] (short) (narrow) %v3332_v43, 8 }
 0xf39   : > { %v3351_v44 = vpop.trf.xlu0 }
 0xf3a   : > { %v3367_v45 = vpack.c.bf16 %v3351_v44, %v3351_v44 }
 0xf3c   : > { %4121 = vmatmul.mubr.msk.bf16.vlgmr.msra.gmra.mxu1 %vm2304_vm4, %v3367_v45 }
 0xf3d   : > { %4134 = vmatprep.mubr.msk.bf16.mxu1 %vm4925_vm1, %v4924_v8  ;;  %4131 = vmatpush3.bf16.msra.mxu1 %v4377_v6 }
 0xf3e   : > { %4132 = vmatprep.subr.bf16.mxu1 %v4924_v8 }
 0xf41   : > { %4133 = vmatpush3.bf16.msra.mxu1 %v4378_v7 }
 0xffc   : > { %v3420_v47 = vpop.f32.mrf.mxu1 }
 0xffd   : > { %v3421_v48 = vadd.f32 %v3909_v46, %v3420_v47 }
 0xffe   : > { %v4122_v49 = vpop.f32.mrf.mxu1 }
 0xfff   : > { %v3426_v50 = vadd.f32 %v3421_v48, %v5378_v24 }
0x1000   : > { %v3423_v51 = vpop.f32.mrf.mxu1 }
0x1001   : > { %v3429_v52 = vsel %vm2304_vm4, %v3426_v50, 0.0 }
0x1002   : > { %3430 = vadd.xlane.f32.xlu1 %v3429_v52  ;;  %v4123_v53 = vpop.f32.mrf.mxu1 }
0x108b   : > { %v3431_v54 = vpop.xlane.xlu1 %3430 }
0x108c   : > { %v3432_v55 = vmul.f32 0.0625, %v3431_v54 }
0x108e   : > { %v3433_v56 = vsub.f32 %v3426_v50, %v3432_v55 }
0x1090   : > { %v3434_v57 = vmul.f32 %v3433_v56, %v3433_v56 }
0x1092   : > { %v3435_v58 = vsel %vm2304_vm4, %v3434_v57, 0.0 }
0x1093   : > { %3436 = vadd.xlane.f32.xlu0 %v3435_v58 }
0x111c   : > { %v3437_v60 = vpop.xlane.xlu0 %3436 }
0x111d   : > { %v3438_v61 = vmul.f32 0.0625, %v3437_v60 }
0x111f   : > { %v3439_v24 = vadd.f32 1e-05, %v3438_v61 }
0x1121   : > { %4419 = vrsqrt.f32 %v3439_v24 }
0x112e   : > { %v4420_v62 = vpop.eup %4419 }
0x112f   : > { %v3441_v1 = vmul.f32 %v4420_v62, %v3433_v56 }
0x1131   : > { %v3448_v3 = vmul.f32 %v3912_v63, %v3441_v1 }
0x1133   : > { %v3455_v4 = vadd.f32 %v3913_v2, %v3448_v3 }
0x1135   : > { %v3456_v5 = vpack.c.bf16 %v3455_v4, %v3455_v4 }
0x1137   : > { %4127 = vmatmul.mubr.msk.bf16.vlgmr.msra.gmra.mxu0 %vm2304_vm4, %v3456_v5 }
0x11f7   : > { %v3509_v10 = vpop.f32.mrf.mxu0 }
0x11f8   : > { %v3510_v11 = vadd.f32 %v3914_v9, %v3509_v10 }
0x11f9   : > { %v4128_v12 = vpop.f32.mrf.mxu0 }
0x11fa   : > { %v3516_v13 = vmul.f32 0.044715, %v3510_v11  ;;  %v3515_v21 = vmul.f32 0.5, %v3510_v11 }
0x11fb   : > { %v3512_v14 = vpop.f32.mrf.mxu0 }
0x11fc   : > { %v3517_v15 = vmul.f32 %v3516_v13, %v3510_v11 }
0x11fd   : > { %v4129_v16 = vpop.f32.mrf.mxu0 }
0x11fe   : > { %v3518_v17 = vmul.f32 %v3517_v15, %v3510_v11 }
0x1200   : > { %v3519_v18 = vadd.f32 %v3518_v17, %v3510_v11 }
0x1202   : > { %v3520_v19 = vmul.f32 0.7978846, %v3519_v18 }
0x1204   : > { %4421 = vtanh.f32 %v3520_v19 }
0x1211   : > { %v4422_v20 = vpop.eup %4421 }
0x1212   : > { %v3522_v8 = vadd.f32 1.0, %v4422_v20 }
0x1214   : > { %v3523_v22 = vmul.f32 %v3522_v8, %v3515_v21 }
0x1216   : > { %v3524_v23 = vpack.c.bf16 %v3523_v22, %v3523_v22 }
0x1218   : > { %4135 = vmatmul.mubr.msk.bf16.vlgmr.msra.gmra.mxu1 %vm998_vm0, %v3524_v23 }
0x12d8   : > { %v3585_v26 = vpop.f32.mrf.mxu1 }
0x12d9   : > { %v3586_v27 = vadd.f32 %v3917_v25, %v3585_v26 }
0x12da   : > { %v4136_v28 = vpop.f32.mrf.mxu1 }
0x12db   : > { %v3591_v29 = vadd.f32 %v3586_v27, %v3426_v50 }
0x12dc   : > { %v3588_v31 = vpop.f32.mrf.mxu1 }
0x12dd   : > { %3593 = vrot.lane.b32.xlu1 %v3591_v29, %s4929_s26  ;;  %s4817_s26 = sshll.u32 %s4930_s8, 4  ;;  %s4818_s26 = int_to_ptr.vmem [resolvable:$false] %s4817_s26 }
0x12de   : > { %v4137_v32 = vpop.f32.mrf.mxu1  ;;  %s4819_s27 = scalar_lea.vmem %s4818_s26, 256  ;;  %p4820_p9 = scmp.lt.s32.totalorder %s3614_s4, %s4818_s26 }
0x12df   : > { %p4821_p3 = scmp.lt.s32.totalorder %s4819_s27, %s4813_s7 }
0x12e1   : > { %p4822_p5 = por %p4821_p3, %p4820_p9 }
0x12e3   : > { %p4823_p6 = pnand %p4822_p5, %p4816_p2 }
0x134f   : > { %v3594_v36 = vpop.permute.xlu1 %3593 }
0x1350   : > { %v3596_v37 = vsel %vm998_vm0, %v2300_v35, %v3594_v36 }
0x1351   : > { %3598 = vst.msk [vmem:[%s985_s30] sm:$0xff] %vm3597_vm8, %v3596_v37 }
0x1352   : > { %4826 = shalt.err (!%p4823_p6)
}
0x1353   : > { %s4827_s10 = scalar_lea.hbm %s5507_s6, 128  ;;  %s4831_s11 = scalar_lea.hbm %s5640_s2, 256 }
0x1354   : > { %p4828_p10 = scmp.ne.s32.totalorder %s5507_s6, %s4827_s10  ;;  %p4832_p8 = scmp.lt.s32.totalorder %s5507_s6, %s5640_s2 }
0x1355   : > { %p4833_p13 = scmp.lt.s32.totalorder %s4831_s11, %s4827_s10 }
0x1356   : > { %p4829_p4 = pnand %p4828_p10, %p5641_p1 }
0x1357   : > { %p4834_p11 = por %p4833_p13, %p4832_p8 }
0x1358   : > { %p4830_p7 = pneg %p4829_p4 }
0x135a   : > { %p4835_p0 = pnand %p4834_p11, %p4830_p7 }
0x135c   : > { %4838 = shalt.err (!%p4835_p0)
}
0x135d   : > { %4198 = dma.vmem_to_hbm [thread:$0]  (%p5641_p1), %s3614_s4, 128, %s5507_s6, %s3600_s0  }
0x135e PF: > { %s5642_s7 = sld [smem:[#allocation38_spill]] }
0x135f   : > { %s5643_s26 = sld [smem:[#allocation36_spill]] }
0x1360   : > { %s5644_s27 = sld [smem:[#allocation42_spill]] }
0x1364   : > { %p4280_p12 = scmp.ge.s32.totalorder %s5642_s7, 2 }
0x1365   : > { %s3625_s5 = sand.u32 1, %s5643_s26  }
0x1366   : > { %p5645_p2 = scmp.ne.s32.totalorder %s5644_s27, 0  ;;  %s3626_s28 = scalar_lea.sflag [#allocation4], %s3625_s5 }
0x1368   : > { %p4247_p9 = pnand %p4280_p12, %p5645_p2 }
0x136a   : > { %p4248_p3 = pneg %p4247_p9 }
0x136c   : > { %4888 = dma.done.wait (%p4248_p3), %s3626_s28, 128  }
0x136d   : > { %4890 = vsyncadd (%p4248_p3), %s3626_s28, 4294967168  ;;  %s5646_s28 = sld [smem:[#allocation39_spill]]  ;;  %s5649_s27 = smov %s4897_s3 }
0x136e   : > { %s5647_s10 = sld [smem:[#allocation37_spill]] }
0x136f   : > { %s5648_s7 = sld [smem:[#allocation40_spill]] }
0x1373   : > { %p44_p5 = scmp.ge.s32.totalorder %s5646_s28, 4  }
0x1374   : > { %s5650_s3 = smov %s5647_s10 }
0x1375   :  { %46 = sbr.rel (!%p44_p5) target bundleno = 25 (0x19), region = 223 }
0x137a   :  { %3631 = vsyncpa [#allocation3], 1 }
0x137b   :  { %3633 = vsyncpa [#allocation3 + $0x1], 1 }
0x137c   :  { %3634 = vsyncpa [#allocation6], 1 }
0x137d   :  { %3635 = vsyncpa [#allocation9], 1 }
0x137e   :  { %3636 = vsyncpa [#allocation12], 1 }
0x137f   :  { %3637 = vsyncpa [#allocation15], 1 }
0x1380   :  { %3638 = vsyncpa [#allocation18], 1 }
0x1381   :  { %3639 = vsyncpa [#allocation21], 1 }
0x1382   :  { %3640 = vsyncpa [#allocation24], 1 }
0x1383   :  { %3641 = vsyncpa [#allocation4], 1 }
0x1384   :  { %3643 = vsyncpa [#allocation4 + $0x1], 1 }

// kernel: tpu_custom_call.1
= control target key start
LH: loop header
LB: loop body
LE: loop exit
PB: predicated region body
PF: predicated region fallthrough
CT: control target
= control target key end

     0   :  { %s5543_s0 = inlined_call_operand.vmem [shape: f32[2,8,32], index: 0, kind: input, shape index: {}]   ;;  %s5544_s1 = inlined_call_operand.vmem [shape: f32[2,8,16], index: 1, kind: input, shape index: {}]   ;;  %s5545_s2 = inlined_call_operand.hbm [shape: f32[1,32], index: 2, kind: input, shape index: {}]   ;;  %s5546_s3 = inlined_call_operand.hbm [shape: f32[1,32], index: 3, kind: input, shape index: {}]   ;;  %s5547_s4 = inlined_call_operand.vmem [shape: bf16[32,96], index: 4, kind: input, shape index: {}]   ;;  %s5548_s5 = inlined_call_operand.hbm [shape: f32[1,96], index: 5, kind: input, shape index: {}]   ;;  %s5549_s6 = inlined_call_operand.vmem [shape: bf16[32,32], index: 6, kind: input, shape index: {}]   ;;  %s5550_s7 = inlined_call_operand.hbm [shape: f32[1,32], index: 7, kind: input, shape index: {}]   ;;  %s5551_s8 = inlined_call_operand.hbm [shape: f32[1,32], index: 8, kind: input, shape index: {}]   ;;  %s5552_s9 = inlined_call_operand.hbm [shape: f32[1,32], index: 9, kind: input, shape index: {}]   ;;  %s5553_s10 = inlined_call_operand.hbm [shape: bf16[32,64], index: 10, kind: input, shape index: {}]   ;;  %s5554_s11 = inlined_call_operand.hbm [shape: f32[1,64], index: 11, kind: input, shape index: {}]   ;;  %s5555_s12 = inlined_call_operand.vmem [shape: bf16[64,32], index: 12, kind: input, shape index: {}]   ;;  %s5556_s13 = inlined_call_operand.hbm [shape: f32[1,32], index: 13, kind: input, shape index: {}]   ;;  %s5557_s14 = inlined_call_operand.hbm [shape: f32[1,16], index: 14, kind: input, shape index: {}]   ;;  %s5558_s15 = inlined_call_operand.hbm [shape: f32[1,16], index: 15, kind: input, shape index: {}]   ;;  %s5559_s16 = inlined_call_operand.vmem [shape: bf16[16,48], index: 16, kind: input, shape index: {}]   ;;  %s5560_s17 = inlined_call_operand.hbm [shape: f32[1,48], index: 17, kind: input, shape index: {}]   ;;  %s5561_s18 = inlined_call_operand.vmem [shape: bf16[16,16], index: 18, kind: input, shape index: {}]   ;;  %s5562_s19 = inlined_call_operand.hbm [shape: f32[1,16], index: 19, kind: input, shape index: {}]   ;;  %s5563_s20 = inlined_call_operand.hbm [shape: f32[1,16], index: 20, kind: input, shape index: {}]   ;;  %s5564_s21 = inlined_call_operand.hbm [shape: f32[1,16], index: 21, kind: input, shape index: {}]   ;;  %s5565_s22 = inlined_call_operand.vmem [shape: bf16[16,32], index: 22, kind: input, shape index: {}]   ;;  %s5566_s23 = inlined_call_operand.vmem [shape: f32[1,32], index: 23, kind: input, shape index: {}]   ;;  %s5567_s24 = inlined_call_operand.vmem [shape: bf16[32,16], index: 24, kind: input, shape index: {}]   ;;  %s5568_s25 = inlined_call_operand.vmem [shape: f32[1,16], index: 25, kind: input, shape index: {}]   ;;  %s5569_s26 = inlined_call_operand.hbm [shape: f32[2,8,48], index: 26, kind: output, shape index: {}]  }
   0x1   :  { %5585 = sst [smem:[#allocation43_spill]] %s5543_s0 }
   0x2   :  { %5586 = sst [smem:[#allocation44_spill]] %s5544_s1 }
   0x3   :  { %5587 = sst [smem:[#allocation45_spill]] %s5545_s2 }
   0x4   :  { %5588 = sst [smem:[#allocation46_spill]] %s5546_s3 }
   0x5   :  { %5589 = sst [smem:[#allocation47_spill]] %s5547_s4 }
   0x6   :  { %5590 = sst [smem:[#allocation48_spill]] %s5548_s5 }
   0x7   :  { %5591 = sst [smem:[#allocation49_spill]] %s5549_s6 }
   0x8   :  { %5592 = sst [smem:[#allocation50_spill]] %s5550_s7 }
   0x9   :  { %5593 = sst [smem:[#allocation51_spill]] %s5551_s8 }
   0xa   :  { %5594 = sst [smem:[#allocation52_spill]] %s5552_s9 }
   0xb   :  { %5595 = sst [smem:[#allocation53_spill]] %s5553_s10 }
   0xc   :  { %5596 = sst [smem:[#allocation54_spill]] %s5554_s11 }
   0xd   :  { %5597 = sst [smem:[#allocation55_spill]] %s5569_s26 }
   0xe   :  { %31 = vsyncpa [#allocation3], 0 }
   0xf   :  { %32 = vsyncpa [#allocation6], 0 }
  0x10   :  { %33 = vsyncpa [#allocation9], 0 }
  0x11   :  { %34 = vsyncpa [#allocation12], 0 }
  0x12   :  { %35 = vsyncpa [#allocation15], 0 }
  0x13   :  { %36 = vsyncpa [#allocation18], 0 }
  0x14   :  { %37 = vsyncpa [#allocation21], 0 }
  0x15   :  { %38 = vsyncpa [#allocation24], 0 }
  0x16   :  { %39 = vsyncpa [#allocation4], 0 }
  0x17   :  { %41 = vsyncpa [#allocation4 + $0x1], 0  ;;  %s5066_s27 = smov 0   ;;  %s5068_s3 = smov 0  }
  0x18   :  { %s5070_s7 = smov 0   ;;  %s5072_s28 = smov 0  }
  0x19 LB: > { %5598 = sst [smem:[#allocation36_spill]] %s4893_s27  ;;  %s5087_s8 = sadd.s32 4294967295, %s4905_s28   ;;  %s4905_s28 = sphi %s5072_s28, %s5646_s28   ;;  %s4901_s7 = sphi %s5070_s7, %s5648_s7   ;;  %s4897_s3 = sphi %s5068_s3, %s5650_s3   ;;  %s4893_s27 = sphi %s5066_s27, %s5649_s27  }
  0x1a   : > { %5599 = sst [smem:[#allocation37_spill]] %s4901_s7  ;;  %s3829_s4 = sadd.s32 4294967294, %s4905_s28  }
  0x1b   : > { %5600 = sst [smem:[#allocation38_spill]] %s4905_s28  ;;  %s5091_s29 = sadd.s32 1, %s4905_s28  }
  0x1c   : > { %5601 = sst [smem:[#allocation39_spill]] %s5091_s29  ;;  %s610_s0 = sadd.s32 1, %s4901_s7 }
  0x1d   : > { %s607_s9 = ssub.s32 %s4905_s28, %s5091_s29  ;;  %p620_p0 = scmp.ne.s32.totalorder %s4901_s7, %s4897_s3 }
  0x1e   : > { %p608_p1 = scmp.eq.s32.totalorder %s607_s9, 0  ;;  %p621_p2 = scmp.eq.s32.totalorder %s5087_s8, 1 }
  0x1f   : > { %p626_p3 = scmp.ne.s32.totalorder %s4897_s3, %s4893_s27  ;;  %p627_p4 = scmp.eq.s32.totalorder %s3829_s4, 1 }
  0x20   : > { %s5102_s30 = scalar_select %p608_p1, %s4901_s7, %s610_s0  }
  0x21   : > { %p5104_p5 = por %p621_p2, %p620_p0  ;;  %p5108_p6 = por %p627_p4, %p626_p3 }
  0x22   : > { %5602 = sst [smem:[#allocation40_spill]] %s5102_s30  ;;  %p3830_p7 = scmp.ge.s32.totalorder %s4905_s28, 1 }
  0x23   : > { %s5603_s2 = scalar_select %p5104_p5, 1, 0 }
  0x24   : > { %s5605_s5 = scalar_select %p5108_p6, 1, 0 }
  0x25   : > { %5604 = sst [smem:[#allocation41_spill]] %s5603_s2  ;;  %p634_p8 = scmp.lt.s32.totalorder %s4905_s28, 3 }
  0x26   : > { %5606 = sst [smem:[#allocation42_spill]] %s5605_s5  ;;  %p5578_p9 = scmp.eq.s32.totalorder %s5087_s8, 0 }
  0x27   : > { %p5115_p10 = pnand %p3830_p7, %p634_p8  ;;  %s4907_s6 = smov [#allocation5]  }
  0x28   : > { %s658_s1 = sshll.u32 %s4907_s6, 4  ;;  %s4908_s4 = smov [#allocation8]   ;;  %s659_s1 = int_to_ptr.vmem [resolvable:$true] %s658_s1 }
  0x29   : > { %s5607_s10 = scalar_select %p5115_p10, 1, 0 }
  0x2a   : > { %p4200_p11 = pneg %p5115_p10  ;;  %s686_s0 = sshll.u32 %s4908_s4, 4  ;;  %s687_s0 = int_to_ptr.vmem [resolvable:$true] %s686_s0 }
  0x2b   : > { %s4909_s30 = smov [#allocation11]   ;;  %s4434_s6 = scalar_lea.vmem %s659_s1, 16 }
  0x2c   : > { %p5123_p12 = pnand %p5578_p9, %p4200_p11  ;;  %s708_s7 = sshll.u32 %s4909_s30, 4  ;;  %s5127_s7 = int_to_ptr.vmem [resolvable:$true] %s708_s7 }
  0x2d   : > { %p4435_p0 = scmp.ne.s32.totalorder %s659_s1, %s4434_s6  ;;  %s4441_s4 = scalar_lea.vmem %s659_s1, 32 }
  0x2e   : > { %p5131_p13 = pneg %p5123_p12  ;;  %p4442_p3 = scmp.lt.s32.totalorder %s659_s1, %s659_s1 }
  0x2f   : > { %p4443_p4 = scmp.lt.s32.totalorder %s4441_s4, %s4434_s6 }
  0x30   : > { %p4437_p1 = pnand %p4435_p0, %p5131_p13 }
  0x31   : > { %p4444_p7 = por %p4443_p4, %p4442_p3 }
  0x32   : > { %p4438_p2 = pneg %p4437_p1 }
  0x34   : > { %p4445_p8 = pnand %p4444_p7, %p4438_p2 }
  0x36   : > { %4448 = shalt.err (!%p4445_p8)
}
  0x37   : > { %s5610_s27 = sld [smem:[#allocation46_spill]]  ;;  %s4460_s28 = scalar_lea.vmem %s687_s0, 16 }
  0x38   : > { %p4461_p11 = scmp.ne.s32.totalorder %s687_s0, %s4460_s28  ;;  %s4467_s26 = scalar_lea.vmem %s687_s0, 32 }
  0x39   : > { %p4468_p0 = scmp.lt.s32.totalorder %s687_s0, %s687_s0  ;;  %p4469_p1 = scmp.lt.s32.totalorder %s4467_s26, %s4460_s28 }
  0x3a   : > { %p4463_p9 = pnand %p4461_p11, %p5131_p13 }
  0x3b   : > { %p4470_p5 = por %p4469_p1, %p4468_p0 }
  0x3c   : > { %p4464_p6 = pneg %p4463_p9 }
  0x3d   : > { %4206 = dma.hbm_to_vmem [thread:$0]  (!%p5123_p12), %s5610_s27, 16, %s659_s1, [#allocation6]  }
  0x3e   : > { %p4471_p10 = pnand %p4470_p5, %p4464_p6 }
  0x40   : > { %4474 = shalt.err (!%p4471_p10)
}
  0x41   : > { %s5611_s2 = sld [smem:[#allocation50_spill]]  ;;  %s4486_s27 = scalar_lea.vmem %s5127_s7, 16 }
  0x42   : > { %p4487_p2 = scmp.ne.s32.totalorder %s5127_s7, %s4486_s27  ;;  %s4493_s26 = scalar_lea.vmem %s5127_s7, 32 }
  0x43   : > { %p4494_p5 = scmp.lt.s32.totalorder %s5127_s7, %s5127_s7  ;;  %p4495_p6 = scmp.lt.s32.totalorder %s4493_s26, %s4486_s27 }
  0x44   : > { %p4489_p9 = pnand %p4487_p2, %p5131_p13 }
  0x45   : > { %p4496_p10 = por %p4495_p6, %p4494_p5 }
  0x46   : > { %p4490_p3 = pneg %p4489_p9 }
  0x47   : > { %4212 = dma.hbm_to_vmem [thread:$0]  (!%p5123_p12), %s5611_s2, 16, %s687_s0, [#allocation9]  }
  0x48   : > { %p4497_p4 = pnand %p4496_p10, %p4490_p3 }
  0x4a   : > { %4500 = shalt.err (!%p4497_p4)
}
  0x4b   : > { %s5612_s1 = sld [smem:[#allocation52_spill]]  ;;  %s4910_s2 = smov [#allocation14]  }
  0x4c   : > { %s732_s0 = sshll.u32 %s4910_s2, 4  ;;  %s4911_s30 = smov [#allocation17]   ;;  %s733_s0 = int_to_ptr.vmem [resolvable:$true] %s732_s0 }
  0x4d   : > { %s757_s6 = sshll.u32 %s4911_s30, 4  ;;  %s4512_s4 = scalar_lea.vmem %s733_s0, 16  ;;  %s758_s6 = int_to_ptr.vmem [resolvable:$true] %s757_s6 }
  0x4e   : > { %p4513_p7 = scmp.ne.s32.totalorder %s733_s0, %s4512_s4  ;;  %s4519_s27 = scalar_lea.vmem %s733_s0, 32 }
  0x4f   : > { %p4520_p0 = scmp.lt.s32.totalorder %s733_s0, %s733_s0  ;;  %p4521_p1 = scmp.lt.s32.totalorder %s4519_s27, %s4512_s4 }
  0x50   : > { %p4515_p8 = pnand %p4513_p7, %p5131_p13 }
  0x51   : > { %4218 = dma.hbm_to_vmem [thread:$0]  (!%p5123_p12), %s5612_s1, 16, %s5127_s7, [#allocation12]  }
  0x52   : > { %p4516_p11 = pneg %p4515_p8  ;;  %p4522_p2 = por %p4521_p1, %p4520_p0 }
  0x54   : > { %p4523_p9 = pnand %p4522_p2, %p4516_p11 }
  0x56   : > { %4526 = shalt.err (!%p4523_p9)
}
  0x57   : > { %s5613_s11 = sld [smem:[#allocation54_spill]]  ;;  %s4538_s28 = scalar_lea.vmem %s758_s6, 16 }
  0x58   : > { %p4539_p3 = scmp.ne.s32.totalorder %s758_s6, %s4538_s28  ;;  %s4545_s5 = scalar_lea.vmem %s758_s6, 32 }
  0x59   : > { %p4546_p10 = scmp.lt.s32.totalorder %s758_s6, %s758_s6  ;;  %p4547_p4 = scmp.lt.s32.totalorder %s4545_s5, %s4538_s28 }
  0x5a   : > { %p4541_p5 = pnand %p4539_p3, %p5131_p13 }
  0x5b   : > { %p4548_p7 = por %p4547_p4, %p4546_p10 }
  0x5c   : > { %p4542_p6 = pneg %p4541_p5 }
  0x5d   : > { %4224 = dma.hbm_to_vmem [thread:$0]  (!%p5123_p12), %s5613_s11, 16, %s733_s0, [#allocation15]  }
  0x5e   : > { %p4549_p8 = pnand %p4548_p7, %p4542_p6 }
  0x60   : > { %4552 = shalt.err (!%p4549_p8)
}
  0x61   : > { %4230 = dma.hbm_to_vmem [thread:$0]  (!%p5123_p12), %s5557_s14, 16, %s758_s6, [#allocation18]  }
  0x62   : > { %s4912_s0 = smov [#allocation20]   ;;  %s4913_s4 = smov [#allocation23]  }
  0x63   : > { %s782_s30 = sshll.u32 %s4912_s0, 4  ;;  %s807_s27 = sshll.u32 %s4913_s4, 4  ;;  %s783_s30 = int_to_ptr.vmem [resolvable:$true] %s782_s30  ;;  %s808_s27 = int_to_ptr.vmem [resolvable:$true] %s807_s27 }
  0x64   : > { %s4564_s26 = scalar_lea.vmem %s783_s30, 16  ;;  %s4571_s7 = scalar_lea.vmem %s783_s30, 32 }
  0x65   : > { %p4565_p11 = scmp.ne.s32.totalorder %s783_s30, %s4564_s26  ;;  %p4572_p2 = scmp.lt.s32.totalorder %s783_s30, %s783_s30 }
  0x66   : > { %p4573_p9 = scmp.lt.s32.totalorder %s4571_s7, %s4564_s26 }
  0x67   : > { %p4567_p0 = pnand %p4565_p11, %p5131_p13 }
  0x68   : > { %p4574_p3 = por %p4573_p9, %p4572_p2 }
  0x69   : > { %p4568_p1 = pneg %p4567_p0 }
  0x6b   : > { %p4575_p5 = pnand %p4574_p3, %p4568_p1 }
  0x6d   : > { %4578 = shalt.err (!%p4575_p5)
}
  0x6e   : > { %4236 = dma.hbm_to_vmem [thread:$0]  (!%p5123_p12), %s5560_s17, 16, %s783_s30, [#allocation21]  }
  0x6f   : > { %s4590_s5 = scalar_lea.vmem %s808_s27, 16  ;;  %s4597_s1 = scalar_lea.vmem %s808_s27, 32 }
  0x70   : > { %p4591_p6 = scmp.ne.s32.totalorder %s808_s27, %s4590_s5  ;;  %p4598_p7 = scmp.lt.s32.totalorder %s808_s27, %s808_s27 }
  0x71   : > { %p4599_p8 = scmp.lt.s32.totalorder %s4597_s1, %s4590_s5 }
  0x72   : > { %p4593_p10 = pnand %p4591_p6, %p5131_p13 }
  0x73   : > { %p4600_p11 = por %p4599_p8, %p4598_p7 }
  0x74   : > { %p4594_p4 = pneg %p4593_p10 }
  0x76   : > { %p4601_p0 = pnand %p4600_p11, %p4594_p4 }
  0x78   : > { %4604 = shalt.err (!%p4601_p0)
}
  0x79   : > { %4242 = dma.hbm_to_vmem [thread:$0]  (!%p5123_p12), %s5563_s20, 16, %s808_s27, [#allocation24]  }
  0x7a   : > { %s4914_s30 = smov [#allocation2]   ;;  %s4915_s26 = smov [#allocation7]  }
  0x7b   : > { %s647_s4 = sshll.u32 %s4914_s30, 4  ;;  %s672_s7 = sshll.u32 %s4915_s26, 4  ;;  %s648_s4 = int_to_ptr.vmem [resolvable:$true] %s647_s4  ;;  %s673_s7 = int_to_ptr.vmem [resolvable:$true] %s672_s7 }
  0x7c   : > { %s4616_s28 = scalar_lea.vmem %s648_s4, 16  ;;  %s4623_s6 = scalar_lea.vmem %s648_s4, 32 }
  0x7d   : > { %p4617_p1 = scmp.ne.s32.totalorder %s648_s4, %s4616_s28  ;;  %p4624_p3 = scmp.lt.s32.totalorder %s648_s4, %s648_s4 }
  0x7e   : > { %p4625_p5 = scmp.lt.s32.totalorder %s4623_s6, %s4616_s28 }
  0x7f   : > { %p4619_p2 = pnand %p4617_p1, %p5131_p13 }
  0x80   : > { %p4626_p6 = por %p4625_p5, %p4624_p3 }
  0x81   : > { %p4620_p9 = pneg %p4619_p2 }
  0x83   : > { %p4627_p10 = pnand %p4626_p6, %p4620_p9 }
  0x85   : > { %4630 = shalt.err (!%p4627_p10)
}
  0x86   : > { %s5614_s1 = sld [smem:[#allocation45_spill]]  ;;  %s4642_s2 = scalar_lea.vmem %s673_s7, 16 }
  0x87   : > { %p4643_p4 = scmp.ne.s32.totalorder %s673_s7, %s4642_s2  ;;  %s4649_s0 = scalar_lea.vmem %s673_s7, 32 }
  0x88   : > { %p4650_p11 = scmp.lt.s32.totalorder %s673_s7, %s673_s7  ;;  %p4651_p0 = scmp.lt.s32.totalorder %s4649_s0, %s4642_s2 }
  0x89   : > { %p4645_p7 = pnand %p4643_p4, %p5131_p13 }
  0x8a   : > { %p4652_p1 = por %p4651_p0, %p4650_p11 }
  0x8b   : > { %p4646_p8 = pneg %p4645_p7 }
  0x8c   : > { %4203 = dma.hbm_to_vmem [thread:$0]  (!%p5123_p12), %s5614_s1, 16, %s648_s4, [#allocation3]  }
  0x8d   : > { %p4653_p2 = pnand %p4652_p1, %p4646_p8 }
  0x8f   : > { %4656 = shalt.err (!%p4653_p2)
}
  0x90   : > { %s5615_s28 = sld [smem:[#allocation48_spill]]  ;;  %s4916_s4 = smov [#allocation10]  }
  0x91   : > { %s697_s6 = sshll.u32 %s4916_s4, 4  ;;  %s4917_s5 = smov [#allocation13]   ;;  %s698_s6 = int_to_ptr.vmem [resolvable:$true] %s697_s6 }
  0x92   : > { %s718_s27 = sshll.u32 %s4917_s5, 4  ;;  %s4668_s1 = scalar_lea.vmem %s698_s6, 16  ;;  %s719_s27 = int_to_ptr.vmem [resolvable:$true] %s718_s27 }
  0x93   : > { %p4669_p9 = scmp.ne.s32.totalorder %s698_s6, %s4668_s1  ;;  %s4675_s2 = scalar_lea.vmem %s698_s6, 32 }
  0x94   : > { %p4676_p6 = scmp.lt.s32.totalorder %s698_s6, %s698_s6  ;;  %p4677_p10 = scmp.lt.s32.totalorder %s4675_s2, %s4668_s1 }
  0x95   : > { %p4671_p3 = pnand %p4669_p9, %p5131_p13 }
  0x96   : > { %4209 = dma.hbm_to_vmem [thread:$0]  (!%p5123_p12), %s5615_s28, 16, %s673_s7, [#allocation6]  }
  0x97   : > { %p4672_p5 = pneg %p4671_p3  ;;  %p4678_p4 = por %p4677_p10, %p4676_p6 }
  0x99   : > { %p4679_p7 = pnand %p4678_p4, %p4672_p5 }
  0x9b   : > { %4682 = shalt.err (!%p4679_p7)
}
  0x9c   : > { %s5616_s30 = sld [smem:[#allocation51_spill]]  ;;  %s4694_s26 = scalar_lea.vmem %s719_s27, 256 }
  0x9d   : > { %p4695_p8 = scmp.ne.s32.totalorder %s719_s27, %s4694_s26  ;;  %p4702_p1 = scmp.lt.s32.totalorder %s719_s27, %s719_s27 }
  0x9e   : > { %p4703_p2 = scmp.lt.s32.totalorder %s4694_s26, %s4694_s26 }
  0x9f   : > { %p4697_p11 = pnand %p4695_p8, %p5131_p13 }
  0xa0   : > { %p4704_p9 = por %p4703_p2, %p4702_p1 }
  0xa1   : > { %p4698_p0 = pneg %p4697_p11 }
  0xa2   : > { %4215 = dma.hbm_to_vmem [thread:$0]  (!%p5123_p12), %s5616_s30, 16, %s698_s6, [#allocation9]  }
  0xa3   : > { %p4705_p3 = pnand %p4704_p9, %p4698_p0 }
  0xa5   : > { %4708 = shalt.err (!%p4705_p3)
}
  0xa6   : > { %s4918_s28 = smov 64   ;;  %s4919_s4 = smov 4  }
  0xa7   : > { %s5617_s2 = sld [smem:[#allocation53_spill]]  ;;  %s4920_s6 = smov [#allocation16]  }
  0xa8   : > { %s746_s0 = sshll.u32 %s4920_s6, 4  ;;  %s4921_s7 = smov [#allocation19]   ;;  %s747_s0 = int_to_ptr.vmem [resolvable:$true] %s746_s0 }
  0xa9   : > { %s768_s30 = sshll.u32 %s4921_s7, 4  ;;  %s4720_s11 = scalar_lea.vmem %s747_s0, 16  ;;  %s769_s30 = int_to_ptr.vmem [resolvable:$true] %s768_s30 }
  0xaa   : > { %p4721_p5 = scmp.ne.s32.totalorder %s747_s0, %s4720_s11  ;;  %s4727_s26 = scalar_lea.vmem %s747_s0, 32 }
  0xab   : > { %p4728_p4 = scmp.lt.s32.totalorder %s747_s0, %s747_s0  ;;  %p4729_p7 = scmp.lt.s32.totalorder %s4727_s26, %s4720_s11 }
  0xac   : > { %p4723_p6 = pnand %p4721_p5, %p5131_p13 }
  0xad   : > { %4221 = dma.hbm_to_vmem [thread:$0]  (!%p5123_p12), %s5617_s2, 256, %s719_s27, [#allocation12], %s4918_s28, %s4918_s28, %s4919_s4  }
  0xae   : > { %p4724_p10 = pneg %p4723_p6  ;;  %p4730_p8 = por %p4729_p7, %p4728_p4 }
  0xb0   : > { %p4731_p11 = pnand %p4730_p8, %p4724_p10 }
  0xb2   : > { %4734 = shalt.err (!%p4731_p11)
}
  0xb3   : > { %4227 = dma.hbm_to_vmem [thread:$0]  (!%p5123_p12), %s5556_s13, 16, %s747_s0, [#allocation15]  }
  0xb4   : > { %s4746_s28 = scalar_lea.vmem %s769_s30, 16  ;;  %s4753_s4 = scalar_lea.vmem %s769_s30, 32 }
  0xb5   : > { %p4747_p0 = scmp.ne.s32.totalorder %s769_s30, %s4746_s28  ;;  %p4754_p9 = scmp.lt.s32.totalorder %s769_s30, %s769_s30 }
  0xb6   : > { %p4755_p3 = scmp.lt.s32.totalorder %s4753_s4, %s4746_s28 }
  0xb7   : > { %p4749_p1 = pnand %p4747_p0, %p5131_p13 }
  0xb8   : > { %p4756_p5 = por %p4755_p3, %p4754_p9 }
  0xb9   : > { %p4750_p2 = pneg %p4749_p1 }
  0xbb   : > { %p4757_p6 = pnand %p4756_p5, %p4750_p2 }
  0xbd   : > { %4760 = shalt.err (!%p4757_p6)
}
  0xbe   : > { %4233 = dma.hbm_to_vmem [thread:$0]  (!%p5123_p12), %s5558_s15, 16, %s769_s30, [#allocation18]  }
  0xbf   : > { %s4922_s2 = smov [#allocation22]   ;;  %s4923_s0 = smov [#allocation25]  }
  0xc0   : > { %s796_s6 = sshll.u32 %s4922_s2, 4  ;;  %s818_s7 = sshll.u32 %s4923_s0, 4  ;;  %s797_s6 = int_to_ptr.vmem [resolvable:$true] %s796_s6  ;;  %s819_s7 = int_to_ptr.vmem [resolvable:$true] %s818_s7 }
  0xc1   : > { %s4772_s26 = scalar_lea.vmem %s797_s6, 16  ;;  %s4779_s5 = scalar_lea.vmem %s797_s6, 32 }
  0xc2   : > { %p4773_p10 = scmp.ne.s32.totalorder %s797_s6, %s4772_s26  ;;  %p4780_p8 = scmp.lt.s32.totalorder %s797_s6, %s797_s6 }
  0xc3   : > { %p4781_p11 = scmp.lt.s32.totalorder %s4779_s5, %s4772_s26 }
  0xc4   : > { %p4775_p4 = pnand %p4773_p10, %p5131_p13 }
  0xc5   : > { %p4782_p0 = por %p4781_p11, %p4780_p8 }
  0xc6   : > { %p4776_p7 = pneg %p4775_p4 }
  0xc8   : > { %p4783_p1 = pnand %p4782_p0, %p4776_p7 }
  0xca   : > { %4786 = shalt.err (!%p4783_p1)
}
  0xcb   : > { %4239 = dma.hbm_to_vmem [thread:$0]  (!%p5123_p12), %s5562_s19, 16, %s797_s6, [#allocation21]  }
  0xcc   : > { %s4798_s28 = scalar_lea.vmem %s819_s7, 16  ;;  %s4805_s4 = scalar_lea.vmem %s819_s7, 32 }
  0xcd   : > { %p4799_p2 = scmp.ne.s32.totalorder %s819_s7, %s4798_s28  ;;  %p4806_p5 = scmp.lt.s32.totalorder %s819_s7, %s819_s7 }
  0xce   : > { %p4807_p6 = scmp.lt.s32.totalorder %s4805_s4, %s4798_s28 }
  0xcf   : > { %p4801_p9 = pnand %p4799_p2, %p5131_p13 }
  0xd0   : > { %p4808_p10 = por %p4807_p6, %p4806_p5 }
  0xd1   : > { %p4802_p3 = pneg %p4801_p9 }
  0xd3   : > { %p4809_p4 = pnand %p4808_p10, %p4802_p3 }
  0xd5   : > { %4812 = shalt.err (!%p4809_p4)
}
  0xd6   : > { %4245 = dma.hbm_to_vmem [thread:$0]  (!%p5123_p12), %s5564_s21, 16, %s819_s7, [#allocation24]  }
  0xd7   : > { %p5618_p7 = scmp.ne.s32.totalorder %s5607_s10, 0 }
  0xd8   : > { %p5619_p8 = scmp.eq.s32.totalorder (!%p5618_p7), %s5087_s8, 0 }
  0xd9   : > { %857 = sbr.rel (%p5618_p7) target bundleno = 4958 (0x135e), region = 124 }
  0xde   : > { %4856 = dma.done.wait (%p5619_p8), [#allocation3], 16   ;;  %p5620_p13 = pmov %p5619_p8 }
  0xdf   : > { %p5621_p11 = pmov %p5619_p8 }
  0xe0   : > { %4858 = vsyncadd (%p5620_p13), [#allocation3], 4294967280 }
  0xe1   : > { %4860 = dma.done.wait (%p5621_p11), [#allocation6], 32   ;;  %p5622_p0 = pmov %p5619_p8 }
  0xe3   : > { %4862 = vsyncadd (%p5622_p0), [#allocation6], 4294967264  ;;  %p5623_p1 = pmov %p5622_p0 }
  0xe4   : > { %p5624_p12 = pmov %p5622_p0 }
  0xe5   : > { %4864 = dma.done.wait (%p5623_p1), [#allocation9], 32  }
  0xe6   : > { %4866 = vsyncadd (%p5624_p12), [#allocation9], 4294967264  ;;  %p5625_p2 = pmov %p5622_p0 }
  0xe7   : > { %p5626_p9 = pmov %p5622_p0 }
  0xe8   : > { %4868 = dma.done.wait (%p5625_p2), [#allocation12], 272  }
  0xe9   : > { %4870 = vsyncadd (%p5626_p9), [#allocation12], 4294967024  ;;  %p5627_p3 = pmov %p5622_p0 }
  0xea   : > { %p5628_p5 = pmov %p5622_p0 }
  0xeb   : > { %4872 = dma.done.wait (%p5627_p3), [#allocation15], 32  }
  0xec   : > { %4874 = vsyncadd (%p5628_p5), [#allocation15], 4294967264  ;;  %p5629_p6 = pmov %p5622_p0 }
  0xed   : > { %p5630_p10 = pmov %p5622_p0 }
  0xee   : > { %4876 = dma.done.wait (%p5629_p6), [#allocation18], 32  }
  0xef   : > { %4878 = vsyncadd (%p5630_p10), [#allocation18], 4294967264  ;;  %p5631_p4 = pmov %p5622_p0 }
  0xf0   : > { %p5632_p7 = pmov %p5622_p0 }
  0xf1   : > { %4880 = dma.done.wait (%p5631_p4), [#allocation21], 32  }
  0xf2   : > { %4882 = vsyncadd (%p5632_p7), [#allocation21], 4294967264  ;;  %p5633_p8 = pmov %p5622_p0 }
  0xf3   : > { %p5634_p13 = pmov %p5622_p0 }
  0xf4   : > { %4884 = dma.done.wait (%p5633_p8), [#allocation24], 32  }
  0xf5   : > { %4886 = vsyncadd (%p5634_p13), [#allocation24], 4294967264  ;;  %p986_p11 = scmp.lt.s32.totalorder %s5087_s8, 1  ;;  %s5635_s6 = sld [smem:[#allocation43_spill]]  ;;  %vm998_vm0 = vcmask 261120   ;;  %v4924_v8 = vmov 0.0  }
  0xf6   : > { %s5636_s5 = sld [smem:[#allocation47_spill]]  ;;  %3980 = vmatprep.subr.bf16.mxu0 %v4924_v8  ;;  %vm4925_vm1 = vmmov 0   ;;  %3988 = vmatprep.subr.bf16.mxu1 %v4924_v8  ;;  %v3866_v14 = vld [vmem:[#allocation2] ss:$0 sm:$0xff]  ;;  %v3867_v16 = vld [vmem:[#allocation5] ss:$0 sm:$0xff] }
  0xf7   : > { %s5282_s29 = scalar_select %p986_p11, %s5087_s8, 1  ;;  %3984 = vmatprep.mubr.msk.bf16.mxu0 %vm4925_vm1, %v4924_v8  ;;  %3990 = vmatprep.mubr.msk.bf16.mxu1 %vm4925_vm1, %v4924_v8  ;;  %v3868_v20 = vld [vmem:[#allocation7] ss:$0 sm:$0xff]  ;;  %vm1465_vm2 = vcmask 1043456   ;;  %vm1461_vm3 = vcmask 64512   ;;  %vm2304_vm4 = vcmask 130048  }
  0xf8   : > { %s4926_s28 = smov 96   ;;  %s4927_s4 = smov 64   ;;  %vm2256_vm5 = vcmask 523264   ;;  %vm2781_vm6 = vcmask 1041408   ;;  %vm2777_vm7 = vcmask 31744   ;;  %vm3597_vm8 = vcmask 392192  }
  0xf9   : > { %s3864_s10 = sshll.u32 %s5282_s29, 3  ;;  %s5637_s9 = sld [smem:[#allocation49_spill]] }
  0xfa   : > { %s5638_s26 = sld [smem:[#allocation44_spill]] }
  0xfb   : > { %s989_s0 = scalar_lea.vmem %s5635_s6, %s3864_s10  ;;  %s5639_s29 = sld [smem:[#allocation41_spill]] }
  0xfc   : > { %v5290_v0 = vld [vmem:[%s989_s0] sm:$0xff]  ;;  %v4364_v7 = vld [vmem:[%s5636_s5 + $0x8] sm:$0xff]   ;;  %s5640_s2 = sld [smem:[#allocation55_spill]] }
  0xfd   : > { %v999_v1 = vsel %vm998_vm0, %v5290_v0, 0.0  ;;  %3981 = vmatpush3.bf16.msra.mxu0 %v4364_v7  ;;  %v4365_v9 = vld [vmem:[%s5636_s5] sm:$0xff]  }
  0xfe   : > { %1000 = vadd.xlane.f32.xlu0 %v999_v1  ;;  %3982 = vmatprep.subr.bf16.mxu0 %v4924_v8 }
 0x100   : > { %s993_s27 = scalar_lea.vmem %s5638_s26, %s3864_s10  ;;  %s4928_s26 = smov 112  }
 0x101   : > { %3983 = vmatpush3.bf16.msra.mxu0 %v4365_v9  ;;  %s3922_s10 = sshll.u32 %s5087_s8, 7  ;;  %p5641_p1 = scmp.ne.s32.totalorder %s5639_s29, 0 }
 0x102   : > { %4000 = vmatprep.subr.bf16.mxu0 %v4924_v8  ;;  %s5507_s6 = scalar_lea.hbm %s5640_s2, %s3922_s10  ;;  %s4930_s8 = smov [#allocation26]  }
 0x187   : > { %v1001_v2 = vpop.xlane.xlu0 %1000 }
 0x188   : > { %v1003_v3 = vmul.f32 0.03125, %v1001_v2 }
 0x18a   : > { %v1004_v4 = vsub.f32 %v5290_v0, %v1003_v3 }
 0x18c   : > { %v1005_v5 = vmul.f32 %v1004_v4, %v1004_v4 }
 0x18e   : > { %v1006_v6 = vsel %vm998_vm0, %v1005_v5, 0.0 }
 0x18f   : > { %1007 = vadd.xlane.f32.xlu0 %v1006_v6 }
 0x218   : > { %v1008_v10 = vpop.xlane.xlu0 %1007 }
 0x219   : > { %v1009_v11 = vmul.f32 0.03125, %v1008_v10 }
 0x21b   : > { %v1010_v12 = vadd.f32 1e-05, %v1009_v11 }
 0x21d   : > { %4379 = vrsqrt.f32 %v1010_v12 }
 0x22a   : > { %v4380_v13 = vpop.eup %4379 }
 0x22b   : > { %v1012_v15 = vmul.f32 %v4380_v13, %v1004_v4 }
 0x22d   : > { %v1019_v17 = vmul.f32 %v3866_v14, %v1012_v15 }
 0x22f   : > { %v1026_v18 = vadd.f32 %v3867_v16, %v1019_v17 }
 0x231   : > { %v1027_v19 = vpack.c.bf16 %v1026_v18, %v1026_v18 }
 0x233   : > { %3985 = vmatmul.mubr.msk.bf16.vlgmr.msra.gmra.mxu0 %vm998_vm0, %v1027_v19 }
 0x234   : > { %4002 = vmatprep.mubr.msk.bf16.mxu0 %vm4925_vm1, %v4924_v8 }
 0x2f3   : > { %v1088_v21 = vpop.f32.mrf.mxu0 }
 0x2f4   : > { %v1089_v22 = vadd.f32 %v3868_v20, %v1088_v21 }
 0x2f5   : > { %v3986_v23 = vpop.f32.mrf.mxu0 }
 0x2f6   : > { %1255 = vrot.lane.b32.xlu1 %v1089_v22, %s4926_s28 }
 0x2f7   : > { %v1091_v24 = vpop.f32.mrf.mxu0 }
 0x2f9   : > { %v3987_v25 = vpop.f32.mrf.mxu0 }
 0x31f   : > { %1094 = vxpose.xlu1.b32.start.end [1/1] (short) (narrow) %v1089_v22, 32 }
 0x368   : > { %v1256_v26 = vpop.permute.xlu1 %1255 }
 0x369   : > { %1258 = vxpose.xlu0.b32.start.end [1/1] (short) (narrow) %v1256_v26, 32 }
 0x39b   : > { %v1110_v27 = vpop.trf.xlu1 }
 0x39c   : > { %1126 = vxpose.xlu1.b32.start.end [1/1] (short) (narrow) %v1110_v27, 8 }
 0x39f   : > { %v1111_v28 = vpop.trf.xlu1 }
 0x3a0   : > { %1158 = vxpose.xlu0.b32.start.end [1/1] (short) (narrow) %v1111_v28, 8 }
 0x3a3   : > { %v1112_v29 = vpop.trf.xlu1 }
 0x3a4   : > { %1190 = vxpose.xlu1.b32.start.end [1/1] (short) (narrow) %v1112_v29, 8 }
 0x3a7   : > { %v1113_v30 = vpop.trf.xlu1 }
 0x3a8   : > { %1222 = vxpose.xlu1.b32.start.end [1/1] (short) (narrow) %v1113_v30, 8 }
 0x3c9   : > { %1290 = vrot.lane.b32.xlu0 %v1089_v22, %s4927_s4 }
 0x3e5   : > { %v1274_v31 = vpop.trf.xlu0 }
 0x3e6   : > { %v1457_v32 = vpack.c.bf16 %v1274_v31, %v1274_v31 }
 0x3e8   : > { %v1467_v33 = vsel %vm1465_vm2, %v1457_v32, 0 }
 0x3e9   : > { %3989 = vmatpush3.bf16.msra.mxu1 %v1467_v33  ;;  %v1275_v34 = vpop.trf.xlu0 }
 0x3ea   : > { %3994 = vmatprep.subr.bf16.mxu1 %v4924_v8  ;;  %v1458_v39 = vpack.c.bf16 %v1275_v34, %v1275_v34 }
 0x3ec   : > { %v1513_v42 = vsel %vm1465_vm2, %v1458_v39, 0 }
 0x3ed   : > { %v1276_v35 = vpop.trf.xlu0 }
 0x3ee   : > { %v1459_v36 = vpack.c.bf16 %v1276_v35, %v1276_v35 }
 0x3f0   : > { %v1559_v37 = vsel %vm1465_vm2, %v1459_v36, 0 }
 0x3f1   : > { %4001 = vmatpush3.bf16.msra.mxu0 %v1559_v37  ;;  %v1277_v38 = vpop.trf.xlu0 }
 0x3f2   : > { %4012 = vmatprep.subr.bf16.mxu0 %v4924_v8  ;;  %v1460_v44 = vpack.c.bf16 %v1277_v38, %v1277_v38 }
 0x3f4   : > { %v1605_v48 = vsel %vm1465_vm2, %v1460_v44, 0 }
 0x418   : > { %v1142_v40 = vpop.trf.xlu1 }
 0x419   : > { %v1453_v41 = vpack.c.bf16 %v1142_v40, %v1142_v40 }
 0x41b   : > { %3991 = vmatmul.mubr.msk.bf16.vlgmr.msra.gmra.mxu1 %vm1461_vm3, %v1453_v41 }
 0x41c   : > { %3995 = vmatpush3.bf16.msra.mxu1 %v1513_v42  ;;  %v1174_v43 = vpop.trf.xlu0  ;;  %3996 = vmatprep.mubr.msk.bf16.mxu1 %vm4925_vm1, %v4924_v8 }
 0x41d   : > { %4006 = vmatprep.subr.bf16.mxu1 %v4924_v8  ;;  %v1454_v45 = vpack.c.bf16 %v1174_v43, %v1174_v43 }
 0x420   : > { %v1206_v46 = vpop.trf.xlu1 }
 0x421   : > { %v1455_v47 = vpack.c.bf16 %v1206_v46, %v1206_v46 }
 0x423   : > { %3997 = vmatmul.mubr.msk.bf16.vlgmr.msra.gmra.mxu1 %vm1461_vm3, %v1454_v45  ;;  %4003 = vmatmul.mubr.msk.bf16.vlgmr.msra.gmra.mxu0 %vm1461_vm3, %v1455_v47 }
 0x424   : > { %4007 = vmatpush3.bf16.msra.mxu1 %v1605_v48  ;;  %v1238_v49 = vpop.trf.xlu1  ;;  %4008 = vmatprep.mubr.msk.bf16.mxu1 %vm4925_vm1, %v4924_v8 }
 0x425   : > { %4014 = vmatprep.mubr.msk.bf16.mxu0 %vm4925_vm1, %v4924_v8  ;;  %4018 = vmatprep.subr.bf16.mxu1 %v4924_v8  ;;  %v1456_v50 = vpack.c.bf16 %v1238_v49, %v1238_v49 }
 0x42b   : > { %4009 = vmatmul.mubr.msk.bf16.vlgmr.msra.gmra.mxu1 %vm1461_vm3, %v1456_v50 }
 0x42c   : > { %4020 = vmatprep.mubr.msk.bf16.mxu1 %vm4925_vm1, %v4924_v8 }
 0x43b   : > { %v1291_v51 = vpop.permute.xlu0 %1290 }
 0x43c   : > { %1293 = vxpose.xlu1.b32.start.end [1/1] (short) (narrow) %v1291_v51, 32 }
 0x4b8   : > { %v1309_v9 = vpop.trf.xlu1 }
 0x4bc   : > { %v1310_v10 = vpop.trf.xlu1 }
 0x4c0   : > { %v1311_v11 = vpop.trf.xlu1 }
 0x4c4   : > { %v1312_v13 = vpop.trf.xlu1 }
 0x4db   : > { %v1503_v52 = vpop.f32.mrf.mxu1 }
 0x4dc   : > { %v1647_v53 = vsel %vm1461_vm3, %v1503_v52, -inf }
 0x4dd   : > { %1648 = vmax.xlane.f32.xlu1 %v1647_v53  ;;  %v3992_v54 = vpop.f32.mrf.mxu1 }
 0x4df   : > { %v1506_v55 = vpop.f32.mrf.mxu1 }
 0x4e1   : > { %v3993_v56 = vpop.f32.mrf.mxu1 }
 0x4e3   : > { %v1549_v57 = vpop.f32.mrf.mxu1  ;;  %v1595_v58 = vpop.f32.mrf.mxu0 }
 0x4e4   : > { %v1650_v59 = vsel %vm1461_vm3, %v1549_v57, -inf  ;;  %v1653_v60 = vsel %vm1461_vm3, %v1595_v58, -inf }
 0x4e5   : > { %1651 = vmax.xlane.f32.xlu1 %v1650_v59  ;;  %v3998_v61 = vpop.f32.mrf.mxu1  ;;  %1654 = vmax.xlane.f32.xlu0 %v1653_v60  ;;  %v4004_v62 = vpop.f32.mrf.mxu0 }
 0x4e7   : > { %v1552_v63 = vpop.f32.mrf.mxu1  ;;  %v1598_v1 = vpop.f32.mrf.mxu0 }
 0x4e9   : > { %v3999_v2 = vpop.f32.mrf.mxu1  ;;  %v4005_v3 = vpop.f32.mrf.mxu0 }
 0x4eb   : > { %v1641_v4 = vpop.f32.mrf.mxu1 }
 0x4ec   : > { %v1656_v12 = vsel %vm1461_vm3, %v1641_v4, -inf }
 0x4ed   : > { %v4010_v5 = vpop.f32.mrf.mxu1 }
 0x4ef   : > { %v1644_v6 = vpop.f32.mrf.mxu1 }
 0x4f1   : > { %v4011_v7 = vpop.f32.mrf.mxu1 }
 0x512   : > { %1325 = vxpose.xlu0.b32.start.end [1/1] (short) (narrow) %v1309_v9, 8 }
 0x518   : > { %1357 = vxpose.xlu1.b32.start.end [1/1] (short) (narrow) %v1310_v10, 8 }
 0x51c   : > { %1389 = vxpose.xlu1.b32.start.end [1/1] (short) (narrow) %v1311_v11, 8 }
 0x543   : > { %1657 = vmax.xlane.f32.xlu1 %v1656_v12  ;;  %v4366_v12 = vld [vmem:[%s5637_s9 + $0x8] sm:$0xff]  }
 0x566   : > { %v1649_v14 = vpop.xlane.xlu1 %1648 }
 0x567   : > { %v1659_v15 = vsub.f32 %v1503_v52, %v1649_v14 }
 0x569   : > { %v1663_v16 = vmul.f32 1.442695, %v1659_v15  ;;  %v4367_v15 = vld [vmem:[%s5637_s9] sm:$0xff]  }
 0x56b   : > { %4381 = vpow2.f32 %v1663_v16 }
 0x56e   : > { %v1652_v19 = vpop.xlane.xlu1 %1651  ;;  %v1655_v21 = vpop.xlane.xlu0 %1654 }
 0x56f   : > { %v1660_v20 = vsub.f32 %v1549_v57, %v1652_v19  ;;  %v1661_v23 = vsub.f32 %v1595_v58, %v1655_v21 }
 0x571   : > { %v1665_v22 = vmul.f32 1.442695, %v1660_v20  ;;  %v1667_v24 = vmul.f32 1.442695, %v1661_v23 }
 0x573   : > { %4383 = vpow2.f32 %v1665_v22 }
 0x574   : > { %4385 = vpow2.f32 %v1667_v24  ;;  %v5378_v24 = vld [vmem:[%s993_s27] sm:$0xff] }
 0x576   : > { %1421 = vxpose.xlu1.b32.start.end [1/1] (short) (narrow) %v1312_v13, 8 }
 0x578   : > { %v4382_v17 = vpop.eup %4381 }
 0x579   : > { %v1671_v18 = vsel %vm1461_vm3, %v4382_v17, 0.0  ;;  %v1683_v28 = vpack.c.bf16 %v4382_v17, %v4382_v17 }
 0x57a   : > { %1672 = vadd.xlane.f32.xlu0 %v1671_v18 }
 0x580   : > { %v4384_v31 = vpop.eup %4383 }
 0x581   : > { %v1684_v35 = vpack.c.bf16 %v4384_v31, %v4384_v31  ;;  %v4386_v36 = vpop.eup %4385  ;;  %v1674_v38 = vsel %vm1461_vm3, %v4384_v31, 0.0 }
 0x582   : > { %v1685_v39 = vpack.c.bf16 %v4386_v36, %v4386_v36  ;;  %v1677_v40 = vsel %vm1461_vm3, %v4386_v36, 0.0 }
 0x58e   : > { %v1341_v25 = vpop.trf.xlu0 }
 0x58f   : > { %v1687_v26 = vpack.c.bf16 %v1341_v25, %v1341_v25  ;;  %v2305_v25 = vsel %vm2304_vm4, %v5378_v24, 0.0 }
 0x591   : > { %v1695_v27 = vsel %vm1465_vm2, %v1687_v26, 0  ;;  %v3880_v26 = vld [vmem:[#allocation8] ss:$0 sm:$0xff] }
 0x592   : > { %4013 = vmatpush3.bf16.msra.mxu0 %v1695_v27 }
 0x593   : > { %4024 = vmatprep.subr.bf16.mxu0 %v4924_v8 }
 0x594   : > { %v1373_v29 = vpop.trf.xlu1 }
 0x595   : > { %v1688_v30 = vpack.c.bf16 %v1373_v29, %v1373_v29  ;;  %4015 = vmatmul.mubr.msk.bf16.vlgmr.msra.gmra.mxu0 %vm1461_vm3, %v1683_v28 }
 0x596   : > { %4026 = vmatprep.mubr.msk.bf16.mxu0 %vm4925_vm1, %v4924_v8 }
 0x597   : > { %v1741_v32 = vsel %vm1465_vm2, %v1688_v30, 0 }
 0x598   : > { %4019 = vmatpush3.bf16.msra.mxu1 %v1741_v32  ;;  %v1405_v33 = vpop.trf.xlu1 }
 0x599   : > { %v1689_v34 = vpack.c.bf16 %v1405_v33, %v1405_v33  ;;  %4030 = vmatprep.subr.bf16.mxu1 %v4924_v8 }
 0x59b   : > { %v1787_v37 = vsel %vm1465_vm2, %v1689_v34, 0  ;;  %4021 = vmatmul.mubr.msk.bf16.vlgmr.msra.gmra.mxu1 %vm1461_vm3, %v1684_v35 }
 0x59c   : > { %4025 = vmatpush3.bf16.msra.mxu0 %v1787_v37  ;;  %4032 = vmatprep.mubr.msk.bf16.mxu1 %vm4925_vm1, %v4924_v8 }
 0x59d   : > { %1675 = vadd.xlane.f32.xlu1 %v1674_v38  ;;  %4036 = vmatprep.subr.bf16.mxu0 %v4924_v8 }
 0x59f   : > { %4027 = vmatmul.mubr.msk.bf16.vlgmr.msra.gmra.mxu0 %vm1461_vm3, %v1685_v39 }
 0x5a0   : > { %4040 = vmatprep.mubr.msk.bf16.mxu0 %vm4925_vm1, %v4924_v8  ;;  %4037 = vmatpush3.bf16.msra.mxu0 %v4366_v12 }
 0x5a1   : > { %1678 = vadd.xlane.f32.xlu1 %v1677_v40  ;;  %4038 = vmatprep.subr.bf16.mxu0 %v4924_v8 }
 0x5a4   : > { %4039 = vmatpush3.bf16.msra.mxu0 %v4367_v15 }
 0x5a5   : > { %4052 = vmatprep.subr.bf16.mxu0 %v4924_v8 }
 0x5cc   : > { %v1658_v41 = vpop.xlane.xlu1 %1657 }
 0x5cd   : > { %v1662_v42 = vsub.f32 %v1641_v4, %v1658_v41 }
 0x5cf   : > { %v1669_v43 = vmul.f32 1.442695, %v1662_v42 }
 0x5d1   : > { %4387 = vpow2.f32 %v1669_v43  ;;  %v4368_v43 = vld [vmem:[#allocation13 + $0x8] sm:$0xff]  }
 0x5de   : > { %v4388_v44 = vpop.eup %4387 }
 0x5df   : > { %v1680_v45 = vsel %vm1461_vm3, %v4388_v44, 0.0  ;;  %v1686_v49 = vpack.c.bf16 %v4388_v44, %v4388_v44  ;;  %v4369_v44 = vld [vmem:[#allocation13] sm:$0xff]  }
 0x5e0   : > { %1681 = vadd.xlane.f32.xlu0 %v1680_v45 }
 0x5f2   : > { %v1437_v46 = vpop.trf.xlu1 }
 0x5f3   : > { %v1690_v47 = vpack.c.bf16 %v1437_v46, %v1437_v46 }
 0x5f5   : > { %v1833_v48 = vsel %vm1465_vm2, %v1690_v47, 0 }
 0x5f6   : > { %4031 = vmatpush3.bf16.msra.mxu1 %v1833_v48 }
 0x5f7   : > { %4044 = vmatprep.subr.bf16.mxu1 %v4924_v8 }
 0x5f9   : > { %4033 = vmatmul.mubr.msk.bf16.vlgmr.msra.gmra.mxu1 %vm1461_vm3, %v1686_v49 }
 0x5fa   : > { %4048 = vmatprep.mubr.msk.bf16.mxu1 %vm4925_vm1, %v4924_v8  ;;  %4045 = vmatpush3.bf16.msra.mxu1 %v4368_v43 }
 0x5fb   : > { %4046 = vmatprep.subr.bf16.mxu1 %v4924_v8 }
 0x5fe   : > { %4047 = vmatpush3.bf16.msra.mxu1 %v4369_v44 }
 0x5ff   : > { %4064 = vmatprep.subr.bf16.mxu1 %v4924_v8 }
 0x603   : > { %v1673_v50 = vpop.xlane.xlu0 %1672 }
 0x604   : > { %4389 = vrcp.f32 %v1673_v50 }
 0x611   : > { %v4390_v53 = vpop.eup %4389 }
 0x626   : > { %v1676_v51 = vpop.xlane.xlu1 %1675 }
 0x627   : > { %4391 = vrcp.f32 %v1676_v51 }
 0x62a   : > { %v1679_v52 = vpop.xlane.xlu1 %1678 }
 0x62b   : > { %4393 = vrcp.f32 %v1679_v52  ;;  %v3884_v52 = vld [vmem:[#allocation10] ss:$0 sm:$0xff] }
 0x634   : > { %v4392_v58 = vpop.eup %4391 }
 0x638   : > { %v4394_v63 = vpop.eup %4393 }
 0x655   : > { %v1731_v54 = vpop.f32.mrf.mxu0 }
 0x656   : > { %v1879_v55 = vmul.f32 %v4390_v53, %v1731_v54  ;;  %v3885_v54 = vld [vmem:[#allocation11] ss:$0 sm:$0xff] }
 0x657   : > { %v4016_v56 = vpop.f32.mrf.mxu0 }
 0x658   : > { %1883 = vxpose.xlu1.b32.start.end [1/1] (short) (narrow) %v1879_v55, 8 }
 0x659   : > { %v1734_v57 = vpop.f32.mrf.mxu0 }
 0x65a   : > { %v3896_v57 = vld [vmem:[#allocation17] ss:$0 sm:$0xff] }
 0x65b   : > { %v4017_v59 = vpop.f32.mrf.mxu0  ;;  %v1777_v60 = vpop.f32.mrf.mxu1 }
 0x65c   : > { %v1880_v61 = vmul.f32 %v4392_v58, %v1777_v60  ;;  %v4370_v60 = vld [vmem:[%s5559_s16] sm:$0xff]  }
 0x65d   : > { %v4022_v62 = vpop.f32.mrf.mxu1 }
 0x65e   : > { %1915 = vxpose.xlu0.b32.start.end [1/1] (short) (narrow) %v1880_v61, 8 }
 0x65f   : > { %v1780_v1 = vpop.f32.mrf.mxu1  ;;  %v1823_v2 = vpop.f32.mrf.mxu0 }
 0x660   : > { %v1881_v3 = vmul.f32 %v4394_v63, %v1823_v2  ;;  %v3897_v63 = vld [vmem:[#allocation19] ss:$0 sm:$0xff] }
 0x661   : > { %v4023_v4 = vpop.f32.mrf.mxu1  ;;  %v4028_v5 = vpop.f32.mrf.mxu0 }
 0x662   : > { %1947 = vxpose.xlu0.b32.start.end [1/1] (short) (narrow) %v1881_v3, 8  ;;  %v4371_v3 = vld [vmem:[%s5555_s12 + $0x18] sm:$0xff]   ;;  %v4372_v4 = vld [vmem:[%s5555_s12 + $0x10] sm:$0xff]   ;;  %v4373_v5 = vld [vmem:[%s5555_s12 + $0x8] sm:$0xff]  }
 0x663   : > { %v1826_v6 = vpop.f32.mrf.mxu0 }
 0x664   : > { %v4374_v6 = vld [vmem:[%s5555_s12] sm:$0xff]  }
 0x665   : > { %v4029_v7 = vpop.f32.mrf.mxu0 }
 0x666   : > { %v3886_v7 = vld [vmem:[#allocation14] ss:$0 sm:$0xff] }
 0x669   : > { %v1682_v9 = vpop.xlane.xlu0 %1681 }
 0x66a   : > { %4395 = vrcp.f32 %v1682_v9 }
 0x677   : > { %v4396_v10 = vpop.eup %4395 }
 0x6b9   : > { %v1869_v11 = vpop.f32.mrf.mxu1 }
 0x6ba   : > { %v1882_v13 = vmul.f32 %v4396_v10, %v1869_v11 }
 0x6bb   : > { %v4034_v14 = vpop.f32.mrf.mxu1 }
 0x6bc   : > { %1979 = vxpose.xlu1.b32.start.end [1/1] (short) (narrow) %v1882_v13, 8 }
 0x6bd   : > { %v1872_v16 = vpop.f32.mrf.mxu1 }
 0x6be   : > { %v3898_v16 = vld [vmem:[#allocation20] ss:$0 sm:$0xff] }
 0x6bf   : > { %v4035_v17 = vpop.f32.mrf.mxu1 }
 0x6d4   : > { %v1899_v18 = vpop.trf.xlu1 }
 0x6d5   : > { %2011 = vxpose.xlu0.b32.start [1/4] (short) (narrow) %v1899_v18, 8 }
 0x6da   : > { %v1931_v19 = vpop.trf.xlu0 }
 0x6db   : > { %2012 = vxpose.xlu0.b32.cont [2/4] (short) (narrow) %v1931_v19, 8 }
 0x6de   : > { %v1963_v20 = vpop.trf.xlu0 }
 0x6df   : > { %2013 = vxpose.xlu0.b32.cont [3/4] (short) (narrow) %v1963_v20, 8 }
 0x738   : > { %v1995_v21 = vpop.trf.xlu1 }
 0x739   : > { %2014 = vxpose.xlu0.b32.end [4/4] (short) (narrow) %v1995_v21, 8 }
 0x766   : > { %2306 = vadd.xlane.f32.xlu0 %v2305_v25 }
 0x7a9   : > { %v2027_v22 = vpop.trf.xlu0 }
 0x7aa   : > { %v2043_v23 = vpack.c.bf16 %v2027_v22, %v2027_v22 }
 0x7ac   : > { %4041 = vmatmul.mubr.msk.bf16.vlgmr.msra.gmra.mxu0 %vm998_vm0, %v2043_v23 }
 0x7ad   : > { %4060 = vmatprep.mubr.msk.bf16.mxu0 %vm4925_vm1, %v4924_v8  ;;  %4053 = vmatpush3.bf16.msra.mxu0 %v4371_v3 }
 0x7ae   : > { %4054 = vmatprep.subr.bf16.mxu0 %v4924_v8 }
 0x7b1   : > { %4055 = vmatpush3.bf16.msra.mxu0 %v4372_v4 }
 0x7b2   : > { %4056 = vmatprep.subr.bf16.mxu0 %v4924_v8 }
 0x7b5   : > { %4057 = vmatpush3.bf16.msra.mxu0 %v4373_v5 }
 0x7b6   : > { %4058 = vmatprep.subr.bf16.mxu0 %v4924_v8 }
 0x7b9   : > { %4059 = vmatpush3.bf16.msra.mxu0 %v4374_v6 }
 0x7ba   : > { %4076 = vmatprep.subr.bf16.mxu0 %v4924_v8 }
 0x7ef   : > { %v2307_v34 = vpop.xlane.xlu0 %2306 }
 0x7f0   : > { %v2309_v35 = vmul.f32 0.0625, %v2307_v34 }
 0x7f2   : > { %v2310_v38 = vsub.f32 %v5378_v24, %v2309_v35 }
 0x7f4   : > { %v2311_v41 = vmul.f32 %v2310_v38, %v2310_v38 }
 0x86c   : > { %v2104_v27 = vpop.f32.mrf.mxu0 }
 0x86d   : > { %v2105_v28 = vadd.f32 %v3880_v26, %v2104_v27 }
 0x86e   : > { %v4042_v29 = vpop.f32.mrf.mxu0 }
 0x86f   : > { %v5383_v30 = vadd.f32 %v2105_v28, %v5290_v0  ;;  %v2312_v0 = vsel %vm2304_vm4, %v2311_v41, 0.0 }
 0x870   : > { %v2107_v31 = vpop.f32.mrf.mxu0 }
 0x871   : > { %v2113_v32 = vsel %vm998_vm0, %v5383_v30, 0.0 }
 0x872   : > { %2114 = vadd.xlane.f32.xlu1 %v2113_v32  ;;  %v4043_v33 = vpop.f32.mrf.mxu0 }
 0x8fb   : > { %v2115_v36 = vpop.xlane.xlu1 %2114 }
 0x8fc   : > { %v2116_v37 = vmul.f32 0.03125, %v2115_v36 }
 0x8fe   : > { %v2117_v39 = vsub.f32 %v5383_v30, %v2116_v37 }
 0x900   : > { %v2118_v40 = vmul.f32 %v2117_v39, %v2117_v39 }
 0x902   : > { %v2119_v42 = vsel %vm998_vm0, %v2118_v40, 0.0 }
 0x903   : > { %2120 = vadd.xlane.f32.xlu1 %v2119_v42 }
 0x907   : > { %2313 = vadd.xlane.f32.xlu1 %v2312_v0 }
 0x98c   : > { %v2121_v45 = vpop.xlane.xlu1 %2120 }
 0x98d   : > { %v2122_v46 = vmul.f32 0.03125, %v2121_v45 }
 0x98f   : > { %v2123_v47 = vadd.f32 1e-05, %v2122_v46 }
 0x990   : > { %v2314_v48 = vpop.xlane.xlu1 %2313 }
 0x991   : > { %4397 = vrsqrt.f32 %v2123_v47  ;;  %v2315_v49 = vmul.f32 0.0625, %v2314_v48 }
 0x993   : > { %v2316_v50 = vadd.f32 1e-05, %v2315_v49 }
 0x995   : > { %4399 = vrsqrt.f32 %v2316_v50 }
 0x99e   : > { %v4398_v51 = vpop.eup %4397 }
 0x99f   : > { %v2125_v53 = vmul.f32 %v4398_v51, %v2117_v39 }
 0x9a1   : > { %v2132_v55 = vmul.f32 %v3884_v52, %v2125_v53 }
 0x9a2   : > { %v4400_v56 = vpop.eup %4399 }
 0x9a3   : > { %v2318_v58 = vmul.f32 %v4400_v56, %v2310_v38  ;;  %v2139_v59 = vadd.f32 %v3885_v54, %v2132_v55 }
 0x9a5   : > { %v2140_v61 = vpack.c.bf16 %v2139_v59, %v2139_v59  ;;  %v2325_v62 = vmul.f32 %v3896_v57, %v2318_v58 }
 0x9a7   : > { %4049 = vmatmul.mubr.msk.bf16.vlgmr.msra.gmra.mxu1 %vm998_vm0, %v2140_v61  ;;  %v2332_v1 = vadd.f32 %v3897_v63, %v2325_v62 }
 0x9a8   : > { %4065 = vmatpush3.bf16.msra.mxu1 %v4370_v60  ;;  %4066 = vmatprep.mubr.msk.bf16.mxu1 %vm4925_vm1, %v4924_v8 }
 0x9a9   : > { %4070 = vmatprep.subr.bf16.mxu1 %v4924_v8  ;;  %v2333_v2 = vpack.c.bf16 %v2332_v1, %v2332_v1 }
 0x9af   : > { %4067 = vmatmul.mubr.msk.bf16.vlgmr.msra.gmra.mxu1 %vm2304_vm4, %v2333_v2 }
 0x9b0   : > { %4072 = vmatprep.mubr.msk.bf16.mxu1 %vm4925_vm1, %v4924_v8 }
 0xa67   : > { %v2201_v9 = vpop.f32.mrf.mxu1 }
 0xa68   : > { %v2202_v10 = vadd.f32 %v3886_v7, %v2201_v9 }
 0xa69   : > { %v4050_v11 = vpop.f32.mrf.mxu1 }
 0xa6a   : > { %v2208_v12 = vmul.f32 0.044715, %v2202_v10  ;;  %v2207_v27 = vmul.f32 0.5, %v2202_v10 }
 0xa6b   : > { %v2204_v13 = vpop.f32.mrf.mxu1 }
 0xa6c   : > { %v2209_v14 = vmul.f32 %v2208_v12, %v2202_v10 }
 0xa6d   : > { %v4051_v15 = vpop.f32.mrf.mxu1 }
 0xa6e   : > { %v2210_v17 = vmul.f32 %v2209_v14, %v2202_v10 }
 0xa6f   : > { %v2386_v18 = vpop.f32.mrf.mxu1 }
 0xa70   : > { %v2211_v19 = vadd.f32 %v2210_v17, %v2202_v10  ;;  %v2387_v20 = vadd.f32 %v3898_v16, %v2386_v18 }
 0xa71   : > { %v4068_v21 = vpop.f32.mrf.mxu1 }
 0xa72   : > { %v2212_v22 = vmul.f32 0.7978846, %v2211_v19  ;;  %2392 = vxpose.xlu0.b32.start.end [1/1] (short) (narrow) %v2387_v20, 16  ;;  %2559 = vrot.lane.b32.xlu1 %v2387_v20, %s4928_s26  ;;  %s4929_s26 = smov 32  }
 0xa73   : > { %v2389_v23 = vpop.f32.mrf.mxu1 }
 0xa74   : > { %4401 = vtanh.f32 %v2212_v22 }
 0xa75   : > { %v4069_v25 = vpop.f32.mrf.mxu1 }
 0xa81   : > { %v4402_v26 = vpop.eup %4401 }
 0xa82   : > { %v2214_v28 = vadd.f32 1.0, %v4402_v26 }
 0xa84   : > { %v2215_v29 = vmul.f32 %v2214_v28, %v2207_v27 }
 0xa86   : > { %v2216_v31 = vpack.c.bf16 %v2215_v29, %v2215_v29 }
 0xa88   : > { %4061 = vmatmul.mubr.msk.bf16.vlgmr.msra.gmra.mxu0 %vm2256_vm5, %v2216_v31 }
 0xa89   : > { %4078 = vmatprep.mubr.msk.bf16.mxu0 %vm4925_vm1, %v4924_v8 }
 0xae4   : > { %v2560_v32 = vpop.permute.xlu1 %2559 }
 0xae5   : > { %2562 = vxpose.xlu1.b32.start.end [1/1] (short) (narrow) %v2560_v32, 16 }
 0xaee   : > { %v2408_v33 = vpop.trf.xlu0 }
 0xaef   : > { %v2426_v34 = vcombine.high %v2408_v33, %v2408_v33 }
 0xaf1   : > { %v4336_v35 = vpack.i.bf16 %v2426_v34, %v2408_v33 }
 0xaf2   : > { %v2409_v36 = vpop.trf.xlu0 }
 0xaf3   : > { %4337 = vxpose.xlu0.b32.start.end [1/1] (short) (narrow) %v4336_v35, 8  ;;  %v2427_v37 = vcombine.high %v2409_v36, %v2409_v36 }
 0xaf5   : > { %v4343_v38 = vpack.i.bf16 %v2427_v37, %v2409_v36 }
 0xaf7   : > { %4344 = vxpose.xlu1.b32.start.end [1/1] (short) (narrow) %v4343_v38, 8 }
 0xb1c   : > { %2600 = vrot.lane.b32.xlu0 %v2387_v20, %s4926_s28  ;;  %s983_s28 = sand.u32 1, %s4897_s3  }
 0xb1d   : > { %s3863_s27 = sshll.u32 %s983_s28, 3  ;;  %s3600_s0 = scalar_lea.sflag [#allocation4], %s983_s28 }
 0xb1e   : > { %s985_s30 = scalar_lea.vmem [#allocation26], %s3863_s27 }
 0xb1f   : > { %s3613_s4 = sshll.u32 %s985_s30, 4  ;;  %s3614_s4 = int_to_ptr.vmem [resolvable:$true] %s3613_s4 }
 0xb20   : > { %s4813_s7 = scalar_lea.vmem %s3614_s4, 128 }
 0xb21   : > { %p4814_p0 = scmp.ne.s32.totalorder %s3614_s4, %s4813_s7 }
 0xb23   : > { %p4815_p12 = pnand %p4814_p0, %p5641_p1 }
 0xb25   : > { %p4816_p2 = pneg %p4815_p12 }
 0xb48   : > { %v5422_v39 = vpop.f32.mrf.mxu0 }
 0xb4a   : > { %v4062_v40 = vpop.f32.mrf.mxu0 }
 0xb4c   : > { %v2297_v41 = vpop.f32.mrf.mxu0 }
 0xb4e   : > { %v4063_v42 = vpop.f32.mrf.mxu0 }
 0xb61   : > { %v2578_v0 = vpop.trf.xlu1 }
 0xb62   : > { %v2596_v43 = vcombine.high %v2578_v0, %v2578_v0  ;;  %v2773_v44 = vpack.c.bf16 %v2578_v0, %v2578_v0 }
 0xb64   : > { %v2774_v45 = vpack.c.bf16 %v2596_v43, %v2596_v43  ;;  %v2783_v46 = vsel %vm2781_vm6, %v2773_v44, 0 }
 0xb65   : > { %4071 = vmatpush3.bf16.msra.mxu1 %v2783_v46  ;;  %v2579_v48 = vpop.trf.xlu1 }
 0xb66   : > { %v2829_v47 = vsel %vm2781_vm6, %v2774_v45, 0  ;;  %4082 = vmatprep.subr.bf16.mxu1 %v4924_v8  ;;  %v2597_v49 = vcombine.high %v2579_v48, %v2579_v48  ;;  %v2775_v50 = vpack.c.bf16 %v2579_v48, %v2579_v48 }
 0xb67   : > { %4077 = vmatpush3.bf16.msra.mxu0 %v2829_v47 }
 0xb68   : > { %4088 = vmatprep.subr.bf16.mxu0 %v4924_v8  ;;  %v2776_v52 = vpack.c.bf16 %v2597_v49, %v2597_v49  ;;  %v2875_v57 = vsel %vm2781_vm6, %v2775_v50, 0 }
 0xb6a   : > { %v2921_v59 = vsel %vm2781_vm6, %v2776_v52, 0 }
 0xb6f   : > { %v4338_v51 = vpop.trf.xlu0 }
 0xb70   : > { %v4342_v53 = vunpack.i.h.bf16 %v4338_v51  ;;  %v4339_v54 = vunpack.i.l.bf16 %v4338_v51 }
 0xb72   : > { %v2770_v55 = vpack.c.bf16 %v4342_v53, %v4342_v53  ;;  %v2769_v56 = vpack.c.bf16 %v4339_v54, %v4339_v54 }
 0xb73   : > { %v4345_v58 = vpop.trf.xlu1 }
 0xb74   : > { %4073 = vmatmul.mubr.msk.bf16.vlgmr.msra.gmra.mxu1 %vm2777_vm7, %v2769_v56  ;;  %4079 = vmatmul.mubr.msk.bf16.vlgmr.msra.gmra.mxu0 %vm2777_vm7, %v2770_v55  ;;  %v4349_v60 = vunpack.i.h.bf16 %v4345_v58  ;;  %v4346_v61 = vunpack.i.l.bf16 %v4345_v58 }
 0xb75   : > { %4083 = vmatpush3.bf16.msra.mxu1 %v2875_v57  ;;  %4084 = vmatprep.mubr.msk.bf16.mxu1 %vm4925_vm1, %v4924_v8 }
 0xb76   : > { %4089 = vmatpush3.bf16.msra.mxu0 %v2921_v59  ;;  %4090 = vmatprep.mubr.msk.bf16.mxu0 %vm4925_vm1, %v4924_v8  ;;  %v2772_v62 = vpack.c.bf16 %v4349_v60, %v4349_v60  ;;  %v2771_v63 = vpack.c.bf16 %v4346_v61, %v4346_v61 }
 0xb77   : > { %4094 = vmatprep.subr.bf16.mxu1 %v4924_v8  ;;  %4100 = vmatprep.subr.bf16.mxu0 %v4924_v8 }
 0xb7c   : > { %4085 = vmatmul.mubr.msk.bf16.vlgmr.msra.gmra.mxu1 %vm2777_vm7, %v2771_v63  ;;  %4091 = vmatmul.mubr.msk.bf16.vlgmr.msra.gmra.mxu0 %vm2777_vm7, %v2772_v62 }
 0xb7d   : > { %4096 = vmatprep.mubr.msk.bf16.mxu1 %vm4925_vm1, %v4924_v8  ;;  %4102 = vmatprep.mubr.msk.bf16.mxu0 %vm4925_vm1, %v4924_v8 }
 0xb8e   : > { %v2601_v21 = vpop.permute.xlu0 %2600 }
 0xc34   : > { %v2819_v1 = vpop.f32.mrf.mxu1  ;;  %v2865_v2 = vpop.f32.mrf.mxu0 }
 0xc35   : > { %v2963_v3 = vsel %vm1461_vm3, %v2819_v1, -inf  ;;  %v2966_v9 = vsel %vm1461_vm3, %v2865_v2, -inf }
 0xc36   : > { %2964 = vmax.xlane.f32.xlu1 %v2963_v3  ;;  %v4074_v4 = vpop.f32.mrf.mxu1  ;;  %v4080_v5 = vpop.f32.mrf.mxu0 }
 0xc38   : > { %v2822_v6 = vpop.f32.mrf.mxu1  ;;  %v2868_v7 = vpop.f32.mrf.mxu0 }
 0xc3a   : > { %v4075_v10 = vpop.f32.mrf.mxu1  ;;  %2967 = vmax.xlane.f32.xlu1 %v2966_v9  ;;  %v4081_v11 = vpop.f32.mrf.mxu0 }
 0xc3c   : > { %v2911_v12 = vpop.f32.mrf.mxu1  ;;  %v2957_v13 = vpop.f32.mrf.mxu0 }
 0xc3d   : > { %v2969_v14 = vsel %vm1461_vm3, %v2911_v12, -inf  ;;  %v2972_v22 = vsel %vm1461_vm3, %v2957_v13, -inf }
 0xc3e   : > { %2970 = vmax.xlane.f32.xlu0 %v2969_v14  ;;  %v4086_v15 = vpop.f32.mrf.mxu1  ;;  %v4092_v16 = vpop.f32.mrf.mxu0 }
 0xc40   : > { %v2914_v17 = vpop.f32.mrf.mxu1  ;;  %v2960_v18 = vpop.f32.mrf.mxu0 }
 0xc42   : > { %v4087_v19 = vpop.f32.mrf.mxu1  ;;  %v4093_v20 = vpop.f32.mrf.mxu0 }
 0xc6d   : > { %2603 = vxpose.xlu1.b32.start.end [1/1] (short) (narrow) %v2601_v21, 16 }
 0xc98   : > { %2973 = vmax.xlane.f32.xlu1 %v2972_v22 }
 0xcbf   : > { %v2965_v23 = vpop.xlane.xlu1 %2964 }
 0xcc0   : > { %v2975_v33 = vsub.f32 %v2819_v1, %v2965_v23 }
 0xcc2   : > { %v2979_v36 = vmul.f32 1.442695, %v2975_v33 }
 0xcc3   : > { %v2968_v25 = vpop.xlane.xlu1 %2967 }
 0xcc4   : > { %v2976_v35 = vsub.f32 %v2865_v2, %v2968_v25  ;;  %4403 = vpow2.f32 %v2979_v36 }
 0xcc6   : > { %v2981_v38 = vmul.f32 1.442695, %v2976_v35 }
 0xcc7   : > { %v2971_v34 = vpop.xlane.xlu0 %2970 }
 0xcc8   : > { %v2977_v37 = vsub.f32 %v2911_v12, %v2971_v34  ;;  %4405 = vpow2.f32 %v2981_v38 }
 0xcca   : > { %v2983_v40 = vmul.f32 1.442695, %v2977_v37  ;;  %v4375_v37 = vld [vmem:[%s5561_s18] sm:$0xff]  }
 0xccc   : > { %4407 = vpow2.f32 %v2983_v40 }
 0xcd1   : > { %v4404_v41 = vpop.eup %4403 }
 0xcd2   : > { %v2987_v0 = vsel %vm1461_vm3, %v4404_v41, 0.0  ;;  %v2999_v61 = vpack.c.bf16 %v4404_v41, %v4404_v41 }
 0xcd5   : > { %v4406_v42 = vpop.eup %4405 }
 0xcd6   : > { %v2990_v44 = vsel %vm1461_vm3, %v4406_v42, 0.0  ;;  %v3000_v62 = vpack.c.bf16 %v4406_v42, %v4406_v42 }
 0xcd9   : > { %v4408_v43 = vpop.eup %4407 }
 0xcda   : > { %v2993_v45 = vsel %vm1461_vm3, %v4408_v43, 0.0  ;;  %v3001_v4 = vpack.c.bf16 %v4408_v43, %v4408_v43 }
 0xce9   : > { %v2619_v26 = vpop.trf.xlu1 }
 0xcea   : > { %v2637_v27 = vcombine.high %v2619_v26, %v2619_v26 }
 0xcec   : > { %v4350_v28 = vpack.i.bf16 %v2637_v27, %v2619_v26 }
 0xced   : > { %v2620_v29 = vpop.trf.xlu1 }
 0xcee   : > { %v2638_v31 = vcombine.high %v2620_v29, %v2620_v29  ;;  %4351 = vxpose.xlu0.b32.start.end [1/1] (short) (narrow) %v4350_v28, 8 }
 0xcf0   : > { %v4357_v32 = vpack.i.bf16 %v2638_v31, %v2620_v29 }
 0xcf2   : > { %4358 = vxpose.xlu1.b32.start.end [1/1] (short) (narrow) %v4357_v32, 8 }
 0xd19   : > { %2988 = vadd.xlane.f32.xlu1 %v2987_v0 }
 0xd1b   : > { %2991 = vadd.xlane.f32.xlu0 %v2990_v44 }
 0xd1d   : > { %2994 = vadd.xlane.f32.xlu1 %v2993_v45 }
 0xd21   : > { %v2974_v46 = vpop.xlane.xlu1 %2973 }
 0xd22   : > { %v2978_v47 = vsub.f32 %v2957_v13, %v2974_v46  ;;  %v3909_v46 = vld [vmem:[#allocation22] ss:$0 sm:$0xff] }
 0xd24   : > { %v2985_v48 = vmul.f32 1.442695, %v2978_v47 }
 0xd26   : > { %4409 = vpow2.f32 %v2985_v48 }
 0xd33   : > { %v4410_v49 = vpop.eup %4409 }
 0xd34   : > { %v2996_v50 = vsel %vm1461_vm3, %v4410_v49, 0.0  ;;  %v3002_v5 = vpack.c.bf16 %v4410_v49, %v4410_v49 }
 0xd35   : > { %2997 = vadd.xlane.f32.xlu1 %v2996_v50 }
 0xd6a   : > { %v4352_v51 = vpop.trf.xlu0 }
 0xd6b   : > { %v4356_v52 = vunpack.i.h.bf16 %v4352_v51  ;;  %v4353_v53 = vunpack.i.l.bf16 %v4352_v51 }
 0xd6d   : > { %v3003_v54 = vpack.c.bf16 %v4353_v53, %v4353_v53  ;;  %v3004_v55 = vpack.c.bf16 %v4356_v52, %v4356_v52 }
 0xd6e   : > { %v4359_v56 = vpop.trf.xlu1 }
 0xd6f   : > { %v3011_v57 = vsel %vm1465_vm2, %v3003_v54, 0  ;;  %v3057_v58 = vsel %vm1465_vm2, %v3004_v55, 0  ;;  %v4363_v59 = vunpack.i.h.bf16 %v4359_v56  ;;  %v4360_v60 = vunpack.i.l.bf16 %v4359_v56 }
 0xd70   : > { %4095 = vmatpush3.bf16.msra.mxu1 %v3011_v57  ;;  %4101 = vmatpush3.bf16.msra.mxu0 %v3057_v58 }
 0xd71   : > { %4106 = vmatprep.subr.bf16.mxu1 %v4924_v8  ;;  %4112 = vmatprep.subr.bf16.mxu0 %v4924_v8  ;;  %v3006_v63 = vpack.c.bf16 %v4363_v59, %v4363_v59  ;;  %v3005_v1 = vpack.c.bf16 %v4360_v60, %v4360_v60  ;;  %v4376_v59 = vld [vmem:[%s5565_s22] sm:$0xff]  }
 0xd73   : > { %4097 = vmatmul.mubr.msk.bf16.vlgmr.msra.gmra.mxu1 %vm1461_vm3, %v2999_v61  ;;  %4103 = vmatmul.mubr.msk.bf16.vlgmr.msra.gmra.mxu0 %vm1461_vm3, %v3000_v62  ;;  %v3149_v2 = vsel %vm1465_vm2, %v3006_v63, 0  ;;  %v3103_v3 = vsel %vm1465_vm2, %v3005_v1, 0  ;;  %v3912_v63 = vld [vmem:[#allocation23] ss:$0 sm:$0xff] }
 0xd74   : > { %4113 = vmatpush3.bf16.msra.mxu0 %v3149_v2  ;;  %4108 = vmatprep.mubr.msk.bf16.mxu1 %vm4925_vm1, %v4924_v8  ;;  %v3913_v2 = vld [vmem:[#allocation25] ss:$0 sm:$0xff] }
 0xd75   : > { %4107 = vmatpush3.bf16.msra.mxu1 %v3103_v3  ;;  %4114 = vmatprep.mubr.msk.bf16.mxu0 %vm4925_vm1, %v4924_v8 }
 0xd76   : > { %4118 = vmatprep.subr.bf16.mxu1 %v4924_v8  ;;  %4124 = vmatprep.subr.bf16.mxu0 %v4924_v8 }
 0xd7b   : > { %4109 = vmatmul.mubr.msk.bf16.vlgmr.msra.gmra.mxu1 %vm1461_vm3, %v3001_v4  ;;  %4115 = vmatmul.mubr.msk.bf16.vlgmr.msra.gmra.mxu0 %vm1461_vm3, %v3002_v5 }
 0xd7c   : > { %4120 = vmatprep.mubr.msk.bf16.mxu1 %vm4925_vm1, %v4924_v8  ;;  %4126 = vmatprep.mubr.msk.bf16.mxu0 %vm4925_vm1, %v4924_v8 }
 0xd7d   : > { %4119 = vmatpush3.bf16.msra.mxu1 %v4375_v37  ;;  %4125 = vmatpush3.bf16.msra.mxu0 %v4376_v59 }
 0xd7e   : > { %4130 = vmatprep.subr.bf16.mxu1 %v4924_v8 }
 0xda2   : > { %v2989_v6 = vpop.xlane.xlu1 %2988 }
 0xda3   : > { %4411 = vrcp.f32 %v2989_v6  ;;  %v4377_v6 = vld [vmem:[%s5567_s24 + $0x8] sm:$0xff]  }
 0xda4   : > { %v2992_v7 = vpop.xlane.xlu0 %2991 }
 0xda5   : > { %4413 = vrcp.f32 %v2992_v7  ;;  %v4378_v7 = vld [vmem:[%s5567_s24] sm:$0xff]  }
 0xda6   : > { %v2995_v9 = vpop.xlane.xlu1 %2994 }
 0xda7   : > { %4415 = vrcp.f32 %v2995_v9  ;;  %v3914_v9 = vld [vmem:[%s5566_s23] ss:$0 sm:$0xff] }
 0xdb0   : > { %v4412_v11 = vpop.eup %4411 }
 0xdb2   : > { %v4414_v12 = vpop.eup %4413 }
 0xdb4   : > { %v4416_v23 = vpop.eup %4415 }
 0xdbe   : > { %v2998_v10 = vpop.xlane.xlu1 %2997 }
 0xdbf   : > { %4417 = vrcp.f32 %v2998_v10 }
 0xdcc   : > { %v4418_v31 = vpop.eup %4417 }
 0xe33   : > { %v3047_v13 = vpop.f32.mrf.mxu1  ;;  %v3093_v14 = vpop.f32.mrf.mxu0 }
 0xe34   : > { %v3195_v15 = vmul.f32 %v4412_v11, %v3047_v13  ;;  %v3196_v16 = vmul.f32 %v4414_v12, %v3093_v14 }
 0xe35   : > { %v4098_v17 = vpop.f32.mrf.mxu1  ;;  %v4104_v18 = vpop.f32.mrf.mxu0 }
 0xe36   : > { %3199 = vxpose.xlu1.b32.start.end [1/1] (short) (narrow) %v3195_v15, 8  ;;  %3231 = vxpose.xlu0.b32.start.end [1/1] (short) (narrow) %v3196_v16, 8 }
 0xe37   : > { %v3050_v19 = vpop.f32.mrf.mxu1  ;;  %v3096_v20 = vpop.f32.mrf.mxu0 }
 0xe39   : > { %v4099_v21 = vpop.f32.mrf.mxu1  ;;  %v4105_v22 = vpop.f32.mrf.mxu0 }
 0xe3b   : > { %v3139_v25 = vpop.f32.mrf.mxu1  ;;  %v3185_v26 = vpop.f32.mrf.mxu0 }
 0xe3c   : > { %v3197_v27 = vmul.f32 %v4416_v23, %v3139_v25  ;;  %v3198_v34 = vmul.f32 %v4418_v31, %v3185_v26  ;;  %v3917_v25 = vld [vmem:[%s5568_s25] ss:$0 sm:$0xff] }
 0xe3d   : > { %v4110_v28 = vpop.f32.mrf.mxu1  ;;  %v4116_v29 = vpop.f32.mrf.mxu0 }
 0xe3e   : > { %3263 = vxpose.xlu1.b32.start.end [1/1] (short) (narrow) %v3197_v27, 8 }
 0xe3f   : > { %v3142_v32 = vpop.f32.mrf.mxu1  ;;  %v3188_v33 = vpop.f32.mrf.mxu0 }
 0xe40   : > { %v3890_v33 = vld [vmem:[#allocation16] ss:$0 sm:$0xff] }
 0xe41   : > { %v4111_v35 = vpop.f32.mrf.mxu1  ;;  %v4117_v36 = vpop.f32.mrf.mxu0 }
 0xe42   : > { %3295 = vxpose.xlu1.b32.start.end [1/1] (short) (narrow) %v3198_v34, 8  ;;  %v2295_v34 = vadd.f32 %v3890_v33, %v5422_v39 }
 0xe44   : > { %v2300_v35 = vadd.f32 %v2295_v34, %v5383_v30 }
 0xeb2   : > { %v3215_v38 = vpop.trf.xlu1  ;;  %v3247_v40 = vpop.trf.xlu0 }
 0xeb3   : > { %v3331_v41 = vcombine.low %v3215_v38, %v3247_v40 }
 0xeb5   : > { %3335 = vxpose.xlu0.b32.start [1/2] (short) (narrow) %v3331_v41, 8 }
 0xeba   : > { %v3279_v42 = vpop.trf.xlu1 }
 0xebe   : > { %v3311_v0 = vpop.trf.xlu1 }
 0xebf   : > { %v3332_v43 = vcombine.low %v3279_v42, %v3311_v0 }
 0xec1   : > { %3336 = vxpose.xlu0.b32.end [2/2] (short) (narrow) %v3332_v43, 8 }
 0xf39   : > { %v3351_v44 = vpop.trf.xlu0 }
 0xf3a   : > { %v3367_v45 = vpack.c.bf16 %v3351_v44, %v3351_v44 }
 0xf3c   : > { %4121 = vmatmul.mubr.msk.bf16.vlgmr.msra.gmra.mxu1 %vm2304_vm4, %v3367_v45 }
 0xf3d   : > { %4134 = vmatprep.mubr.msk.bf16.mxu1 %vm4925_vm1, %v4924_v8  ;;  %4131 = vmatpush3.bf16.msra.mxu1 %v4377_v6 }
 0xf3e   : > { %4132 = vmatprep.subr.bf16.mxu1 %v4924_v8 }
 0xf41   : > { %4133 = vmatpush3.bf16.msra.mxu1 %v4378_v7 }
 0xffc   : > { %v3420_v47 = vpop.f32.mrf.mxu1 }
 0xffd   : > { %v3421_v48 = vadd.f32 %v3909_v46, %v3420_v47 }
 0xffe   : > { %v4122_v49 = vpop.f32.mrf.mxu1 }
 0xfff   : > { %v3426_v50 = vadd.f32 %v3421_v48, %v5378_v24 }
0x1000   : > { %v3423_v51 = vpop.f32.mrf.mxu1 }
0x1001   : > { %v3429_v52 = vsel %vm2304_vm4, %v3426_v50, 0.0 }
0x1002   : > { %3430 = vadd.xlane.f32.xlu1 %v3429_v52  ;;  %v4123_v53 = vpop.f32.mrf.mxu1 }
0x108b   : > { %v3431_v54 = vpop.xlane.xlu1 %3430 }
0x108c   : > { %v3432_v55 = vmul.f32 0.0625, %v3431_v54 }
0x108e   : > { %v3433_v56 = vsub.f32 %v3426_v50, %v3432_v55 }
0x1090   : > { %v3434_v57 = vmul.f32 %v3433_v56, %v3433_v56 }
0x1092   : > { %v3435_v58 = vsel %vm2304_vm4, %v3434_v57, 0.0 }
0x1093   : > { %3436 = vadd.xlane.f32.xlu0 %v3435_v58 }
0x111c   : > { %v3437_v60 = vpop.xlane.xlu0 %3436 }
0x111d   : > { %v3438_v61 = vmul.f32 0.0625, %v3437_v60 }
0x111f   : > { %v3439_v24 = vadd.f32 1e-05, %v3438_v61 }
0x1121   : > { %4419 = vrsqrt.f32 %v3439_v24 }
0x112e   : > { %v4420_v62 = vpop.eup %4419 }
0x112f   : > { %v3441_v1 = vmul.f32 %v4420_v62, %v3433_v56 }
0x1131   : > { %v3448_v3 = vmul.f32 %v3912_v63, %v3441_v1 }
0x1133   : > { %v3455_v4 = vadd.f32 %v3913_v2, %v3448_v3 }
0x1135   : > { %v3456_v5 = vpack.c.bf16 %v3455_v4, %v3455_v4 }
0x1137   : > { %4127 = vmatmul.mubr.msk.bf16.vlgmr.msra.gmra.mxu0 %vm2304_vm4, %v3456_v5 }
0x11f7   : > { %v3509_v10 = vpop.f32.mrf.mxu0 }
0x11f8   : > { %v3510_v11 = vadd.f32 %v3914_v9, %v3509_v10 }
0x11f9   : > { %v4128_v12 = vpop.f32.mrf.mxu0 }
0x11fa   : > { %v3516_v13 = vmul.f32 0.044715, %v3510_v11  ;;  %v3515_v21 = vmul.f32 0.5, %v3510_v11 }
0x11fb   : > { %v3512_v14 = vpop.f32.mrf.mxu0 }
0x11fc   : > { %v3517_v15 = vmul.f32 %v3516_v13, %v3510_v11 }
0x11fd   : > { %v4129_v16 = vpop.f32.mrf.mxu0 }
0x11fe   : > { %v3518_v17 = vmul.f32 %v3517_v15, %v3510_v11 }
0x1200   : > { %v3519_v18 = vadd.f32 %v3518_v17, %v3510_v11 }
0x1202   : > { %v3520_v19 = vmul.f32 0.7978846, %v3519_v18 }
0x1204   : > { %4421 = vtanh.f32 %v3520_v19 }
0x1211   : > { %v4422_v20 = vpop.eup %4421 }
0x1212   : > { %v3522_v8 = vadd.f32 1.0, %v4422_v20 }
0x1214   : > { %v3523_v22 = vmul.f32 %v3522_v8, %v3515_v21 }
0x1216   : > { %v3524_v23 = vpack.c.bf16 %v3523_v22, %v3523_v22 }
0x1218   : > { %4135 = vmatmul.mubr.msk.bf16.vlgmr.msra.gmra.mxu1 %vm998_vm0, %v3524_v23 }
0x12d8   : > { %v3585_v26 = vpop.f32.mrf.mxu1 }
0x12d9   : > { %v3586_v27 = vadd.f32 %v3917_v25, %v3585_v26 }
0x12da   : > { %v4136_v28 = vpop.f32.mrf.mxu1 }
0x12db   : > { %v3591_v29 = vadd.f32 %v3586_v27, %v3426_v50 }
0x12dc   : > { %v3588_v31 = vpop.f32.mrf.mxu1 }
0x12dd   : > { %3593 = vrot.lane.b32.xlu1 %v3591_v29, %s4929_s26  ;;  %s4817_s26 = sshll.u32 %s4930_s8, 4  ;;  %s4818_s26 = int_to_ptr.vmem [resolvable:$false] %s4817_s26 }
0x12de   : > { %v4137_v32 = vpop.f32.mrf.mxu1  ;;  %s4819_s27 = scalar_lea.vmem %s4818_s26, 256  ;;  %p4820_p9 = scmp.lt.s32.totalorder %s3614_s4, %s4818_s26 }
0x12df   : > { %p4821_p3 = scmp.lt.s32.totalorder %s4819_s27, %s4813_s7 }
0x12e1   : > { %p4822_p5 = por %p4821_p3, %p4820_p9 }
0x12e3   : > { %p4823_p6 = pnand %p4822_p5, %p4816_p2 }
0x134f   : > { %v3594_v36 = vpop.permute.xlu1 %3593 }
0x1350   : > { %v3596_v37 = vsel %vm998_vm0, %v2300_v35, %v3594_v36 }
0x1351   : > { %3598 = vst.msk [vmem:[%s985_s30] sm:$0xff] %vm3597_vm8, %v3596_v37 }
0x1352   : > { %4826 = shalt.err (!%p4823_p6)
}
0x1353   : > { %s4827_s10 = scalar_lea.hbm %s5507_s6, 128  ;;  %s4831_s11 = scalar_lea.hbm %s5640_s2, 256 }
0x1354   : > { %p4828_p10 = scmp.ne.s32.totalorder %s5507_s6, %s4827_s10  ;;  %p4832_p8 = scmp.lt.s32.totalorder %s5507_s6, %s5640_s2 }
0x1355   : > { %p4833_p13 = scmp.lt.s32.totalorder %s4831_s11, %s4827_s10 }
0x1356   : > { %p4829_p4 = pnand %p4828_p10, %p5641_p1 }
0x1357   : > { %p4834_p11 = por %p4833_p13, %p4832_p8 }
0x1358   : > { %p4830_p7 = pneg %p4829_p4 }
0x135a   : > { %p4835_p0 = pnand %p4834_p11, %p4830_p7 }
0x135c   : > { %4838 = shalt.err (!%p4835_p0)
}
0x135d   : > { %4198 = dma.vmem_to_hbm [thread:$0]  (%p5641_p1), %s3614_s4, 128, %s5507_s6, %s3600_s0  }
0x135e PF: > { %s5642_s7 = sld [smem:[#allocation38_spill]] }
0x135f   : > { %s5643_s26 = sld [smem:[#allocation36_spill]] }
0x1360   : > { %s5644_s27 = sld [smem:[#allocation42_spill]] }
0x1364   : > { %p4280_p12 = scmp.ge.s32.totalorder %s5642_s7, 2 }
0x1365   : > { %s3625_s5 = sand.u32 1, %s5643_s26  }
0x1366   : > { %p5645_p2 = scmp.ne.s32.totalorder %s5644_s27, 0  ;;  %s3626_s28 = scalar_lea.sflag [#allocation4], %s3625_s5 }
0x1368   : > { %p4247_p9 = pnand %p4280_p12, %p5645_p2 }
0x136a   : > { %p4248_p3 = pneg %p4247_p9 }
0x136c   : > { %4888 = dma.done.wait (%p4248_p3), %s3626_s28, 128  }
0x136d   : > { %4890 = vsyncadd (%p4248_p3), %s3626_s28, 4294967168  ;;  %s5646_s28 = sld [smem:[#allocation39_spill]]  ;;  %s5649_s27 = smov %s4897_s3 }
0x136e   : > { %s5647_s10 = sld [smem:[#allocation37_spill]] }
0x136f   : > { %s5648_s7 = sld [smem:[#allocation40_spill]] }
0x1373   : > { %p44_p5 = scmp.ge.s32.totalorder %s5646_s28, 4  }
0x1374   : > { %s5650_s3 = smov %s5647_s10 }
0x1375   :  { %46 = sbr.rel (!%p44_p5) target bundleno = 25 (0x19), region = 223 }
0x137a   :  { %3631 = vsyncpa [#allocation3], 1 }
0x137b   :  { %3633 = vsyncpa [#allocation3 + $0x1], 1 }
0x137c   :  { %3634 = vsyncpa [#allocation6], 1 }
0x137d   :  { %3635 = vsyncpa [#allocation9], 1 }
0x137e   :  { %3636 = vsyncpa [#allocation12], 1 }
0x137f   :  { %3637 = vsyncpa [#allocation15], 1 }
0x1380   :  { %3638 = vsyncpa [#allocation18], 1 }
0x1381   :  { %3639 = vsyncpa [#allocation21], 1 }
0x1382   :  { %3640 = vsyncpa [#allocation24], 1 }
0x1383   :  { %3641 = vsyncpa [#allocation4], 1 }
0x1384   :  { %3643 = vsyncpa [#allocation4 + $0x1], 1 }

</bundles_post_ra>
